<compile_context>
chip_gen: v7x
topology: tpu7x:2x2x1
jax: 0.10.0
libtpu: 0.0.40
codegen_flags: <defaults>
</compile_context>

<pallas_src>
import functools

import jax
import jax.numpy as jnp
from jax.experimental import pallas as pl
from jax.experimental.pallas import tpu as pltpu


# ------------------------------ fused layer kernel ------------------------------

def _decoder_layer_kernel(
    # activations: (batch_block, L, D) blocks
    tgt_ref, pose_ref, mem_ref, pos_ref, qpos_ref,
    # packed parameters
    w_in_ref,   # (3, D, 3D)   rows = [self, cross1, cross2]; cols = [Wq | Wk | Wv]
    b_in_ref,   # (3, 1, 3D)
    w_out_ref,  # (3, D, D)
    b_out_ref,  # (3, 1, D)
    fw1_ref,    # (D, 2D)
    fb1_ref,    # (1, 2D)
    fw2_ref,    # (2D, D)
    fb2_ref,    # (1, D)
    ln_ref,     # (6, 1, D)    rows = [g1, b1, g2, b2, g3, b3]
    # output
    out_ref,    # (batch_block, Lq, D)
    *, nhead, eps, matmul_dtype):
    f32 = jnp.float32
    bb, lq, d = tgt_ref.shape
    lk = mem_ref.shape[1]
    lp = pose_ref.shape[1]
    dh = d // nhead
    scale = 1.0 / float(dh) ** 0.5
    mq = bb * lq

    def mm(x, w):
        # MXU matmul: (optionally bf16) operands, f32 accumulation.
        return jnp.dot(x.astype(matmul_dtype), w.astype(matmul_dtype),
                       preferred_element_type=f32)

    # Residual / LayerNorm trunk stays in f32.  Leading-dim reshapes only
    # ((B, L, D) <-> (B*L, D)); the lane dim is never reshaped.
    tgt = tgt_ref[...].astype(f32).reshape(mq, d)
    qpos = qpos_ref[...].astype(f32).reshape(mq, d)
    mem = mem_ref[...].astype(f32).reshape(bb * lk, d)
    pos = pos_ref[...].astype(f32).reshape(bb * lk, d)
    pose = pose_ref[...].astype(f32).reshape(bb * lp, d)

    def mha(q_flat, k_flat, v_flat, lkv, idx):
        # q_flat: (bb*lq, D).  k_flat is None => self-attention (k input == q input),
        # which fuses the Q+K projection into one wide matmul.
        # Weights/biases are sliced at the Ref (free views), batch folded into M.
        if k_flat is None:
            qk = (mm(q_flat, w_in_ref[idx, :, 0:2 * d])
                  + b_in_ref[idx, :, 0:2 * d].astype(f32))
            qp, kp = qk[:, :d], qk[:, d:]
        else:
            qp = (mm(q_flat, w_in_ref[idx, :, 0:d])
                  + b_in_ref[idx, :, 0:d].astype(f32))
            kp = (mm(k_flat, w_in_ref[idx, :, d:2 * d])
                  + b_in_ref[idx, :, d:2 * d].astype(f32))
        vp = (mm(v_flat, w_in_ref[idx, :, 2 * d:3 * d])
              + b_in_ref[idx, :, 2 * d:3 * d].astype(f32))

        qp3 = qp.reshape(bb, lq, d)
        kp3 = kp.reshape(bb, lkv, d)
        vp3 = vp.reshape(bb, lkv, d)

        # Per-head trace-time loop, batch dim folded into a batched einsum.
        # TODO(synk): a fully (batch*head)-batched einsum needs a lane-splitting
        # reshape (D -> H, dh); kept as H lane slices for robust Mosaic lowering.
        heads = []
        for h in range(nhead):
            sl = slice(h * dh, (h + 1) * dh)
            qh = (qp3[:, :, sl] * scale).astype(matmul_dtype)
            kh = kp3[:, :, sl].astype(matmul_dtype)
            vh = vp3[:, :, sl].astype(matmul_dtype)
            s = jnp.einsum('bqd,bkd->bqk', qh, kh, preferred_element_type=f32)
            s = s - jnp.max(s, axis=-1, keepdims=True)
            e = jnp.exp(s)
            p = e * pl.reciprocal(jnp.sum(e, axis=-1, keepdims=True), approx=True)
            heads.append(jnp.einsum('bqk,bkd->bqd', p.astype(matmul_dtype), vh,
                                    preferred_element_type=f32))
        # Single concatenated out-projection (one (M,D)x(D,D) matmul).
        o = jnp.concatenate(heads, axis=-1).reshape(mq, d)
        return mm(o, w_out_ref[idx]) + b_out_ref[idx].astype(f32)

    def add_ln(x, res, idx):
        y = x + res
        mu = jnp.mean(y, axis=-1, keepdims=True)
        var = jnp.mean(jnp.square(y - mu), axis=-1, keepdims=True)
        yn = (y - mu) * jax.lax.rsqrt(var + eps)
        return yn * ln_ref[2 * idx].astype(f32) + ln_ref[2 * idx + 1].astype(f32)

    # 1) self-attention (q = k = tgt + query_pos, v = tgt) + residual + norm1
    qk_in = tgt + qpos
    sa = mha(qk_in, None, tgt, lq, 0)
    x = add_ln(sa, tgt, 0)

    # 2) cross-attention over memory + residual + norm2
    ca1 = mha(x + qpos, mem + pos, mem, lk, 1)
    x = add_ln(ca1, x, 1)

    # 3) cross-attention over pose_memory -> FFN -> residual + norm3
    ca2 = mha(x + qpos, pose + pos, pose, lp, 2)
    hid = jnp.maximum(mm(ca2, fw1_ref[...]) + fb1_ref[...].astype(f32), 0.0)
    ff = mm(hid, fw2_ref[...]) + fb2_ref[...].astype(f32)
    x = add_ln(ff, x, 2)

    # TODO(synk): with d_model < 128 the store is a masked partial vst; in production
    # pad d_model to a multiple of 128 (or emit a lane-dense (1, Lq*D) slab).
    out_ref[...] = x.reshape(bb, lq, d).astype(out_ref.dtype)


# ---------------------------------- wrapper ----------------------------------

def transformer_temporal_decoder_layer(tgt, pose_memory, memory, pos, query_pos,
                                       params, *, nhead, eps=1e-5,
                                       matmul_dtype=jnp.bfloat16, batch_block=None):
    """Inputs are sequence-major (L, B, D), matching nn.MultiheadAttention defaults.

    matmul_dtype: operand dtype fed to the MXU (accumulation always f32).  bf16 is
      ~2x MXU rate on v6e/v7x and halves resident weight bytes; use jnp.float32 for
      bit-tight numerics (v5e elementwise math is f32 either way).
    batch_block: batch elements per grid step.  Default = whole batch (one grid
      step; best on single-TensorCore v5e/v6e).  On v7x set bsz // 2 so the
      "parallel" grid gives both TensorCores work.
    """
    lq, bsz, d = tgt.shape
    lk = memory.shape[0]
    lp = pose_memory.shape[0]
    assert d % nhead == 0
    # `pos` is added to BOTH memory and pose_memory, so their lengths must match.
    assert lp == lk and pos.shape[0] == lk, \
        "memory / pose_memory / pos must have the same sequence length"
    if batch_block is None:
        batch_block = bsz
    assert bsz % batch_block == 0
    nblk = bsz // batch_block

    # One layout change at the layer boundary: (L,B,D) -> (B,L,D) so batch can be
    # folded into the matmul M dim.  In a layer stack, hoist this to the model
    # boundary and keep activations batch-major between layers.
    to_bld = lambda a: jnp.transpose(a, (1, 0, 2))
    acts = [to_bld(tgt), to_bld(pose_memory), to_bld(memory), to_bld(pos),
            to_bld(query_pos)]
    act_specs = [
        pl.BlockSpec((batch_block, lq, d), lambda b: (b, 0, 0)),
        pl.BlockSpec((batch_block, lp, d), lambda b: (b, 0, 0)),
        pl.BlockSpec((batch_block, lk, d), lambda b: (b, 0, 0)),
        pl.BlockSpec((batch_block, lk, d), lambda b: (b, 0, 0)),
        pl.BlockSpec((batch_block, lq, d), lambda b: (b, 0, 0)),
    ]

    # Pack 22 parameters into 9 operands (fewer BlockSpecs / DMA descriptors).
    # NOTE: the weight layout here is the "x @ W" (D, 3D) convention; PyTorch's
    # in_proj_weight is (3D, D) applied as x @ W.T -> transpose when importing a
    # real checkpoint (same for out_proj.weight).
    mdt = matmul_dtype
    w_in = jnp.stack([params["sa_w_in"], params["ca1_w_in"], params["ca2_w_in"]]).astype(mdt)
    b_in = jnp.stack([params["sa_b_in"], params["ca1_b_in"], params["ca2_b_in"]])
    w_out = jnp.stack([params["sa_w_out"], params["ca1_w_out"], params["ca2_w_out"]]).astype(mdt)
    b_out = jnp.stack([params["sa_b_out"], params["ca1_b_out"], params["ca2_b_out"]])
    ln = jnp.stack([params["n1_g"], params["n1_b"], params["n2_g"], params["n2_b"],
                    params["n3_g"], params["n3_b"]])
    plist = [w_in, b_in, w_out, b_out,
             params["ffn_w1"].astype(mdt), params["ffn_b1"],
             params["ffn_w2"].astype(mdt), params["ffn_b2"], ln]

    def _const_spec(arr):
        zeros = (0,) * arr.ndim
        return pl.BlockSpec(arr.shape, lambda b, z=zeros: z)   # resident in VMEM
    param_specs = [_const_spec(p) for p in plist]

    out = pl.pallas_call(
        functools.partial(_decoder_layer_kernel, nhead=nhead, eps=eps,
                          matmul_dtype=matmul_dtype),
        grid=(nblk,),
        out_shape=jax.ShapeDtypeStruct((bsz, lq, d), tgt.dtype),
        in_specs=act_specs + param_specs,
        out_specs=pl.BlockSpec((batch_block, lq, d), lambda b: (b, 0, 0)),
        compiler_params=pltpu.CompilerParams(dimension_semantics=("parallel",)),
        # TODO(synk): at large d_model also single-buffer the constant-index weight
        # specs (pipeline_mode=pl.Buffered(1)) and set vmem_limit_bytes explicitly to
        # protect v7x's 64 MiB VMEM; weights are already stored bf16 in that path.
    )(*acts, *plist)

    return jnp.transpose(out, (1, 0, 2))                  # back to (Lq, B, D)


# --------------------------- pure-JAX reference check ---------------------------

def _reference_layer(tgt, pose_memory, memory, pos, query_pos, p, nhead, eps=1e-5):
    def mha(q, k, v, w_in, b_in, w_out, b_out):
        lq, bsz, d = q.shape
        lk = k.shape[0]
        dh = d // nhead
        qp = q @ w_in[:, :d] + b_in[0, :d]
        kp = k @ w_in[:, d:2 * d] + b_in[0, d:2 * d]
        vp = v @ w_in[:, 2 * d:] + b_in[0, 2 * d:]
        split = lambda x, l: x.reshape(l, bsz, nhead, dh).transpose(1, 2, 0, 3)
        qh, kh, vh = split(qp, lq), split(kp, lk), split(vp, lk)
        s = jnp.einsum('bhqd,bhkd->bhqk', qh, kh) / jnp.sqrt(jnp.float32(dh))
        pa = jax.nn.softmax(s, axis=-1)
        o = jnp.einsum('bhqk,bhkd->bhqd', pa, vh).transpose(2, 0, 1, 3).reshape(lq, bsz, d)
        return o @ w_out + b_out[0]

    def ln(x, g, b):
        mu = x.mean(-1, keepdims=True)
        var = ((x - mu) ** 2).mean(-1, keepdims=True)
        return (x - mu) * jax.lax.rsqrt(var + eps) * g[0] + b[0]

    q = tgt + query_pos
    sa = mha(q, q, tgt, p["sa_w_in"], p["sa_b_in"], p["sa_w_out"], p["sa_b_out"])
    x = ln(tgt + sa, p["n1_g"], p["n1_b"])
    ca1 = mha(x + query_pos, memory + pos, memory,
              p["ca1_w_in"], p["ca1_b_in"], p["ca1_w_out"], p["ca1_b_out"])
    x = ln(x + ca1, p["n2_g"], p["n2_b"])
    ca2 = mha(x + query_pos, pose_memory + pos, pose_memory,
              p["ca2_w_in"], p["ca2_b_in"], p["ca2_w_out"], p["ca2_b_out"])
    h = jnp.maximum(ca2 @ p["ffn_w1"] + p["ffn_b1"][0], 0.0)
    ff = h @ p["ffn_w2"] + p["ffn_b2"][0]
    return ln(x + ff, p["n3_g"], p["n3_b"])


# ------------------------------- parameter init -------------------------------

def init_params(key, d_model):
    dff = 2 * d_model                       # FFN(d_model, d_model*2, d_model)
    ks = jax.random.split(key, 16)

    def w(k, shape, scale=0.05):
        return jax.random.normal(k, shape, jnp.float32) * scale

    ones = jnp.ones((1, d_model), jnp.float32)
    zeros = jnp.zeros((1, d_model), jnp.float32)
    return dict(
        sa_w_in=w(ks[0], (d_model, 3 * d_model)), sa_b_in=w(ks[1], (1, 3 * d_model)),
        sa_w_out=w(ks[2], (d_model, d_model)), sa_b_out=w(ks[3], (1, d_model)),
        ca1_w_in=w(ks[4], (d_model, 3 * d_model)), ca1_b_in=w(ks[5], (1, 3 * d_model)),
        ca1_w_out=w(ks[6], (d_model, d_model)), ca1_b_out=w(ks[7], (1, d_model)),
        ca2_w_in=w(ks[8], (d_model, 3 * d_model)), ca2_b_in=w(ks[9], (1, 3 * d_model)),
        ca2_w_out=w(ks[10], (d_model, d_model)), ca2_b_out=w(ks[11], (1, d_model)),
        ffn_w1=w(ks[12], (d_model, dff)), ffn_b1=w(ks[13], (1, dff)),
        ffn_w2=w(ks[14], (dff, d_model)), ffn_b2=w(ks[15], (1, d_model)),
        n1_g=ones, n1_b=zeros, n2_g=ones, n2_b=zeros, n3_g=ones, n3_b=zeros,
    )


# ------------------------------------ main ------------------------------------

if __name__ == "__main__":
    nhead = 4
    d_model = 32
    num_queries = 8     # tgt sequence length
    mem_len = 16        # memory / pose_memory sequence length
    batch = 2

    key = jax.random.PRNGKey(0)
    ks = jax.random.split(key, 6)
    tgt = jax.random.normal(ks[0], (num_queries, batch, d_model), jnp.float32)
    pose_memory = jax.random.normal(ks[1], (mem_len, batch, d_model), jnp.float32)
    memory = jax.random.normal(ks[2], (mem_len, batch, d_model), jnp.float32)
    pos = jax.random.normal(ks[3], (mem_len, batch, d_model), jnp.float32)
    query_pos = jax.random.normal(ks[4], (num_queries, batch, d_model), jnp.float32)
    params = init_params(ks[5], d_model)

    ref = _reference_layer(tgt, pose_memory, memory, pos, query_pos, params, nhead)

    # f32-operand path: tight numerics check of the fused structure.
    fwd_f32 = jax.jit(functools.partial(transformer_temporal_decoder_layer,
                                        nhead=nhead, matmul_dtype=jnp.float32))
    out_f32 = fwd_f32(tgt, pose_memory, memory, pos, query_pos, params)
    jax.block_until_ready(out_f32)
    assert out_f32.shape == (num_queries, batch, d_model), out_f32.shape
    assert bool(jnp.all(jnp.isfinite(out_f32)))
    err_f32 = float(jnp.max(jnp.abs(out_f32 - ref)))
    assert err_f32 < 5e-3, f"f32 path max abs err vs reference: {err_f32}"

    # bf16-MXU path (default): the performance configuration for v6e / v7x.
    fwd_bf16 = jax.jit(functools.partial(transformer_temporal_decoder_layer,
                                         nhead=nhead))
    out_bf16 = fwd_bf16(tgt, pose_memory, memory, pos, query_pos, params)
    jax.block_until_ready(out_bf16)
    assert out_bf16.shape == (num_queries, batch, d_model), out_bf16.shape
    assert bool(jnp.all(jnp.isfinite(out_bf16)))
    err_bf16 = float(jnp.max(jnp.abs(out_bf16 - ref)))
    assert err_bf16 < 8e-2, f"bf16 path max abs err vs reference: {err_bf16}"

    print("KERNEL_OK")
</pallas_src>

<mosaic_0001>
module attributes {stable_mosaic.version = 11 : i64} {
  func.func @_decoder_layer_kernel(%arg0: i32, %arg1: memref<2x8x32xf32, #tpu.memory_space<vmem>>, %arg2: memref<2x16x32xf32, #tpu.memory_space<vmem>>, %arg3: memref<2x16x32xf32, #tpu.memory_space<vmem>>, %arg4: memref<2x16x32xf32, #tpu.memory_space<vmem>>, %arg5: memref<2x8x32xf32, #tpu.memory_space<vmem>>, %arg6: memref<3x32x96xf32, #tpu.memory_space<vmem>>, %arg7: memref<3x1x96xf32, #tpu.memory_space<vmem>>, %arg8: memref<3x32x32xf32, #tpu.memory_space<vmem>>, %arg9: memref<3x1x32xf32, #tpu.memory_space<vmem>>, %arg10: memref<32x64xf32, #tpu.memory_space<vmem>>, %arg11: memref<1x64xf32, #tpu.memory_space<vmem>>, %arg12: memref<64x32xf32, #tpu.memory_space<vmem>>, %arg13: memref<1x32xf32, #tpu.memory_space<vmem>>, %arg14: memref<6x1x32xf32, #tpu.memory_space<vmem>>, %arg15: memref<2x8x32xf32, #tpu.memory_space<vmem>>) attributes {dimension_semantics = [#tpu.dimension_semantics<parallel>], iteration_bounds = array<i64: 1>, scalar_prefetch = 0 : i64, scratch_operands = 0 : i64, tpu.core_type = #tpu.core_type<tc>, window_params = [{transform_indices = @transform_0, window_bounds = array<i64: 2, 8, 32>}, {transform_indices = @transform_1, window_bounds = array<i64: 2, 16, 32>}, {transform_indices = @transform_2, window_bounds = array<i64: 2, 16, 32>}, {transform_indices = @transform_3, window_bounds = array<i64: 2, 16, 32>}, {transform_indices = @transform_4, window_bounds = array<i64: 2, 8, 32>}, {pipeline_mode = #tpu.pipeline_mode<synchronous>, transform_indices = @transform_5, window_bounds = array<i64: 3, 32, 96>}, {pipeline_mode = #tpu.pipeline_mode<synchronous>, transform_indices = @transform_6, window_bounds = array<i64: 3, 1, 96>}, {pipeline_mode = #tpu.pipeline_mode<synchronous>, transform_indices = @transform_7, window_bounds = array<i64: 3, 32, 32>}, {pipeline_mode = #tpu.pipeline_mode<synchronous>, transform_indices = @transform_8, window_bounds = array<i64: 3, 1, 32>}, {pipeline_mode = #tpu.pipeline_mode<synchronous>, transform_indices = @transform_9, window_bounds = array<i64: 32, 64>}, {pipeline_mode = #tpu.pipeline_mode<synchronous>, transform_indices = @transform_10, window_bounds = array<i64: 1, 64>}, {pipeline_mode = #tpu.pipeline_mode<synchronous>, transform_indices = @transform_11, window_bounds = array<i64: 64, 32>}, {pipeline_mode = #tpu.pipeline_mode<synchronous>, transform_indices = @transform_12, window_bounds = array<i64: 1, 32>}, {pipeline_mode = #tpu.pipeline_mode<synchronous>, transform_indices = @transform_13, window_bounds = array<i64: 6, 1, 32>}, {transform_indices = @transform_14, window_bounds = array<i64: 2, 8, 32>}]} {
    %c0 = arith.constant 0 : index
    %c0_0 = arith.constant 0 : index
    %c0_1 = arith.constant 0 : index
    %0 = vector.load %arg1[%c0, %c0_0, %c0_1] : memref<2x8x32xf32, #tpu.memory_space<vmem>>, vector<2x8x32xf32>
    %1 = vector.shape_cast %0 : vector<2x8x32xf32> to vector<16x32xf32>
    %c0_2 = arith.constant 0 : index
    %c0_3 = arith.constant 0 : index
    %c0_4 = arith.constant 0 : index
    %2 = vector.load %arg5[%c0_2, %c0_3, %c0_4] : memref<2x8x32xf32, #tpu.memory_space<vmem>>, vector<2x8x32xf32>
    %3 = vector.shape_cast %2 : vector<2x8x32xf32> to vector<16x32xf32>
    %c0_5 = arith.constant 0 : index
    %c0_6 = arith.constant 0 : index
    %c0_7 = arith.constant 0 : index
    %4 = vector.load %arg3[%c0_5, %c0_6, %c0_7] : memref<2x16x32xf32, #tpu.memory_space<vmem>>, vector<2x16x32xf32>
    %5 = vector.shape_cast %4 : vector<2x16x32xf32> to vector<32x32xf32>
    %c0_8 = arith.constant 0 : index
    %c0_9 = arith.constant 0 : index
    %c0_10 = arith.constant 0 : index
    %6 = vector.load %arg4[%c0_8, %c0_9, %c0_10] : memref<2x16x32xf32, #tpu.memory_space<vmem>>, vector<2x16x32xf32>
    %7 = vector.shape_cast %6 : vector<2x16x32xf32> to vector<32x32xf32>
    %c0_11 = arith.constant 0 : index
    %c0_12 = arith.constant 0 : index
    %c0_13 = arith.constant 0 : index
    %8 = vector.load %arg2[%c0_11, %c0_12, %c0_13] : memref<2x16x32xf32, #tpu.memory_space<vmem>>, vector<2x16x32xf32>
    %9 = vector.shape_cast %8 : vector<2x16x32xf32> to vector<32x32xf32>
    %10 = arith.addf %1, %3 : vector<16x32xf32>
    %c0_14 = arith.constant 0 : index
    %c0_15 = arith.constant 0 : index
    %c0_16 = arith.constant 0 : index
    %11 = vector.load %arg6[%c0_14, %c0_15, %c0_16] : memref<3x32x96xf32, #tpu.memory_space<vmem>>, vector<1x32x64xf32>
    %12 = vector.shape_cast %11 : vector<1x32x64xf32> to vector<32x64xf32>
    %cst = arith.constant dense<0.000000e+00> : vector<16x64xf32>
    %13 = tpu.matmul %10, %12, %cst {dimension_numbers = #tpu.dot_dimension_numbers<[1], [0], [0], [1], [0, 0, 1, 1], [], []>} : vector<16x32xf32>, vector<32x64xf32>, vector<16x64xf32> -> vector<16x64xf32>
    %c0_17 = arith.constant 0 : index
    %c0_18 = arith.constant 0 : index
    %c0_19 = arith.constant 0 : index
    %14 = vector.load %arg7[%c0_17, %c0_18, %c0_19] : memref<3x1x96xf32, #tpu.memory_space<vmem>>, vector<1x1x64xf32>
    %15 = vector.shape_cast %14 : vector<1x1x64xf32> to vector<1x64xf32>
    %16 = vector.broadcast %15 : vector<1x64xf32> to vector<16x64xf32>
    %17 = arith.addf %13, %16 : vector<16x64xf32>
    %18 = vector.extract_strided_slice %17 {offsets = [0, 0], sizes = [16, 32], strides = [1, 1]} : vector<16x64xf32> to vector<16x32xf32>
    %19 = vector.extract_strided_slice %17 {offsets = [0, 32], sizes = [16, 32], strides = [1, 1]} : vector<16x64xf32> to vector<16x32xf32>
    %c0_20 = arith.constant 0 : index
    %c0_21 = arith.constant 0 : index
    %c64 = arith.constant 64 : index
    %20 = vector.load %arg6[%c0_20, %c0_21, %c64] : memref<3x32x96xf32, #tpu.memory_space<vmem>>, vector<1x32x32xf32>
    %21 = vector.shape_cast %20 : vector<1x32x32xf32> to vector<32x32xf32>
    %cst_22 = arith.constant dense<0.000000e+00> : vector<16x32xf32>
    %22 = tpu.matmul %1, %21, %cst_22 {dimension_numbers = #tpu.dot_dimension_numbers<[1], [0], [0], [1], [0, 0, 1, 1], [], []>} : vector<16x32xf32>, vector<32x32xf32>, vector<16x32xf32> -> vector<16x32xf32>
    %c0_23 = arith.constant 0 : index
    %c0_24 = arith.constant 0 : index
    %c64_25 = arith.constant 64 : index
    %23 = vector.load %arg7[%c0_23, %c0_24, %c64_25] : memref<3x1x96xf32, #tpu.memory_space<vmem>>, vector<1x1x32xf32>
    %24 = vector.shape_cast %23 : vector<1x1x32xf32> to vector<1x32xf32>
    %25 = vector.broadcast %24 : vector<1x32xf32> to vector<16x32xf32>
    %26 = arith.addf %22, %25 : vector<16x32xf32>
    %27 = vector.shape_cast %18 : vector<16x32xf32> to vector<2x8x32xf32>
    %28 = vector.shape_cast %19 : vector<16x32xf32> to vector<2x8x32xf32>
    %29 = vector.shape_cast %26 : vector<16x32xf32> to vector<2x8x32xf32>
    %30 = vector.extract_strided_slice %27 {offsets = [0, 0, 0], sizes = [2, 8, 8], strides = [1, 1, 1]} : vector<2x8x32xf32> to vector<2x8x8xf32>
    %cst_26 = arith.constant 0.353553385 : f32
    %31 = vector.broadcast %cst_26 : f32 to vector<2x8x8xf32>
    %32 = arith.mulf %30, %31 : vector<2x8x8xf32>
    %33 = vector.extract_strided_slice %28 {offsets = [0, 0, 0], sizes = [2, 8, 8], strides = [1, 1, 1]} : vector<2x8x32xf32> to vector<2x8x8xf32>
    %34 = vector.extract_strided_slice %29 {offsets = [0, 0, 0], sizes = [2, 8, 8], strides = [1, 1, 1]} : vector<2x8x32xf32> to vector<2x8x8xf32>
    "tpu.trace_start"() <{level = 10 : i32, message = "bqd,bkd->bqk"}> : () -> ()
    %cst_27 = arith.constant dense<0.000000e+00> : vector<2x8x8xf32>
    %35 = tpu.matmul %32, %33, %cst_27 {dimension_numbers = #tpu.dot_dimension_numbers<[2], [2], [1], [1], [0, 0, 0, 1, 1, 1], [0], [0]>} : vector<2x8x8xf32>, vector<2x8x8xf32>, vector<2x8x8xf32> -> vector<2x8x8xf32>
    "tpu.trace_stop"() : () -> ()
    %cst_28 = arith.constant dense<0xFF800000> : vector<2x8xf32>
    %36 = vector.multi_reduction <maximumf>, %35, %cst_28 [2] : vector<2x8x8xf32> to vector<2x8xf32>
    %37 = vector.shape_cast %36 : vector<2x8xf32> to vector<2x8x1xf32>
    %38 = vector.broadcast %37 : vector<2x8x1xf32> to vector<2x8x8xf32>
    %39 = arith.subf %35, %38 : vector<2x8x8xf32>
    %40 = math.exp %39 : vector<2x8x8xf32>
    %cst_29 = arith.constant dense<0.000000e+00> : vector<2x8xf32>
    %41 = vector.multi_reduction <add>, %40, %cst_29 [2] : vector<2x8x8xf32> to vector<2x8xf32>
    %42 = vector.shape_cast %41 : vector<2x8xf32> to vector<2x8x1xf32>
    %43 = tpu.reciprocal %42 {approx = true} : vector<2x8x1xf32> -> vector<2x8x1xf32>
    %44 = vector.broadcast %43 : vector<2x8x1xf32> to vector<2x8x8xf32>
    %45 = arith.mulf %40, %44 : vector<2x8x8xf32>
    "tpu.trace_start"() <{level = 10 : i32, message = "bqk,bkd->bqd"}> : () -> ()
    %cst_30 = arith.constant dense<0.000000e+00> : vector<2x8x8xf32>
    %46 = tpu.matmul %45, %34, %cst_30 {dimension_numbers = #tpu.dot_dimension_numbers<[2], [1], [1], [2], [0, 0, 0, 1, 1, 2], [0], [0]>} : vector<2x8x8xf32>, vector<2x8x8xf32>, vector<2x8x8xf32> -> vector<2x8x8xf32>
    "tpu.trace_stop"() : () -> ()
    %47 = vector.extract_strided_slice %27 {offsets = [0, 0, 8], sizes = [2, 8, 8], strides = [1, 1, 1]} : vector<2x8x32xf32> to vector<2x8x8xf32>
    %cst_31 = arith.constant 0.353553385 : f32
    %48 = vector.broadcast %cst_31 : f32 to vector<2x8x8xf32>
    %49 = arith.mulf %47, %48 : vector<2x8x8xf32>
    %50 = vector.extract_strided_slice %28 {offsets = [0, 0, 8], sizes = [2, 8, 8], strides = [1, 1, 1]} : vector<2x8x32xf32> to vector<2x8x8xf32>
    %51 = vector.extract_strided_slice %29 {offsets = [0, 0, 8], sizes = [2, 8, 8], strides = [1, 1, 1]} : vector<2x8x32xf32> to vector<2x8x8xf32>
    "tpu.trace_start"() <{level = 10 : i32, message = "bqd,bkd->bqk"}> : () -> ()
    %cst_32 = arith.constant dense<0.000000e+00> : vector<2x8x8xf32>
    %52 = tpu.matmul %49, %50, %cst_32 {dimension_numbers = #tpu.dot_dimension_numbers<[2], [2], [1], [1], [0, 0, 0, 1, 1, 1], [0], [0]>} : vector<2x8x8xf32>, vector<2x8x8xf32>, vector<2x8x8xf32> -> vector<2x8x8xf32>
    "tpu.trace_stop"() : () -> ()
    %cst_33 = arith.constant dense<0xFF800000> : vector<2x8xf32>
    %53 = vector.multi_reduction <maximumf>, %52, %cst_33 [2] : vector<2x8x8xf32> to vector<2x8xf32>
    %54 = vector.shape_cast %53 : vector<2x8xf32> to vector<2x8x1xf32>
    %55 = vector.broadcast %54 : vector<2x8x1xf32> to vector<2x8x8xf32>
    %56 = arith.subf %52, %55 : vector<2x8x8xf32>
    %57 = math.exp %56 : vector<2x8x8xf32>
    %cst_34 = arith.constant dense<0.000000e+00> : vector<2x8xf32>
    %58 = vector.multi_reduction <add>, %57, %cst_34 [2] : vector<2x8x8xf32> to vector<2x8xf32>
    %59 = vector.shape_cast %58 : vector<2x8xf32> to vector<2x8x1xf32>
    %60 = tpu.reciprocal %59 {approx = true} : vector<2x8x1xf32> -> vector<2x8x1xf32>
    %61 = vector.broadcast %60 : vector<2x8x1xf32> to vector<2x8x8xf32>
    %62 = arith.mulf %57, %61 : vector<2x8x8xf32>
    "tpu.trace_start"() <{level = 10 : i32, message = "bqk,bkd->bqd"}> : () -> ()
    %cst_35 = arith.constant dense<0.000000e+00> : vector<2x8x8xf32>
    %63 = tpu.matmul %62, %51, %cst_35 {dimension_numbers = #tpu.dot_dimension_numbers<[2], [1], [1], [2], [0, 0, 0, 1, 1, 2], [0], [0]>} : vector<2x8x8xf32>, vector<2x8x8xf32>, vector<2x8x8xf32> -> vector<2x8x8xf32>
    "tpu.trace_stop"() : () -> ()
    %64 = vector.extract_strided_slice %27 {offsets = [0, 0, 16], sizes = [2, 8, 8], strides = [1, 1, 1]} : vector<2x8x32xf32> to vector<2x8x8xf32>
    %cst_36 = arith.constant 0.353553385 : f32
    %65 = vector.broadcast %cst_36 : f32 to vector<2x8x8xf32>
    %66 = arith.mulf %64, %65 : vector<2x8x8xf32>
    %67 = vector.extract_strided_slice %28 {offsets = [0, 0, 16], sizes = [2, 8, 8], strides = [1, 1, 1]} : vector<2x8x32xf32> to vector<2x8x8xf32>
    %68 = vector.extract_strided_slice %29 {offsets = [0, 0, 16], sizes = [2, 8, 8], strides = [1, 1, 1]} : vector<2x8x32xf32> to vector<2x8x8xf32>
    "tpu.trace_start"() <{level = 10 : i32, message = "bqd,bkd->bqk"}> : () -> ()
    %cst_37 = arith.constant dense<0.000000e+00> : vector<2x8x8xf32>
    %69 = tpu.matmul %66, %67, %cst_37 {dimension_numbers = #tpu.dot_dimension_numbers<[2], [2], [1], [1], [0, 0, 0, 1, 1, 1], [0], [0]>} : vector<2x8x8xf32>, vector<2x8x8xf32>, vector<2x8x8xf32> -> vector<2x8x8xf32>
    "tpu.trace_stop"() : () -> ()
    %cst_38 = arith.constant dense<0xFF800000> : vector<2x8xf32>
    %70 = vector.multi_reduction <maximumf>, %69, %cst_38 [2] : vector<2x8x8xf32> to vector<2x8xf32>
    %71 = vector.shape_cast %70 : vector<2x8xf32> to vector<2x8x1xf32>
    %72 = vector.broadcast %71 : vector<2x8x1xf32> to vector<2x8x8xf32>
    %73 = arith.subf %69, %72 : vector<2x8x8xf32>
    %74 = math.exp %73 : vector<2x8x8xf32>
    %cst_39 = arith.constant dense<0.000000e+00> : vector<2x8xf32>
    %75 = vector.multi_reduction <add>, %74, %cst_39 [2] : vector<2x8x8xf32> to vector<2x8xf32>
    %76 = vector.shape_cast %75 : vector<2x8xf32> to vector<2x8x1xf32>
    %77 = tpu.reciprocal %76 {approx = true} : vector<2x8x1xf32> -> vector<2x8x1xf32>
    %78 = vector.broadcast %77 : vector<2x8x1xf32> to vector<2x8x8xf32>
    %79 = arith.mulf %74, %78 : vector<2x8x8xf32>
    "tpu.trace_start"() <{level = 10 : i32, message = "bqk,bkd->bqd"}> : () -> ()
    %cst_40 = arith.constant dense<0.000000e+00> : vector<2x8x8xf32>
    %80 = tpu.matmul %79, %68, %cst_40 {dimension_numbers = #tpu.dot_dimension_numbers<[2], [1], [1], [2], [0, 0, 0, 1, 1, 2], [0], [0]>} : vector<2x8x8xf32>, vector<2x8x8xf32>, vector<2x8x8xf32> -> vector<2x8x8xf32>
    "tpu.trace_stop"() : () -> ()
    %81 = vector.extract_strided_slice %27 {offsets = [0, 0, 24], sizes = [2, 8, 8], strides = [1, 1, 1]} : vector<2x8x32xf32> to vector<2x8x8xf32>
    %cst_41 = arith.constant 0.353553385 : f32
    %82 = vector.broadcast %cst_41 : f32 to vector<2x8x8xf32>
    %83 = arith.mulf %81, %82 : vector<2x8x8xf32>
    %84 = vector.extract_strided_slice %28 {offsets = [0, 0, 24], sizes = [2, 8, 8], strides = [1, 1, 1]} : vector<2x8x32xf32> to vector<2x8x8xf32>
    %85 = vector.extract_strided_slice %29 {offsets = [0, 0, 24], sizes = [2, 8, 8], strides = [1, 1, 1]} : vector<2x8x32xf32> to vector<2x8x8xf32>
    "tpu.trace_start"() <{level = 10 : i32, message = "bqd,bkd->bqk"}> : () -> ()
    %cst_42 = arith.constant dense<0.000000e+00> : vector<2x8x8xf32>
    %86 = tpu.matmul %83, %84, %cst_42 {dimension_numbers = #tpu.dot_dimension_numbers<[2], [2], [1], [1], [0, 0, 0, 1, 1, 1], [0], [0]>} : vector<2x8x8xf32>, vector<2x8x8xf32>, vector<2x8x8xf32> -> vector<2x8x8xf32>
    "tpu.trace_stop"() : () -> ()
    %cst_43 = arith.constant dense<0xFF800000> : vector<2x8xf32>
    %87 = vector.multi_reduction <maximumf>, %86, %cst_43 [2] : vector<2x8x8xf32> to vector<2x8xf32>
    %88 = vector.shape_cast %87 : vector<2x8xf32> to vector<2x8x1xf32>
    %89 = vector.broadcast %88 : vector<2x8x1xf32> to vector<2x8x8xf32>
    %90 = arith.subf %86, %89 : vector<2x8x8xf32>
    %91 = math.exp %90 : vector<2x8x8xf32>
    %cst_44 = arith.constant dense<0.000000e+00> : vector<2x8xf32>
    %92 = vector.multi_reduction <add>, %91, %cst_44 [2] : vector<2x8x8xf32> to vector<2x8xf32>
    %93 = vector.shape_cast %92 : vector<2x8xf32> to vector<2x8x1xf32>
    %94 = tpu.reciprocal %93 {approx = true} : vector<2x8x1xf32> -> vector<2x8x1xf32>
    %95 = vector.broadcast %94 : vector<2x8x1xf32> to vector<2x8x8xf32>
    %96 = arith.mulf %91, %95 : vector<2x8x8xf32>
    "tpu.trace_start"() <{level = 10 : i32, message = "bqk,bkd->bqd"}> : () -> ()
    %cst_45 = arith.constant dense<0.000000e+00> : vector<2x8x8xf32>
    %97 = tpu.matmul %96, %85, %cst_45 {dimension_numbers = #tpu.dot_dimension_numbers<[2], [1], [1], [2], [0, 0, 0, 1, 1, 2], [0], [0]>} : vector<2x8x8xf32>, vector<2x8x8xf32>, vector<2x8x8xf32> -> vector<2x8x8xf32>
    "tpu.trace_stop"() : () -> ()
    %98 = tpu.concatenate %46, %63, %80, %97 in 2 : vector<2x8x8xf32>, vector<2x8x8xf32>, vector<2x8x8xf32>, vector<2x8x8xf32> -> vector<2x8x32xf32>
    %99 = vector.shape_cast %98 : vector<2x8x32xf32> to vector<16x32xf32>
    %c0_46 = arith.constant 0 : index
    %c0_47 = arith.constant 0 : index
    %c0_48 = arith.constant 0 : index
    %100 = vector.load %arg8[%c0_46, %c0_47, %c0_48] : memref<3x32x32xf32, #tpu.memory_space<vmem>>, vector<1x32x32xf32>
    %101 = vector.shape_cast %100 : vector<1x32x32xf32> to vector<32x32xf32>
    %cst_49 = arith.constant dense<0.000000e+00> : vector<16x32xf32>
    %102 = tpu.matmul %99, %101, %cst_49 {dimension_numbers = #tpu.dot_dimension_numbers<[1], [0], [0], [1], [0, 0, 1, 1], [], []>} : vector<16x32xf32>, vector<32x32xf32>, vector<16x32xf32> -> vector<16x32xf32>
    %c0_50 = arith.constant 0 : index
    %c0_51 = arith.constant 0 : index
    %c0_52 = arith.constant 0 : index
    %103 = vector.load %arg9[%c0_50, %c0_51, %c0_52] : memref<3x1x32xf32, #tpu.memory_space<vmem>>, vector<1x1x32xf32>
    %104 = vector.shape_cast %103 : vector<1x1x32xf32> to vector<1x32xf32>
    %105 = vector.broadcast %104 : vector<1x32xf32> to vector<16x32xf32>
    %106 = arith.addf %102, %105 : vector<16x32xf32>
    %107 = arith.addf %106, %1 : vector<16x32xf32>
    %cst_53 = arith.constant dense<0.000000e+00> : vector<16xf32>
    %108 = vector.multi_reduction <add>, %107, %cst_53 [1] : vector<16x32xf32> to vector<16xf32>
    %109 = vector.shape_cast %108 : vector<16xf32> to vector<16x1xf32>
    %cst_54 = arith.constant 3.200000e+01 : f32
    %110 = vector.broadcast %cst_54 : f32 to vector<16x1xf32>
    %111 = arith.divf %109, %110 : vector<16x1xf32>
    %112 = vector.broadcast %111 : vector<16x1xf32> to vector<16x32xf32>
    %113 = arith.subf %107, %112 : vector<16x32xf32>
    %114 = arith.mulf %113, %113 : vector<16x32xf32>
    %cst_55 = arith.constant dense<0.000000e+00> : vector<16xf32>
    %115 = vector.multi_reduction <add>, %114, %cst_55 [1] : vector<16x32xf32> to vector<16xf32>
    %116 = vector.shape_cast %115 : vector<16xf32> to vector<16x1xf32>
    %cst_56 = arith.constant 3.200000e+01 : f32
    %117 = vector.broadcast %cst_56 : f32 to vector<16x1xf32>
    %118 = arith.divf %116, %117 : vector<16x1xf32>
    %119 = vector.broadcast %111 : vector<16x1xf32> to vector<16x32xf32>
    %120 = arith.subf %107, %119 : vector<16x32xf32>
    %cst_57 = arith.constant 9.99999974E-6 : f32
    %121 = vector.broadcast %cst_57 : f32 to vector<16x1xf32>
    %122 = arith.addf %118, %121 : vector<16x1xf32>
    %123 = math.rsqrt %122 : vector<16x1xf32>
    %124 = vector.broadcast %123 : vector<16x1xf32> to vector<16x32xf32>
    %125 = arith.mulf %120, %124 : vector<16x32xf32>
    %c0_58 = arith.constant 0 : index
    %c0_59 = arith.constant 0 : index
    %c0_60 = arith.constant 0 : index
    %126 = vector.load %arg14[%c0_58, %c0_59, %c0_60] : memref<6x1x32xf32, #tpu.memory_space<vmem>>, vector<1x1x32xf32>
    %127 = vector.shape_cast %126 : vector<1x1x32xf32> to vector<1x32xf32>
    %128 = vector.broadcast %127 : vector<1x32xf32> to vector<16x32xf32>
    %129 = arith.mulf %125, %128 : vector<16x32xf32>
    %c1 = arith.constant 1 : index
    %c0_61 = arith.constant 0 : index
    %c0_62 = arith.constant 0 : index
    %130 = vector.load %arg14[%c1, %c0_61, %c0_62] : memref<6x1x32xf32, #tpu.memory_space<vmem>>, vector<1x1x32xf32>
    %131 = vector.shape_cast %130 : vector<1x1x32xf32> to vector<1x32xf32>
    %132 = vector.broadcast %131 : vector<1x32xf32> to vector<16x32xf32>
    %133 = arith.addf %129, %132 : vector<16x32xf32>
    %134 = arith.addf %133, %3 : vector<16x32xf32>
    %135 = arith.addf %5, %7 : vector<32x32xf32>
    %c1_63 = arith.constant 1 : index
    %c0_64 = arith.constant 0 : index
    %c0_65 = arith.constant 0 : index
    %136 = vector.load %arg6[%c1_63, %c0_64, %c0_65] : memref<3x32x96xf32, #tpu.memory_space<vmem>>, vector<1x32x32xf32>
    %137 = vector.shape_cast %136 : vector<1x32x32xf32> to vector<32x32xf32>
    %cst_66 = arith.constant dense<0.000000e+00> : vector<16x32xf32>
    %138 = tpu.matmul %134, %137, %cst_66 {dimension_numbers = #tpu.dot_dimension_numbers<[1], [0], [0], [1], [0, 0, 1, 1], [], []>} : vector<16x32xf32>, vector<32x32xf32>, vector<16x32xf32> -> vector<16x32xf32>
    %c1_67 = arith.constant 1 : index
    %c0_68 = arith.constant 0 : index
    %c0_69 = arith.constant 0 : index
    %139 = vector.load %arg7[%c1_67, %c0_68, %c0_69] : memref<3x1x96xf32, #tpu.memory_space<vmem>>, vector<1x1x32xf32>
    %140 = vector.shape_cast %139 : vector<1x1x32xf32> to vector<1x32xf32>
    %141 = vector.broadcast %140 : vector<1x32xf32> to vector<16x32xf32>
    %142 = arith.addf %138, %141 : vector<16x32xf32>
    %c1_70 = arith.constant 1 : index
    %c0_71 = arith.constant 0 : index
    %c32 = arith.constant 32 : index
    %143 = vector.load %arg6[%c1_70, %c0_71, %c32] : memref<3x32x96xf32, #tpu.memory_space<vmem>>, vector<1x32x32xf32>
    %144 = vector.shape_cast %143 : vector<1x32x32xf32> to vector<32x32xf32>
    %cst_72 = arith.constant dense<0.000000e+00> : vector<32x32xf32>
    %145 = tpu.matmul %135, %144, %cst_72 {dimension_numbers = #tpu.dot_dimension_numbers<[1], [0], [0], [1], [0, 0, 1, 1], [], []>} : vector<32x32xf32>, vector<32x32xf32>, vector<32x32xf32> -> vector<32x32xf32>
    %c1_73 = arith.constant 1 : index
    %c0_74 = arith.constant 0 : index
    %c32_75 = arith.constant 32 : index
    %146 = vector.load %arg7[%c1_73, %c0_74, %c32_75] : memref<3x1x96xf32, #tpu.memory_space<vmem>>, vector<1x1x32xf32>
    %147 = vector.shape_cast %146 : vector<1x1x32xf32> to vector<1x32xf32>
    %148 = vector.broadcast %147 : vector<1x32xf32> to vector<32x32xf32>
    %149 = arith.addf %145, %148 : vector<32x32xf32>
    %c1_76 = arith.constant 1 : index
    %c0_77 = arith.constant 0 : index
    %c64_78 = arith.constant 64 : index
    %150 = vector.load %arg6[%c1_76, %c0_77, %c64_78] : memref<3x32x96xf32, #tpu.memory_space<vmem>>, vector<1x32x32xf32>
    %151 = vector.shape_cast %150 : vector<1x32x32xf32> to vector<32x32xf32>
    %cst_79 = arith.constant dense<0.000000e+00> : vector<32x32xf32>
    %152 = tpu.matmul %5, %151, %cst_79 {dimension_numbers = #tpu.dot_dimension_numbers<[1], [0], [0], [1], [0, 0, 1, 1], [], []>} : vector<32x32xf32>, vector<32x32xf32>, vector<32x32xf32> -> vector<32x32xf32>
    %c1_80 = arith.constant 1 : index
    %c0_81 = arith.constant 0 : index
    %c64_82 = arith.constant 64 : index
    %153 = vector.load %arg7[%c1_80, %c0_81, %c64_82] : memref<3x1x96xf32, #tpu.memory_space<vmem>>, vector<1x1x32xf32>
    %154 = vector.shape_cast %153 : vector<1x1x32xf32> to vector<1x32xf32>
    %155 = vector.broadcast %154 : vector<1x32xf32> to vector<32x32xf32>
    %156 = arith.addf %152, %155 : vector<32x32xf32>
    %157 = vector.shape_cast %142 : vector<16x32xf32> to vector<2x8x32xf32>
    %158 = vector.shape_cast %149 : vector<32x32xf32> to vector<2x16x32xf32>
    %159 = vector.shape_cast %156 : vector<32x32xf32> to vector<2x16x32xf32>
    %160 = vector.extract_strided_slice %157 {offsets = [0, 0, 0], sizes = [2, 8, 8], strides = [1, 1, 1]} : vector<2x8x32xf32> to vector<2x8x8xf32>
    %cst_83 = arith.constant 0.353553385 : f32
    %161 = vector.broadcast %cst_83 : f32 to vector<2x8x8xf32>
    %162 = arith.mulf %160, %161 : vector<2x8x8xf32>
    %163 = vector.extract_strided_slice %158 {offsets = [0, 0, 0], sizes = [2, 16, 8], strides = [1, 1, 1]} : vector<2x16x32xf32> to vector<2x16x8xf32>
    %164 = vector.extract_strided_slice %159 {offsets = [0, 0, 0], sizes = [2, 16, 8], strides = [1, 1, 1]} : vector<2x16x32xf32> to vector<2x16x8xf32>
    "tpu.trace_start"() <{level = 10 : i32, message = "bqd,bkd->bqk"}> : () -> ()
    %cst_84 = arith.constant dense<0.000000e+00> : vector<2x8x16xf32>
    %165 = tpu.matmul %162, %163, %cst_84 {dimension_numbers = #tpu.dot_dimension_numbers<[2], [2], [1], [1], [0, 0, 0, 1, 1, 1], [0], [0]>} : vector<2x8x8xf32>, vector<2x16x8xf32>, vector<2x8x16xf32> -> vector<2x8x16xf32>
    "tpu.trace_stop"() : () -> ()
    %cst_85 = arith.constant dense<0xFF800000> : vector<2x8xf32>
    %166 = vector.multi_reduction <maximumf>, %165, %cst_85 [2] : vector<2x8x16xf32> to vector<2x8xf32>
    %167 = vector.shape_cast %166 : vector<2x8xf32> to vector<2x8x1xf32>
    %168 = vector.broadcast %167 : vector<2x8x1xf32> to vector<2x8x16xf32>
    %169 = arith.subf %165, %168 : vector<2x8x16xf32>
    %170 = math.exp %169 : vector<2x8x16xf32>
    %cst_86 = arith.constant dense<0.000000e+00> : vector<2x8xf32>
    %171 = vector.multi_reduction <add>, %170, %cst_86 [2] : vector<2x8x16xf32> to vector<2x8xf32>
    %172 = vector.shape_cast %171 : vector<2x8xf32> to vector<2x8x1xf32>
    %173 = tpu.reciprocal %172 {approx = true} : vector<2x8x1xf32> -> vector<2x8x1xf32>
    %174 = vector.broadcast %173 : vector<2x8x1xf32> to vector<2x8x16xf32>
    %175 = arith.mulf %170, %174 : vector<2x8x16xf32>
    "tpu.trace_start"() <{level = 10 : i32, message = "bqk,bkd->bqd"}> : () -> ()
    %cst_87 = arith.constant dense<0.000000e+00> : vector<2x8x8xf32>
    %176 = tpu.matmul %175, %164, %cst_87 {dimension_numbers = #tpu.dot_dimension_numbers<[2], [1], [1], [2], [0, 0, 0, 1, 1, 2], [0], [0]>} : vector<2x8x16xf32>, vector<2x16x8xf32>, vector<2x8x8xf32> -> vector<2x8x8xf32>
    "tpu.trace_stop"() : () -> ()
    %177 = vector.extract_strided_slice %157 {offsets = [0, 0, 8], sizes = [2, 8, 8], strides = [1, 1, 1]} : vector<2x8x32xf32> to vector<2x8x8xf32>
    %cst_88 = arith.constant 0.353553385 : f32
    %178 = vector.broadcast %cst_88 : f32 to vector<2x8x8xf32>
    %179 = arith.mulf %177, %178 : vector<2x8x8xf32>
    %180 = vector.extract_strided_slice %158 {offsets = [0, 0, 8], sizes = [2, 16, 8], strides = [1, 1, 1]} : vector<2x16x32xf32> to vector<2x16x8xf32>
    %181 = vector.extract_strided_slice %159 {offsets = [0, 0, 8], sizes = [2, 16, 8], strides = [1, 1, 1]} : vector<2x16x32xf32> to vector<2x16x8xf32>
    "tpu.trace_start"() <{level = 10 : i32, message = "bqd,bkd->bqk"}> : () -> ()
    %cst_89 = arith.constant dense<0.000000e+00> : vector<2x8x16xf32>
    %182 = tpu.matmul %179, %180, %cst_89 {dimension_numbers = #tpu.dot_dimension_numbers<[2], [2], [1], [1], [0, 0, 0, 1, 1, 1], [0], [0]>} : vector<2x8x8xf32>, vector<2x16x8xf32>, vector<2x8x16xf32> -> vector<2x8x16xf32>
    "tpu.trace_stop"() : () -> ()
    %cst_90 = arith.constant dense<0xFF800000> : vector<2x8xf32>
    %183 = vector.multi_reduction <maximumf>, %182, %cst_90 [2] : vector<2x8x16xf32> to vector<2x8xf32>
    %184 = vector.shape_cast %183 : vector<2x8xf32> to vector<2x8x1xf32>
    %185 = vector.broadcast %184 : vector<2x8x1xf32> to vector<2x8x16xf32>
    %186 = arith.subf %182, %185 : vector<2x8x16xf32>
    %187 = math.exp %186 : vector<2x8x16xf32>
    %cst_91 = arith.constant dense<0.000000e+00> : vector<2x8xf32>
    %188 = vector.multi_reduction <add>, %187, %cst_91 [2] : vector<2x8x16xf32> to vector<2x8xf32>
    %189 = vector.shape_cast %188 : vector<2x8xf32> to vector<2x8x1xf32>
    %190 = tpu.reciprocal %189 {approx = true} : vector<2x8x1xf32> -> vector<2x8x1xf32>
    %191 = vector.broadcast %190 : vector<2x8x1xf32> to vector<2x8x16xf32>
    %192 = arith.mulf %187, %191 : vector<2x8x16xf32>
    "tpu.trace_start"() <{level = 10 : i32, message = "bqk,bkd->bqd"}> : () -> ()
    %cst_92 = arith.constant dense<0.000000e+00> : vector<2x8x8xf32>
    %193 = tpu.matmul %192, %181, %cst_92 {dimension_numbers = #tpu.dot_dimension_numbers<[2], [1], [1], [2], [0, 0, 0, 1, 1, 2], [0], [0]>} : vector<2x8x16xf32>, vector<2x16x8xf32>, vector<2x8x8xf32> -> vector<2x8x8xf32>
    "tpu.trace_stop"() : () -> ()
    %194 = vector.extract_strided_slice %157 {offsets = [0, 0, 16], sizes = [2, 8, 8], strides = [1, 1, 1]} : vector<2x8x32xf32> to vector<2x8x8xf32>
    %cst_93 = arith.constant 0.353553385 : f32
    %195 = vector.broadcast %cst_93 : f32 to vector<2x8x8xf32>
    %196 = arith.mulf %194, %195 : vector<2x8x8xf32>
    %197 = vector.extract_strided_slice %158 {offsets = [0, 0, 16], sizes = [2, 16, 8], strides = [1, 1, 1]} : vector<2x16x32xf32> to vector<2x16x8xf32>
    %198 = vector.extract_strided_slice %159 {offsets = [0, 0, 16], sizes = [2, 16, 8], strides = [1, 1, 1]} : vector<2x16x32xf32> to vector<2x16x8xf32>
    "tpu.trace_start"() <{level = 10 : i32, message = "bqd,bkd->bqk"}> : () -> ()
    %cst_94 = arith.constant dense<0.000000e+00> : vector<2x8x16xf32>
    %199 = tpu.matmul %196, %197, %cst_94 {dimension_numbers = #tpu.dot_dimension_numbers<[2], [2], [1], [1], [0, 0, 0, 1, 1, 1], [0], [0]>} : vector<2x8x8xf32>, vector<2x16x8xf32>, vector<2x8x16xf32> -> vector<2x8x16xf32>
    "tpu.trace_stop"() : () -> ()
    %cst_95 = arith.constant dense<0xFF800000> : vector<2x8xf32>
    %200 = vector.multi_reduction <maximumf>, %199, %cst_95 [2] : vector<2x8x16xf32> to vector<2x8xf32>
    %201 = vector.shape_cast %200 : vector<2x8xf32> to vector<2x8x1xf32>
    %202 = vector.broadcast %201 : vector<2x8x1xf32> to vector<2x8x16xf32>
    %203 = arith.subf %199, %202 : vector<2x8x16xf32>
    %204 = math.exp %203 : vector<2x8x16xf32>
    %cst_96 = arith.constant dense<0.000000e+00> : vector<2x8xf32>
    %205 = vector.multi_reduction <add>, %204, %cst_96 [2] : vector<2x8x16xf32> to vector<2x8xf32>
    %206 = vector.shape_cast %205 : vector<2x8xf32> to vector<2x8x1xf32>
    %207 = tpu.reciprocal %206 {approx = true} : vector<2x8x1xf32> -> vector<2x8x1xf32>
    %208 = vector.broadcast %207 : vector<2x8x1xf32> to vector<2x8x16xf32>
    %209 = arith.mulf %204, %208 : vector<2x8x16xf32>
    "tpu.trace_start"() <{level = 10 : i32, message = "bqk,bkd->bqd"}> : () -> ()
    %cst_97 = arith.constant dense<0.000000e+00> : vector<2x8x8xf32>
    %210 = tpu.matmul %209, %198, %cst_97 {dimension_numbers = #tpu.dot_dimension_numbers<[2], [1], [1], [2], [0, 0, 0, 1, 1, 2], [0], [0]>} : vector<2x8x16xf32>, vector<2x16x8xf32>, vector<2x8x8xf32> -> vector<2x8x8xf32>
    "tpu.trace_stop"() : () -> ()
    %211 = vector.extract_strided_slice %157 {offsets = [0, 0, 24], sizes = [2, 8, 8], strides = [1, 1, 1]} : vector<2x8x32xf32> to vector<2x8x8xf32>
    %cst_98 = arith.constant 0.353553385 : f32
    %212 = vector.broadcast %cst_98 : f32 to vector<2x8x8xf32>
    %213 = arith.mulf %211, %212 : vector<2x8x8xf32>
    %214 = vector.extract_strided_slice %158 {offsets = [0, 0, 24], sizes = [2, 16, 8], strides = [1, 1, 1]} : vector<2x16x32xf32> to vector<2x16x8xf32>
    %215 = vector.extract_strided_slice %159 {offsets = [0, 0, 24], sizes = [2, 16, 8], strides = [1, 1, 1]} : vector<2x16x32xf32> to vector<2x16x8xf32>
    "tpu.trace_start"() <{level = 10 : i32, message = "bqd,bkd->bqk"}> : () -> ()
    %cst_99 = arith.constant dense<0.000000e+00> : vector<2x8x16xf32>
    %216 = tpu.matmul %213, %214, %cst_99 {dimension_numbers = #tpu.dot_dimension_numbers<[2], [2], [1], [1], [0, 0, 0, 1, 1, 1], [0], [0]>} : vector<2x8x8xf32>, vector<2x16x8xf32>, vector<2x8x16xf32> -> vector<2x8x16xf32>
    "tpu.trace_stop"() : () -> ()
    %cst_100 = arith.constant dense<0xFF800000> : vector<2x8xf32>
    %217 = vector.multi_reduction <maximumf>, %216, %cst_100 [2] : vector<2x8x16xf32> to vector<2x8xf32>
    %218 = vector.shape_cast %217 : vector<2x8xf32> to vector<2x8x1xf32>
    %219 = vector.broadcast %218 : vector<2x8x1xf32> to vector<2x8x16xf32>
    %220 = arith.subf %216, %219 : vector<2x8x16xf32>
    %221 = math.exp %220 : vector<2x8x16xf32>
    %cst_101 = arith.constant dense<0.000000e+00> : vector<2x8xf32>
    %222 = vector.multi_reduction <add>, %221, %cst_101 [2] : vector<2x8x16xf32> to vector<2x8xf32>
    %223 = vector.shape_cast %222 : vector<2x8xf32> to vector<2x8x1xf32>
    %224 = tpu.reciprocal %223 {approx = true} : vector<2x8x1xf32> -> vector<2x8x1xf32>
    %225 = vector.broadcast %224 : vector<2x8x1xf32> to vector<2x8x16xf32>
    %226 = arith.mulf %221, %225 : vector<2x8x16xf32>
    "tpu.trace_start"() <{level = 10 : i32, message = "bqk,bkd->bqd"}> : () -> ()
    %cst_102 = arith.constant dense<0.000000e+00> : vector<2x8x8xf32>
    %227 = tpu.matmul %226, %215, %cst_102 {dimension_numbers = #tpu.dot_dimension_numbers<[2], [1], [1], [2], [0, 0, 0, 1, 1, 2], [0], [0]>} : vector<2x8x16xf32>, vector<2x16x8xf32>, vector<2x8x8xf32> -> vector<2x8x8xf32>
    "tpu.trace_stop"() : () -> ()
    %228 = tpu.concatenate %176, %193, %210, %227 in 2 : vector<2x8x8xf32>, vector<2x8x8xf32>, vector<2x8x8xf32>, vector<2x8x8xf32> -> vector<2x8x32xf32>
    %229 = vector.shape_cast %228 : vector<2x8x32xf32> to vector<16x32xf32>
    %c1_103 = arith.constant 1 : index
    %c0_104 = arith.constant 0 : index
    %c0_105 = arith.constant 0 : index
    %230 = vector.load %arg8[%c1_103, %c0_104, %c0_105] : memref<3x32x32xf32, #tpu.memory_space<vmem>>, vector<1x32x32xf32>
    %231 = vector.shape_cast %230 : vector<1x32x32xf32> to vector<32x32xf32>
    %cst_106 = arith.constant dense<0.000000e+00> : vector<16x32xf32>
    %232 = tpu.matmul %229, %231, %cst_106 {dimension_numbers = #tpu.dot_dimension_numbers<[1], [0], [0], [1], [0, 0, 1, 1], [], []>} : vector<16x32xf32>, vector<32x32xf32>, vector<16x32xf32> -> vector<16x32xf32>
    %c1_107 = arith.constant 1 : index
    %c0_108 = arith.constant 0 : index
    %c0_109 = arith.constant 0 : index
    %233 = vector.load %arg9[%c1_107, %c0_108, %c0_109] : memref<3x1x32xf32, #tpu.memory_space<vmem>>, vector<1x1x32xf32>
    %234 = vector.shape_cast %233 : vector<1x1x32xf32> to vector<1x32xf32>
    %235 = vector.broadcast %234 : vector<1x32xf32> to vector<16x32xf32>
    %236 = arith.addf %232, %235 : vector<16x32xf32>
    %237 = arith.addf %236, %133 : vector<16x32xf32>
    %cst_110 = arith.constant dense<0.000000e+00> : vector<16xf32>
    %238 = vector.multi_reduction <add>, %237, %cst_110 [1] : vector<16x32xf32> to vector<16xf32>
    %239 = vector.shape_cast %238 : vector<16xf32> to vector<16x1xf32>
    %cst_111 = arith.constant 3.200000e+01 : f32
    %240 = vector.broadcast %cst_111 : f32 to vector<16x1xf32>
    %241 = arith.divf %239, %240 : vector<16x1xf32>
    %242 = vector.broadcast %241 : vector<16x1xf32> to vector<16x32xf32>
    %243 = arith.subf %237, %242 : vector<16x32xf32>
    %244 = arith.mulf %243, %243 : vector<16x32xf32>
    %cst_112 = arith.constant dense<0.000000e+00> : vector<16xf32>
    %245 = vector.multi_reduction <add>, %244, %cst_112 [1] : vector<16x32xf32> to vector<16xf32>
    %246 = vector.shape_cast %245 : vector<16xf32> to vector<16x1xf32>
    %cst_113 = arith.constant 3.200000e+01 : f32
    %247 = vector.broadcast %cst_113 : f32 to vector<16x1xf32>
    %248 = arith.divf %246, %247 : vector<16x1xf32>
    %249 = vector.broadcast %241 : vector<16x1xf32> to vector<16x32xf32>
    %250 = arith.subf %237, %249 : vector<16x32xf32>
    %cst_114 = arith.constant 9.99999974E-6 : f32
    %251 = vector.broadcast %cst_114 : f32 to vector<16x1xf32>
    %252 = arith.addf %248, %251 : vector<16x1xf32>
    %253 = math.rsqrt %252 : vector<16x1xf32>
    %254 = vector.broadcast %253 : vector<16x1xf32> to vector<16x32xf32>
    %255 = arith.mulf %250, %254 : vector<16x32xf32>
    %c2 = arith.constant 2 : index
    %c0_115 = arith.constant 0 : index
    %c0_116 = arith.constant 0 : index
    %256 = vector.load %arg14[%c2, %c0_115, %c0_116] : memref<6x1x32xf32, #tpu.memory_space<vmem>>, vector<1x1x32xf32>
    %257 = vector.shape_cast %256 : vector<1x1x32xf32> to vector<1x32xf32>
    %258 = vector.broadcast %257 : vector<1x32xf32> to vector<16x32xf32>
    %259 = arith.mulf %255, %258 : vector<16x32xf32>
    %c3 = arith.constant 3 : index
    %c0_117 = arith.constant 0 : index
    %c0_118 = arith.constant 0 : index
    %260 = vector.load %arg14[%c3, %c0_117, %c0_118] : memref<6x1x32xf32, #tpu.memory_space<vmem>>, vector<1x1x32xf32>
    %261 = vector.shape_cast %260 : vector<1x1x32xf32> to vector<1x32xf32>
    %262 = vector.broadcast %261 : vector<1x32xf32> to vector<16x32xf32>
    %263 = arith.addf %259, %262 : vector<16x32xf32>
    %264 = arith.addf %263, %3 : vector<16x32xf32>
    %265 = arith.addf %9, %7 : vector<32x32xf32>
    %c2_119 = arith.constant 2 : index
    %c0_120 = arith.constant 0 : index
    %c0_121 = arith.constant 0 : index
    %266 = vector.load %arg6[%c2_119, %c0_120, %c0_121] : memref<3x32x96xf32, #tpu.memory_space<vmem>>, vector<1x32x32xf32>
    %267 = vector.shape_cast %266 : vector<1x32x32xf32> to vector<32x32xf32>
    %cst_122 = arith.constant dense<0.000000e+00> : vector<16x32xf32>
    %268 = tpu.matmul %264, %267, %cst_122 {dimension_numbers = #tpu.dot_dimension_numbers<[1], [0], [0], [1], [0, 0, 1, 1], [], []>} : vector<16x32xf32>, vector<32x32xf32>, vector<16x32xf32> -> vector<16x32xf32>
    %c2_123 = arith.constant 2 : index
    %c0_124 = arith.constant 0 : index
    %c0_125 = arith.constant 0 : index
    %269 = vector.load %arg7[%c2_123, %c0_124, %c0_125] : memref<3x1x96xf32, #tpu.memory_space<vmem>>, vector<1x1x32xf32>
    %270 = vector.shape_cast %269 : vector<1x1x32xf32> to vector<1x32xf32>
    %271 = vector.broadcast %270 : vector<1x32xf32> to vector<16x32xf32>
    %272 = arith.addf %268, %271 : vector<16x32xf32>
    %c2_126 = arith.constant 2 : index
    %c0_127 = arith.constant 0 : index
    %c32_128 = arith.constant 32 : index
    %273 = vector.load %arg6[%c2_126, %c0_127, %c32_128] : memref<3x32x96xf32, #tpu.memory_space<vmem>>, vector<1x32x32xf32>
    %274 = vector.shape_cast %273 : vector<1x32x32xf32> to vector<32x32xf32>
    %cst_129 = arith.constant dense<0.000000e+00> : vector<32x32xf32>
    %275 = tpu.matmul %265, %274, %cst_129 {dimension_numbers = #tpu.dot_dimension_numbers<[1], [0], [0], [1], [0, 0, 1, 1], [], []>} : vector<32x32xf32>, vector<32x32xf32>, vector<32x32xf32> -> vector<32x32xf32>
    %c2_130 = arith.constant 2 : index
    %c0_131 = arith.constant 0 : index
    %c32_132 = arith.constant 32 : index
    %276 = vector.load %arg7[%c2_130, %c0_131, %c32_132] : memref<3x1x96xf32, #tpu.memory_space<vmem>>, vector<1x1x32xf32>
    %277 = vector.shape_cast %276 : vector<1x1x32xf32> to vector<1x32xf32>
    %278 = vector.broadcast %277 : vector<1x32xf32> to vector<32x32xf32>
    %279 = arith.addf %275, %278 : vector<32x32xf32>
    %c2_133 = arith.constant 2 : index
    %c0_134 = arith.constant 0 : index
    %c64_135 = arith.constant 64 : index
    %280 = vector.load %arg6[%c2_133, %c0_134, %c64_135] : memref<3x32x96xf32, #tpu.memory_space<vmem>>, vector<1x32x32xf32>
    %281 = vector.shape_cast %280 : vector<1x32x32xf32> to vector<32x32xf32>
    %cst_136 = arith.constant dense<0.000000e+00> : vector<32x32xf32>
    %282 = tpu.matmul %9, %281, %cst_136 {dimension_numbers = #tpu.dot_dimension_numbers<[1], [0], [0], [1], [0, 0, 1, 1], [], []>} : vector<32x32xf32>, vector<32x32xf32>, vector<32x32xf32> -> vector<32x32xf32>
    %c2_137 = arith.constant 2 : index
    %c0_138 = arith.constant 0 : index
    %c64_139 = arith.constant 64 : index
    %283 = vector.load %arg7[%c2_137, %c0_138, %c64_139] : memref<3x1x96xf32, #tpu.memory_space<vmem>>, vector<1x1x32xf32>
    %284 = vector.shape_cast %283 : vector<1x1x32xf32> to vector<1x32xf32>
    %285 = vector.broadcast %284 : vector<1x32xf32> to vector<32x32xf32>
    %286 = arith.addf %282, %285 : vector<32x32xf32>
    %287 = vector.shape_cast %272 : vector<16x32xf32> to vector<2x8x32xf32>
    %288 = vector.shape_cast %279 : vector<32x32xf32> to vector<2x16x32xf32>
    %289 = vector.shape_cast %286 : vector<32x32xf32> to vector<2x16x32xf32>
    %290 = vector.extract_strided_slice %287 {offsets = [0, 0, 0], sizes = [2, 8, 8], strides = [1, 1, 1]} : vector<2x8x32xf32> to vector<2x8x8xf32>
    %cst_140 = arith.constant 0.353553385 : f32
    %291 = vector.broadcast %cst_140 : f32 to vector<2x8x8xf32>
    %292 = arith.mulf %290, %291 : vector<2x8x8xf32>
    %293 = vector.extract_strided_slice %288 {offsets = [0, 0, 0], sizes = [2, 16, 8], strides = [1, 1, 1]} : vector<2x16x32xf32> to vector<2x16x8xf32>
    %294 = vector.extract_strided_slice %289 {offsets = [0, 0, 0], sizes = [2, 16, 8], strides = [1, 1, 1]} : vector<2x16x32xf32> to vector<2x16x8xf32>
    "tpu.trace_start"() <{level = 10 : i32, message = "bqd,bkd->bqk"}> : () -> ()
    %cst_141 = arith.constant dense<0.000000e+00> : vector<2x8x16xf32>
    %295 = tpu.matmul %292, %293, %cst_141 {dimension_numbers = #tpu.dot_dimension_numbers<[2], [2], [1], [1], [0, 0, 0, 1, 1, 1], [0], [0]>} : vector<2x8x8xf32>, vector<2x16x8xf32>, vector<2x8x16xf32> -> vector<2x8x16xf32>
    "tpu.trace_stop"() : () -> ()
    %cst_142 = arith.constant dense<0xFF800000> : vector<2x8xf32>
    %296 = vector.multi_reduction <maximumf>, %295, %cst_142 [2] : vector<2x8x16xf32> to vector<2x8xf32>
    %297 = vector.shape_cast %296 : vector<2x8xf32> to vector<2x8x1xf32>
    %298 = vector.broadcast %297 : vector<2x8x1xf32> to vector<2x8x16xf32>
    %299 = arith.subf %295, %298 : vector<2x8x16xf32>
    %300 = math.exp %299 : vector<2x8x16xf32>
    %cst_143 = arith.constant dense<0.000000e+00> : vector<2x8xf32>
    %301 = vector.multi_reduction <add>, %300, %cst_143 [2] : vector<2x8x16xf32> to vector<2x8xf32>
    %302 = vector.shape_cast %301 : vector<2x8xf32> to vector<2x8x1xf32>
    %303 = tpu.reciprocal %302 {approx = true} : vector<2x8x1xf32> -> vector<2x8x1xf32>
    %304 = vector.broadcast %303 : vector<2x8x1xf32> to vector<2x8x16xf32>
    %305 = arith.mulf %300, %304 : vector<2x8x16xf32>
    "tpu.trace_start"() <{level = 10 : i32, message = "bqk,bkd->bqd"}> : () -> ()
    %cst_144 = arith.constant dense<0.000000e+00> : vector<2x8x8xf32>
    %306 = tpu.matmul %305, %294, %cst_144 {dimension_numbers = #tpu.dot_dimension_numbers<[2], [1], [1], [2], [0, 0, 0, 1, 1, 2], [0], [0]>} : vector<2x8x16xf32>, vector<2x16x8xf32>, vector<2x8x8xf32> -> vector<2x8x8xf32>
    "tpu.trace_stop"() : () -> ()
    %307 = vector.extract_strided_slice %287 {offsets = [0, 0, 8], sizes = [2, 8, 8], strides = [1, 1, 1]} : vector<2x8x32xf32> to vector<2x8x8xf32>
    %cst_145 = arith.constant 0.353553385 : f32
    %308 = vector.broadcast %cst_145 : f32 to vector<2x8x8xf32>
    %309 = arith.mulf %307, %308 : vector<2x8x8xf32>
    %310 = vector.extract_strided_slice %288 {offsets = [0, 0, 8], sizes = [2, 16, 8], strides = [1, 1, 1]} : vector<2x16x32xf32> to vector<2x16x8xf32>
    %311 = vector.extract_strided_slice %289 {offsets = [0, 0, 8], sizes = [2, 16, 8], strides = [1, 1, 1]} : vector<2x16x32xf32> to vector<2x16x8xf32>
    "tpu.trace_start"() <{level = 10 : i32, message = "bqd,bkd->bqk"}> : () -> ()
    %cst_146 = arith.constant dense<0.000000e+00> : vector<2x8x16xf32>
    %312 = tpu.matmul %309, %310, %cst_146 {dimension_numbers = #tpu.dot_dimension_numbers<[2], [2], [1], [1], [0, 0, 0, 1, 1, 1], [0], [0]>} : vector<2x8x8xf32>, vector<2x16x8xf32>, vector<2x8x16xf32> -> vector<2x8x16xf32>
    "tpu.trace_stop"() : () -> ()
    %cst_147 = arith.constant dense<0xFF800000> : vector<2x8xf32>
    %313 = vector.multi_reduction <maximumf>, %312, %cst_147 [2] : vector<2x8x16xf32> to vector<2x8xf32>
    %314 = vector.shape_cast %313 : vector<2x8xf32> to vector<2x8x1xf32>
    %315 = vector.broadcast %314 : vector<2x8x1xf32> to vector<2x8x16xf32>
    %316 = arith.subf %312, %315 : vector<2x8x16xf32>
    %317 = math.exp %316 : vector<2x8x16xf32>
    %cst_148 = arith.constant dense<0.000000e+00> : vector<2x8xf32>
    %318 = vector.multi_reduction <add>, %317, %cst_148 [2] : vector<2x8x16xf32> to vector<2x8xf32>
    %319 = vector.shape_cast %318 : vector<2x8xf32> to vector<2x8x1xf32>
    %320 = tpu.reciprocal %319 {approx = true} : vector<2x8x1xf32> -> vector<2x8x1xf32>
    %321 = vector.broadcast %320 : vector<2x8x1xf32> to vector<2x8x16xf32>
    %322 = arith.mulf %317, %321 : vector<2x8x16xf32>
    "tpu.trace_start"() <{level = 10 : i32, message = "bqk,bkd->bqd"}> : () -> ()
    %cst_149 = arith.constant dense<0.000000e+00> : vector<2x8x8xf32>
    %323 = tpu.matmul %322, %311, %cst_149 {dimension_numbers = #tpu.dot_dimension_numbers<[2], [1], [1], [2], [0, 0, 0, 1, 1, 2], [0], [0]>} : vector<2x8x16xf32>, vector<2x16x8xf32>, vector<2x8x8xf32> -> vector<2x8x8xf32>
    "tpu.trace_stop"() : () -> ()
    %324 = vector.extract_strided_slice %287 {offsets = [0, 0, 16], sizes = [2, 8, 8], strides = [1, 1, 1]} : vector<2x8x32xf32> to vector<2x8x8xf32>
    %cst_150 = arith.constant 0.353553385 : f32
    %325 = vector.broadcast %cst_150 : f32 to vector<2x8x8xf32>
    %326 = arith.mulf %324, %325 : vector<2x8x8xf32>
    %327 = vector.extract_strided_slice %288 {offsets = [0, 0, 16], sizes = [2, 16, 8], strides = [1, 1, 1]} : vector<2x16x32xf32> to vector<2x16x8xf32>
    %328 = vector.extract_strided_slice %289 {offsets = [0, 0, 16], sizes = [2, 16, 8], strides = [1, 1, 1]} : vector<2x16x32xf32> to vector<2x16x8xf32>
    "tpu.trace_start"() <{level = 10 : i32, message = "bqd,bkd->bqk"}> : () -> ()
    %cst_151 = arith.constant dense<0.000000e+00> : vector<2x8x16xf32>
    %329 = tpu.matmul %326, %327, %cst_151 {dimension_numbers = #tpu.dot_dimension_numbers<[2], [2], [1], [1], [0, 0, 0, 1, 1, 1], [0], [0]>} : vector<2x8x8xf32>, vector<2x16x8xf32>, vector<2x8x16xf32> -> vector<2x8x16xf32>
    "tpu.trace_stop"() : () -> ()
    %cst_152 = arith.constant dense<0xFF800000> : vector<2x8xf32>
    %330 = vector.multi_reduction <maximumf>, %329, %cst_152 [2] : vector<2x8x16xf32> to vector<2x8xf32>
    %331 = vector.shape_cast %330 : vector<2x8xf32> to vector<2x8x1xf32>
    %332 = vector.broadcast %331 : vector<2x8x1xf32> to vector<2x8x16xf32>
    %333 = arith.subf %329, %332 : vector<2x8x16xf32>
    %334 = math.exp %333 : vector<2x8x16xf32>
    %cst_153 = arith.constant dense<0.000000e+00> : vector<2x8xf32>
    %335 = vector.multi_reduction <add>, %334, %cst_153 [2] : vector<2x8x16xf32> to vector<2x8xf32>
    %336 = vector.shape_cast %335 : vector<2x8xf32> to vector<2x8x1xf32>
    %337 = tpu.reciprocal %336 {approx = true} : vector<2x8x1xf32> -> vector<2x8x1xf32>
    %338 = vector.broadcast %337 : vector<2x8x1xf32> to vector<2x8x16xf32>
    %339 = arith.mulf %334, %338 : vector<2x8x16xf32>
    "tpu.trace_start"() <{level = 10 : i32, message = "bqk,bkd->bqd"}> : () -> ()
    %cst_154 = arith.constant dense<0.000000e+00> : vector<2x8x8xf32>
    %340 = tpu.matmul %339, %328, %cst_154 {dimension_numbers = #tpu.dot_dimension_numbers<[2], [1], [1], [2], [0, 0, 0, 1, 1, 2], [0], [0]>} : vector<2x8x16xf32>, vector<2x16x8xf32>, vector<2x8x8xf32> -> vector<2x8x8xf32>
    "tpu.trace_stop"() : () -> ()
    %341 = vector.extract_strided_slice %287 {offsets = [0, 0, 24], sizes = [2, 8, 8], strides = [1, 1, 1]} : vector<2x8x32xf32> to vector<2x8x8xf32>
    %cst_155 = arith.constant 0.353553385 : f32
    %342 = vector.broadcast %cst_155 : f32 to vector<2x8x8xf32>
    %343 = arith.mulf %341, %342 : vector<2x8x8xf32>
    %344 = vector.extract_strided_slice %288 {offsets = [0, 0, 24], sizes = [2, 16, 8], strides = [1, 1, 1]} : vector<2x16x32xf32> to vector<2x16x8xf32>
    %345 = vector.extract_strided_slice %289 {offsets = [0, 0, 24], sizes = [2, 16, 8], strides = [1, 1, 1]} : vector<2x16x32xf32> to vector<2x16x8xf32>
    "tpu.trace_start"() <{level = 10 : i32, message = "bqd,bkd->bqk"}> : () -> ()
    %cst_156 = arith.constant dense<0.000000e+00> : vector<2x8x16xf32>
    %346 = tpu.matmul %343, %344, %cst_156 {dimension_numbers = #tpu.dot_dimension_numbers<[2], [2], [1], [1], [0, 0, 0, 1, 1, 1], [0], [0]>} : vector<2x8x8xf32>, vector<2x16x8xf32>, vector<2x8x16xf32> -> vector<2x8x16xf32>
    "tpu.trace_stop"() : () -> ()
    %cst_157 = arith.constant dense<0xFF800000> : vector<2x8xf32>
    %347 = vector.multi_reduction <maximumf>, %346, %cst_157 [2] : vector<2x8x16xf32> to vector<2x8xf32>
    %348 = vector.shape_cast %347 : vector<2x8xf32> to vector<2x8x1xf32>
    %349 = vector.broadcast %348 : vector<2x8x1xf32> to vector<2x8x16xf32>
    %350 = arith.subf %346, %349 : vector<2x8x16xf32>
    %351 = math.exp %350 : vector<2x8x16xf32>
    %cst_158 = arith.constant dense<0.000000e+00> : vector<2x8xf32>
    %352 = vector.multi_reduction <add>, %351, %cst_158 [2] : vector<2x8x16xf32> to vector<2x8xf32>
    %353 = vector.shape_cast %352 : vector<2x8xf32> to vector<2x8x1xf32>
    %354 = tpu.reciprocal %353 {approx = true} : vector<2x8x1xf32> -> vector<2x8x1xf32>
    %355 = vector.broadcast %354 : vector<2x8x1xf32> to vector<2x8x16xf32>
    %356 = arith.mulf %351, %355 : vector<2x8x16xf32>
    "tpu.trace_start"() <{level = 10 : i32, message = "bqk,bkd->bqd"}> : () -> ()
    %cst_159 = arith.constant dense<0.000000e+00> : vector<2x8x8xf32>
    %357 = tpu.matmul %356, %345, %cst_159 {dimension_numbers = #tpu.dot_dimension_numbers<[2], [1], [1], [2], [0, 0, 0, 1, 1, 2], [0], [0]>} : vector<2x8x16xf32>, vector<2x16x8xf32>, vector<2x8x8xf32> -> vector<2x8x8xf32>
    "tpu.trace_stop"() : () -> ()
    %358 = tpu.concatenate %306, %323, %340, %357 in 2 : vector<2x8x8xf32>, vector<2x8x8xf32>, vector<2x8x8xf32>, vector<2x8x8xf32> -> vector<2x8x32xf32>
    %359 = vector.shape_cast %358 : vector<2x8x32xf32> to vector<16x32xf32>
    %c2_160 = arith.constant 2 : index
    %c0_161 = arith.constant 0 : index
    %c0_162 = arith.constant 0 : index
    %360 = vector.load %arg8[%c2_160, %c0_161, %c0_162] : memref<3x32x32xf32, #tpu.memory_space<vmem>>, vector<1x32x32xf32>
    %361 = vector.shape_cast %360 : vector<1x32x32xf32> to vector<32x32xf32>
    %cst_163 = arith.constant dense<0.000000e+00> : vector<16x32xf32>
    %362 = tpu.matmul %359, %361, %cst_163 {dimension_numbers = #tpu.dot_dimension_numbers<[1], [0], [0], [1], [0, 0, 1, 1], [], []>} : vector<16x32xf32>, vector<32x32xf32>, vector<16x32xf32> -> vector<16x32xf32>
    %c2_164 = arith.constant 2 : index
    %c0_165 = arith.constant 0 : index
    %c0_166 = arith.constant 0 : index
    %363 = vector.load %arg9[%c2_164, %c0_165, %c0_166] : memref<3x1x32xf32, #tpu.memory_space<vmem>>, vector<1x1x32xf32>
    %364 = vector.shape_cast %363 : vector<1x1x32xf32> to vector<1x32xf32>
    %365 = vector.broadcast %364 : vector<1x32xf32> to vector<16x32xf32>
    %366 = arith.addf %362, %365 : vector<16x32xf32>
    %c0_167 = arith.constant 0 : index
    %c0_168 = arith.constant 0 : index
    %367 = vector.load %arg10[%c0_167, %c0_168] : memref<32x64xf32, #tpu.memory_space<vmem>>, vector<32x64xf32>
    %cst_169 = arith.constant dense<0.000000e+00> : vector<16x64xf32>
    %368 = tpu.matmul %366, %367, %cst_169 {dimension_numbers = #tpu.dot_dimension_numbers<[1], [0], [0], [1], [0, 0, 1, 1], [], []>} : vector<16x32xf32>, vector<32x64xf32>, vector<16x64xf32> -> vector<16x64xf32>
    %c0_170 = arith.constant 0 : index
    %c0_171 = arith.constant 0 : index
    %369 = vector.load %arg11[%c0_170, %c0_171] : memref<1x64xf32, #tpu.memory_space<vmem>>, vector<1x64xf32>
    %370 = vector.broadcast %369 : vector<1x64xf32> to vector<16x64xf32>
    %371 = arith.addf %368, %370 : vector<16x64xf32>
    %cst_172 = arith.constant 0.000000e+00 : f32
    %372 = vector.broadcast %cst_172 : f32 to vector<16x64xf32>
    %373 = arith.maximumf %371, %372 : vector<16x64xf32>
    %c0_173 = arith.constant 0 : index
    %c0_174 = arith.constant 0 : index
    %374 = vector.load %arg12[%c0_173, %c0_174] : memref<64x32xf32, #tpu.memory_space<vmem>>, vector<64x32xf32>
    %cst_175 = arith.constant dense<0.000000e+00> : vector<16x32xf32>
    %375 = tpu.matmul %373, %374, %cst_175 {dimension_numbers = #tpu.dot_dimension_numbers<[1], [0], [0], [1], [0, 0, 1, 1], [], []>} : vector<16x64xf32>, vector<64x32xf32>, vector<16x32xf32> -> vector<16x32xf32>
    %c0_176 = arith.constant 0 : index
    %c0_177 = arith.constant 0 : index
    %376 = vector.load %arg13[%c0_176, %c0_177] : memref<1x32xf32, #tpu.memory_space<vmem>>, vector<1x32xf32>
    %377 = vector.broadcast %376 : vector<1x32xf32> to vector<16x32xf32>
    %378 = arith.addf %375, %377 : vector<16x32xf32>
    %379 = arith.addf %378, %263 : vector<16x32xf32>
    %cst_178 = arith.constant dense<0.000000e+00> : vector<16xf32>
    %380 = vector.multi_reduction <add>, %379, %cst_178 [1] : vector<16x32xf32> to vector<16xf32>
    %381 = vector.shape_cast %380 : vector<16xf32> to vector<16x1xf32>
    %cst_179 = arith.constant 3.200000e+01 : f32
    %382 = vector.broadcast %cst_179 : f32 to vector<16x1xf32>
    %383 = arith.divf %381, %382 : vector<16x1xf32>
    %384 = vector.broadcast %383 : vector<16x1xf32> to vector<16x32xf32>
    %385 = arith.subf %379, %384 : vector<16x32xf32>
    %386 = arith.mulf %385, %385 : vector<16x32xf32>
    %cst_180 = arith.constant dense<0.000000e+00> : vector<16xf32>
    %387 = vector.multi_reduction <add>, %386, %cst_180 [1] : vector<16x32xf32> to vector<16xf32>
    %388 = vector.shape_cast %387 : vector<16xf32> to vector<16x1xf32>
    %cst_181 = arith.constant 3.200000e+01 : f32
    %389 = vector.broadcast %cst_181 : f32 to vector<16x1xf32>
    %390 = arith.divf %388, %389 : vector<16x1xf32>
    %391 = vector.broadcast %383 : vector<16x1xf32> to vector<16x32xf32>
    %392 = arith.subf %379, %391 : vector<16x32xf32>
    %cst_182 = arith.constant 9.99999974E-6 : f32
    %393 = vector.broadcast %cst_182 : f32 to vector<16x1xf32>
    %394 = arith.addf %390, %393 : vector<16x1xf32>
    %395 = math.rsqrt %394 : vector<16x1xf32>
    %396 = vector.broadcast %395 : vector<16x1xf32> to vector<16x32xf32>
    %397 = arith.mulf %392, %396 : vector<16x32xf32>
    %c4 = arith.constant 4 : index
    %c0_183 = arith.constant 0 : index
    %c0_184 = arith.constant 0 : index
    %398 = vector.load %arg14[%c4, %c0_183, %c0_184] : memref<6x1x32xf32, #tpu.memory_space<vmem>>, vector<1x1x32xf32>
    %399 = vector.shape_cast %398 : vector<1x1x32xf32> to vector<1x32xf32>
    %400 = vector.broadcast %399 : vector<1x32xf32> to vector<16x32xf32>
    %401 = arith.mulf %397, %400 : vector<16x32xf32>
    %c5 = arith.constant 5 : index
    %c0_185 = arith.constant 0 : index
    %c0_186 = arith.constant 0 : index
    %402 = vector.load %arg14[%c5, %c0_185, %c0_186] : memref<6x1x32xf32, #tpu.memory_space<vmem>>, vector<1x1x32xf32>
    %403 = vector.shape_cast %402 : vector<1x1x32xf32> to vector<1x32xf32>
    %404 = vector.broadcast %403 : vector<1x32xf32> to vector<16x32xf32>
    %405 = arith.addf %401, %404 : vector<16x32xf32>
    %406 = vector.shape_cast %405 : vector<16x32xf32> to vector<2x8x32xf32>
    %c0_187 = arith.constant 0 : index
    %c0_188 = arith.constant 0 : index
    %c0_189 = arith.constant 0 : index
    %407 = vector.load %arg15[%c0_187, %c0_188, %c0_189] : memref<2x8x32xf32, #tpu.memory_space<vmem>>, vector<2x8x32xf32>
    tpu.vector_store %arg15[%c0_187, %c0_188, %c0_189], %406 {strides = array<i32>} : memref<2x8x32xf32, #tpu.memory_space<vmem>>, vector<2x8x32xf32>,
    return
  }
  func.func @transform_0(%arg0: i32) -> (i32, i32, i32) {
    %c0_i32 = arith.constant 0 : i32
    %c0_i32_0 = arith.constant 0 : i32
    %c0_i32_1 = arith.constant 0 : i32
    return %arg0, %c0_i32, %c0_i32_0 : i32, i32, i32
  }
  func.func @transform_1(%arg0: i32) -> (i32, i32, i32) {
    %c0_i32 = arith.constant 0 : i32
    %c0_i32_0 = arith.constant 0 : i32
    %c0_i32_1 = arith.constant 0 : i32
    return %arg0, %c0_i32, %c0_i32_0 : i32, i32, i32
  }
  func.func @transform_2(%arg0: i32) -> (i32, i32, i32) {
    %c0_i32 = arith.constant 0 : i32
    %c0_i32_0 = arith.constant 0 : i32
    %c0_i32_1 = arith.constant 0 : i32
    return %arg0, %c0_i32, %c0_i32_0 : i32, i32, i32
  }
  func.func @transform_3(%arg0: i32) -> (i32, i32, i32) {
    %c0_i32 = arith.constant 0 : i32
    %c0_i32_0 = arith.constant 0 : i32
    %c0_i32_1 = arith.constant 0 : i32
    return %arg0, %c0_i32, %c0_i32_0 : i32, i32, i32
  }
  func.func @transform_4(%arg0: i32) -> (i32, i32, i32) {
    %c0_i32 = arith.constant 0 : i32
    %c0_i32_0 = arith.constant 0 : i32
    %c0_i32_1 = arith.constant 0 : i32
    return %arg0, %c0_i32, %c0_i32_0 : i32, i32, i32
  }
  func.func @transform_5(%arg0: i32) -> (i32, i32, i32) {
    %c0_i32 = arith.constant 0 : i32
    %c0_i32_0 = arith.constant 0 : i32
    %c0_i32_1 = arith.constant 0 : i32
    %c0_i32_2 = arith.constant 0 : i32
    return %c0_i32, %c0_i32_0, %c0_i32_1 : i32, i32, i32
  }
  func.func @transform_6(%arg0: i32) -> (i32, i32, i32) {
    %c0_i32 = arith.constant 0 : i32
    %c0_i32_0 = arith.constant 0 : i32
    %c0_i32_1 = arith.constant 0 : i32
    %c0_i32_2 = arith.constant 0 : i32
    return %c0_i32, %c0_i32_0, %c0_i32_1 : i32, i32, i32
  }
  func.func @transform_7(%arg0: i32) -> (i32, i32, i32) {
    %c0_i32 = arith.constant 0 : i32
    %c0_i32_0 = arith.constant 0 : i32
    %c0_i32_1 = arith.constant 0 : i32
    %c0_i32_2 = arith.constant 0 : i32
    return %c0_i32, %c0_i32_0, %c0_i32_1 : i32, i32, i32
  }
  func.func @transform_8(%arg0: i32) -> (i32, i32, i32) {
    %c0_i32 = arith.constant 0 : i32
    %c0_i32_0 = arith.constant 0 : i32
    %c0_i32_1 = arith.constant 0 : i32
    %c0_i32_2 = arith.constant 0 : i32
    return %c0_i32, %c0_i32_0, %c0_i32_1 : i32, i32, i32
  }
  func.func @transform_9(%arg0: i32) -> (i32, i32) {
    %c0_i32 = arith.constant 0 : i32
    %c0_i32_0 = arith.constant 0 : i32
    %c0_i32_1 = arith.constant 0 : i32
    return %c0_i32, %c0_i32_0 : i32, i32
  }
  func.func @transform_10(%arg0: i32) -> (i32, i32) {
    %c0_i32 = arith.constant 0 : i32
    %c0_i32_0 = arith.constant 0 : i32
    %c0_i32_1 = arith.constant 0 : i32
    return %c0_i32, %c0_i32_0 : i32, i32
  }
  func.func @transform_11(%arg0: i32) -> (i32, i32) {
    %c0_i32 = arith.constant 0 : i32
    %c0_i32_0 = arith.constant 0 : i32
    %c0_i32_1 = arith.constant 0 : i32
    return %c0_i32, %c0_i32_0 : i32, i32
  }
  func.func @transform_12(%arg0: i32) -> (i32, i32) {
    %c0_i32 = arith.constant 0 : i32
    %c0_i32_0 = arith.constant 0 : i32
    %c0_i32_1 = arith.constant 0 : i32
    return %c0_i32, %c0_i32_0 : i32, i32
  }
  func.func @transform_13(%arg0: i32) -> (i32, i32, i32) {
    %c0_i32 = arith.constant 0 : i32
    %c0_i32_0 = arith.constant 0 : i32
    %c0_i32_1 = arith.constant 0 : i32
    %c0_i32_2 = arith.constant 0 : i32
    return %c0_i32, %c0_i32_0, %c0_i32_1 : i32, i32, i32
  }
  func.func @transform_14(%arg0: i32) -> (i32, i32, i32) {
    %c0_i32 = arith.constant 0 : i32
    %c0_i32_0 = arith.constant 0 : i32
    %c0_i32_1 = arith.constant 0 : i32
    return %arg0, %c0_i32, %c0_i32_0 : i32, i32, i32
  }
}

</mosaic_0001>

<bundles_post_ra>
// kernel: transformer_temporal_decoder_layer.1
= control target key start
LH: loop header
LB: loop body
LE: loop exit
PB: predicated region body
PF: predicated region fallthrough
CT: control target
= control target key end

     0   :  { %vm76_vm0 = vcmask 261120   ;;  %s7038_s25 = smov 64   ;;  %v7039_v14 = vmov 0.0   ;;  %vm7040_vm1 = vmmov 0   ;;  %s7041_s15 = smov 96   ;;  %vm263_vm2 = vcmask 64512   ;;  %s7988_s5 = inlined_call_operand.vmem [shape: f32[3,32,96], index: 5, kind: input, shape index: {}]   ;;  %s7989_s0 = inlined_call_operand.vmem [shape: f32[2,8,32], index: 0, kind: input, shape index: {}]   ;;  %s7990_s4 = inlined_call_operand.vmem [shape: f32[2,8,32], index: 4, kind: input, shape index: {}]   ;;  %s7991_s6 = inlined_call_operand.vmem [shape: f32[3,1,96], index: 6, kind: input, shape index: {}]   ;;  %s7992_s7 = inlined_call_operand.vmem [shape: f32[3,32,32], index: 7, kind: input, shape index: {}]   ;;  %s7993_s8 = inlined_call_operand.vmem [shape: f32[3,1,32], index: 8, kind: input, shape index: {}]   ;;  %s7994_s2 = inlined_call_operand.vmem [shape: f32[2,16,32], index: 2, kind: input, shape index: {}]   ;;  %s7995_s3 = inlined_call_operand.vmem [shape: f32[2,16,32], index: 3, kind: input, shape index: {}]   ;;  %s7996_s13 = inlined_call_operand.vmem [shape: f32[6,1,32], index: 13, kind: input, shape index: {}]   ;;  %s7997_s1 = inlined_call_operand.vmem [shape: f32[2,16,32], index: 1, kind: input, shape index: {}]   ;;  %s7998_s9 = inlined_call_operand.vmem [shape: f32[32,64], index: 9, kind: input, shape index: {}]   ;;  %s7999_s11 = inlined_call_operand.vmem [shape: f32[64,32], index: 11, kind: input, shape index: {}]   ;;  %s8000_s10 = inlined_call_operand.vmem [shape: f32[1,64], index: 10, kind: input, shape index: {}]   ;;  %s8001_s12 = inlined_call_operand.vmem [shape: f32[1,32], index: 12, kind: input, shape index: {}]   ;;  %s8002_s14 = inlined_call_operand.vmem [shape: f32[2,8,32], index: 14, kind: output, shape index: {}]  }
   0x1   :  { %v65_v0 = vld [vmem:[%s7988_s5] sm:$0xff]  ;;  %v66_v1 = vld [vmem:[%s7988_s5 + $0x8] sm:$0xff]  ;;  %v67_v2 = vld [vmem:[%s7988_s5 + $0x10] sm:$0xff]  ;;  %6075 = vmatprep.subr.mxu0 %v7039_v14  ;;  %6077 = vmatprep.mubr.msk.f32.mxu0 %vm7040_vm1, %v7039_v14  ;;  %s7042_s16 = smov 88   ;;  %s7043_s17 = smov 120   ;;  %vm1603_vm3 = vcmask 130048  }
   0x2   :  { %v6520_v3 = vpack.c.bf16 %v66_v1, %v65_v0  ;;  %v68_v4 = vld [vmem:[%s7988_s5 + $0x18] sm:$0xff]  ;;  %v7142_v5 = vld [vmem:[%s7989_s0] sm:$0xff]  ;;  %v6758_v6 = vpack.i.bf16 %v66_v1, %v65_v0  ;;  %v7155_v11 = vld [vmem:[%s7989_s0 + $0x8] sm:$0xff]  ;;  %s7044_s18 = smov 80   ;;  %s7045_s19 = smov 112   ;;  %vm1606_vm4 = vcmask 195584  }
   0x3   :  { %v6524_v7 = vpack.c.bf16 %v68_v4, %v67_v2  ;;  %v7147_v8 = vld [vmem:[%s7990_s4] sm:$0xff]  ;;  %v6763_v10 = vpack.i.bf16 %v68_v4, %v67_v2  ;;  %v7160_v12 = vld [vmem:[%s7990_s4 + $0x8] sm:$0xff]  ;;  %s7046_s20 = smov 72   ;;  %s7047_s21 = smov 104   ;;  %vm7467_vm5 = vmpackc.low %vm263_vm2, %vm263_vm2  ;;  %vm5538_vm6 = vcmask 523264  }
   0x4   :  { %6521 = vmatprep.subr.bf16.mxu1 %v6520_v3  ;;  %v63_v9 = vadd.f32 %v7147_v8, %v7142_v5  ;;  %6759 = vrot.lane.b32.xlu0 %v6758_v6, %s7038_s25  ;;  %v64_v13 = vadd.f32 %v7160_v12, %v7155_v11  ;;  %v5674_v23 = vld [vmem:[%s7991_s6] ss:$0 sm:$0xff]  ;;  %s7048_s22 = smov 8   ;;  %s7049_s23 = smov 16  }
   0x5   :  { %6523 = vmatpush3.bf16.msra.mxu1 %v6520_v3 }
   0x6   :  { %6525 = vmatprep.subr.bf16.mxu1 %v6524_v7  ;;  %6061 = vmatprep.mubr.msk.f32.mxu1 %vm76_vm0, %v63_v9 }
   0x8   :  { %6764 = vrot.lane.b32.xlu0 %v6763_v10, %s7038_s25 }
   0x9   :  { %6527 = vmatpush3.bf16.msra.mxu1 %v6524_v7 }
   0xc   :  { %6062 = vmatmul.mubr.msk.f32.vlgmr.msra.gmra.mrb[0].mxu1 %vm76_vm0, %v64_v13 }
   0xd   :  { %6072 = vmatprep.mubr.msk.f32.mxu1 %vm76_vm0, %v7142_v5 }
  0x76   :  { %v6760_v15 = vpop.permute.xlu0 %6759 }
  0x77   :  { %v6762_v16 = vunpack.i.h.bf16 %v6760_v15  ;;  %v6761_v17 = vunpack.i.l.bf16 %v6760_v15 }
  0x79   :  { %v6528_v18 = vpack.c.bf16 %v6762_v16, %v6761_v17 }
  0x7a   :  { %v6765_v19 = vpop.permute.xlu0 %6764 }
  0x7b   :  { %v6767_v20 = vunpack.i.h.bf16 %v6765_v19  ;;  %v6766_v21 = vunpack.i.l.bf16 %v6765_v19  ;;  %6529 = vmatprep.subr.bf16.mxu1 %v6528_v18 }
  0x7c   :  { %6531 = vmatpush3.bf16.msra.mxu1 %v6528_v18 }
  0x7d   :  { %v6532_v22 = vpack.c.bf16 %v6767_v20, %v6766_v21 }
  0x7f   :  { %6533 = vmatprep.subr.bf16.mxu1 %v6532_v22 }
  0x80   :  { %6535 = vmatpush3.bf16.msra.mxu1 %v6532_v22 }
  0x81   :  { %6080 = vmatprep.subr.mxu1 %v7039_v14 }
  0x83   :  { %6073 = vmatmul.mubr.msk.f32.vlgmr.msra.gmra.mrb[2].mxu1 %vm76_vm0, %v7155_v11 }
  0x84   :  { %6082 = vmatprep.mubr.msk.f32.mxu1 %vm7040_vm1, %v7039_v14 }
  0xdf   :  { %v6063_v24 = vpop.f32.mrb[0].mxu1 }
  0xe0   :  { %v149_v25 = vpop.f32.mrb[1].mxu1  ;;  %v7184_v27 = vadd.f32 %v6063_v24, %v5674_v23 }
  0xe1   :  { %v7180_v26 = vadd.f32 %v5674_v23, %v149_v25 }
  0xe2   :  { %v7199_v33 = vmul.f32 0.35355338, %v7184_v27 }
  0xe3   :  { %261 = vrot.lane.b32.xlu1 %v7180_v26, %s7041_s15  ;;  %v7190_v30 = vmul.f32 0.35355338, %v7180_v26 }
  0xe7   :  { %340 = vrot.lane.b32.xlu1 %v7184_v27, %s7041_s15 }
 0x155   :  { %v262_v28 = vpop.permute.xlu1 %261 }
 0x156   :  { %6076 = vmatpush3.xpose.msk.msra.mxu0 %vm263_vm2, %v262_v28  ;;  %v6074_v29 = vpop.f32.mrb[2].mxu1 }
 0x157   :  { %v249_v31 = vpop.f32.mrb[3].mxu1  ;;  %6085 = vmatprep.subr.mxu0 %v7039_v14 }
 0x159   :  { %v341_v32 = vpop.permute.xlu1 %340  ;;  %6078 = vmatmul.mubr.msk.f32.vlgmr.msra.gmra.mrb[0].mxu0 %vm263_vm2, %v7190_v30 }
 0x15a   :  { %6081 = vmatpush3.xpose.msk.msra.mxu1 %vm263_vm2, %v341_v32  ;;  %6087 = vmatprep.mubr.msk.f32.mxu0 %vm7040_vm1, %v7039_v14 }
 0x15b   :  { %6090 = vmatprep.subr.mxu1 %v7039_v14 }
 0x15d   :  { %6083 = vmatmul.mubr.msk.f32.vlgmr.msra.gmra.mrb[4].mxu1 %vm263_vm2, %v7199_v33 }
 0x15e   :  { %6092 = vmatprep.mubr.msk.f32.mxu1 %vm7040_vm1, %v7039_v14 }
 0x22c   :  { %v335_v34 = vpop.f32.mrb[0].mxu0 }
 0x22d   :  { %v6079_v35 = vpop.f32.mrb[1].mxu0  ;;  %v417_v36 = vsel %vm263_vm2, %v335_v34, -inf }
 0x22e   :  { %418 = vmax.xlane.f32.xlu0 %v417_v36 }
 0x230   :  { %v413_v37 = vpop.f32.mrb[4].mxu1 }
 0x231   :  { %v6084_v38 = vpop.f32.mrb[5].mxu1  ;;  %v420_v39 = vsel %vm263_vm2, %v413_v37, -inf }
 0x232   :  { %421 = vmax.xlane.f32.xlu1 %v420_v39 }
 0x243   :  { %174 = vrot.lane.b32.xlu1 %v5674_v23, %s7038_s25 }
 0x247   :  { %665 = vrot.lane.b32.xlu1 %v7184_v27, %s7042_s16 }
 0x24b   :  { %585 = vrot.lane.b32.xlu1 %v7190_v30, %s7043_s17 }
 0x2bb   :  { %v419_v40 = vpop.xlane.xlu0 %418 }
 0x2bc   :  { %v423_v41 = vsub.f32 %v335_v34, %v419_v40 }
 0x2be   :  { %v425_v44 = vmul.f32 1.442695, %v423_v41 }
 0x2bf   :  { %v422_v42 = vpop.xlane.xlu1 %421 }
 0x2c0   :  { %v424_v43 = vsub.f32 %v413_v37, %v422_v42 }
 0x2c2   :  { %v427_v45 = vmul.f32 1.442695, %v424_v43 }
 0x2c3   :  { %v175_v46 = vpop.permute.xlu1 %174 }
 0x2c4   :  { %6928 = vpow2.f32 %v427_v45  ;;  %v7212_v47 = vadd.f32 %v249_v31, %v175_v46  ;;  %v7214_v48 = vadd.f32 %v6074_v29, %v175_v46 }
 0x2c5   :  { %6930 = vpow2.f32 %v425_v44 }
 0x2c6   :  { %6086 = vmatpush3.msra.mxu0 %v7212_v47  ;;  %6091 = vmatpush3.msra.mxu1 %v7214_v48 }
 0x2c7   :  { %6100 = vmatprep.subr.mxu1 %v7039_v14  ;;  %6095 = vmatprep.subr.mxu0 %v7039_v14  ;;  %v666_v58 = vpop.permute.xlu1 %665 }
 0x2cb   :  { %v586_v62 = vpop.permute.xlu1 %585 }
 0x2ce   :  { %v6929_v49 = vpop.eup %6928 }
 0x2cf   :  { %v432_v50 = vsel %vm263_vm2, %v6929_v49, 0.0  ;;  %v6931_v51 = vpop.eup %6930 }
 0x2d0   :  { %433 = vadd.xlane.f32.xlu0 %v432_v50  ;;  %v429_v52 = vsel %vm263_vm2, %v6931_v51, 0.0 }
 0x2d4   :  { %430 = vadd.xlane.f32.xlu0 %v429_v52 }
 0x2ea   :  { %587 = vrot.lane.b32.xlu0 %v7180_v26, %s7042_s16 }
 0x2ee   :  { %663 = vrot.lane.b32.xlu0 %v7199_v33, %s7043_s17 }
 0x35d   :  { %v434_v53 = vpop.xlane.xlu0 %433 }
 0x35e   :  { %6932 = vrcp.f32 %v434_v53 }
 0x361   :  { %v431_v54 = vpop.xlane.xlu0 %430 }
 0x362   :  { %6934 = vrcp.f32 %v431_v54 }
 0x365   :  { %v588_v56 = vpop.permute.xlu0 %587 }
 0x368   :  { %v6933_v55 = vpop.eup %6932 }
 0x369   :  { %v438_v57 = vmul.f32 %v6933_v55, %v6929_v49  ;;  %v664_v61 = vpop.permute.xlu0 %663 }
 0x36b   :  { %6093 = vmatmul.mubr.msk.f32.vlgmr.msra.gmra.mrb[6].mxu1 %vm263_vm2, %v438_v57 }
 0x36c   :  { %v6935_v59 = vpop.eup %6934  ;;  %6101 = vmatpush3.xpose.msk.msra.mxu1 %vm263_vm2, %v666_v58  ;;  %6102 = vmatprep.mubr.msk.f32.mxu1 %vm7040_vm1, %v7039_v14 }
 0x36d   :  { %v437_v60 = vmul.f32 %v6935_v59, %v6931_v51  ;;  %6110 = vmatprep.subr.mxu1 %v7039_v14 }
 0x36f   :  { %6088 = vmatmul.mubr.msk.f32.vlgmr.msra.gmra.mrb[2].mxu0 %vm263_vm2, %v437_v60  ;;  %6103 = vmatmul.mubr.msk.f32.vlgmr.msra.gmra.mrb[8].mxu1 %vm263_vm2, %v664_v61 }
 0x370   :  { %6096 = vmatpush3.xpose.msk.msra.mxu0 %vm263_vm2, %v588_v56  ;;  %6097 = vmatprep.mubr.msk.f32.mxu0 %vm7040_vm1, %v7039_v14 }
 0x371   :  { %6105 = vmatprep.subr.mxu0 %v7039_v14  ;;  %6112 = vmatprep.mubr.msk.f32.mxu1 %vm7040_vm1, %v7039_v14 }
 0x373   :  { %6098 = vmatmul.mubr.msk.f32.vlgmr.msra.gmra.mrb[4].mxu0 %vm263_vm2, %v586_v62 }
 0x374   :  { %6107 = vmatprep.mubr.msk.f32.mxu0 %vm7040_vm1, %v7039_v14 }
 0x43e   :  { %v7241_v63 = vpop.f32.mrb[6].mxu1 }
 0x43f   :  { %v6094_v0 = vpop.f32.mrb[7].mxu1 }
 0x442   :  { %v7243_v1 = vpop.f32.mrb[2].mxu0  ;;  %v737_v2 = vpop.f32.mrb[8].mxu1 }
 0x443   :  { %v6089_v3 = vpop.f32.mrb[3].mxu0  ;;  %v6104_v4 = vpop.f32.mrb[9].mxu1  ;;  %v744_v6 = vsel %vm263_vm2, %v737_v2, -inf }
 0x444   :  { %745 = vmax.xlane.f32.xlu0 %v744_v6 }
 0x446   :  { %v659_v7 = vpop.f32.mrb[4].mxu0 }
 0x447   :  { %v6099_v9 = vpop.f32.mrb[5].mxu0  ;;  %v741_v10 = vsel %vm263_vm2, %v659_v7, -inf }
 0x448   :  { %742 = vmax.xlane.f32.xlu1 %v741_v10 }
 0x459   :  { %841 = vrot.lane.b32.xlu1 %v7214_v48, %s7043_s17 }
 0x45a   :  { %764 = vrot.lane.b32.xlu0 %v7212_v47, %s7043_s17 }
 0x45d   :  { %919 = vrot.lane.b32.xlu1 %v7180_v26, %s7044_s18 }
 0x4d1   :  { %v746_v13 = vpop.xlane.xlu0 %745 }
 0x4d2   :  { %v748_v15 = vsub.f32 %v737_v2, %v746_v13 }
 0x4d4   :  { %v751_v16 = vmul.f32 1.442695, %v748_v15 }
 0x4d5   :  { %v765_v17 = vpop.permute.xlu0 %764  ;;  %v743_v18 = vpop.xlane.xlu1 %742 }
 0x4d6   :  { %6936 = vpow2.f32 %v751_v16  ;;  %v747_v19 = vsub.f32 %v659_v7, %v743_v18  ;;  %6106 = vmatpush3.msra.mxu0 %v765_v17 }
 0x4d7   :  { %6115 = vmatprep.subr.mxu0 %v7039_v14 }
 0x4d8   :  { %v749_v20 = vmul.f32 1.442695, %v747_v19 }
 0x4d9   :  { %v842_v21 = vpop.permute.xlu1 %841 }
 0x4da   :  { %6938 = vpow2.f32 %v749_v20  ;;  %6111 = vmatpush3.msra.mxu1 %v842_v21 }
 0x4db   :  { %6120 = vmatprep.subr.mxu1 %v7039_v14 }
 0x4dd   :  { %v920_v28 = vpop.permute.xlu1 %919 }
 0x4e0   :  { %v6937_v22 = vpop.eup %6936 }
 0x4e1   :  { %v756_v23 = vsel %vm263_vm2, %v6937_v22, 0.0 }
 0x4e2   :  { %757 = vadd.xlane.f32.xlu1 %v756_v23 }
 0x4e4   :  { %v6939_v24 = vpop.eup %6938 }
 0x4e5   :  { %v753_v25 = vsel %vm263_vm2, %v6939_v24, 0.0 }
 0x4e6   :  { %754 = vadd.xlane.f32.xlu0 %v753_v25 }
 0x4f3   :  { %917 = vrot.lane.b32.xlu1 %v7190_v30, %s7045_s19 }
 0x4fc   :  { %997 = vrot.lane.b32.xlu0 %v7184_v27, %s7044_s18  ;;  %s7050_s18 = smov 24  }
 0x500   :  { %995 = vrot.lane.b32.xlu0 %v7199_v33, %s7045_s19 }
 0x56f   :  { %v758_v29 = vpop.xlane.xlu1 %757 }
 0x570   :  { %6940 = vrcp.f32 %v758_v29 }
 0x573   :  { %v755_v31 = vpop.xlane.xlu0 %754  ;;  %v918_v39 = vpop.permute.xlu1 %917 }
 0x574   :  { %6942 = vrcp.f32 %v755_v31 }
 0x577   :  { %v998_v34 = vpop.permute.xlu0 %997 }
 0x57a   :  { %v6941_v32 = vpop.eup %6940 }
 0x57b   :  { %v762_v35 = vmul.f32 %v6941_v32, %v6937_v22  ;;  %v996_v38 = vpop.permute.xlu0 %995 }
 0x57d   :  { %6113 = vmatmul.mubr.msk.f32.vlgmr.msra.gmra.mrb[10].mxu1 %vm263_vm2, %v762_v35 }
 0x57e   :  { %v6943_v36 = vpop.eup %6942  ;;  %6121 = vmatpush3.xpose.msk.msra.mxu1 %vm263_vm2, %v998_v34  ;;  %6122 = vmatprep.mubr.msk.f32.mxu1 %vm7040_vm1, %v7039_v14 }
 0x57f   :  { %v761_v37 = vmul.f32 %v6943_v36, %v6939_v24  ;;  %6130 = vmatprep.subr.mxu1 %v7039_v14 }
 0x581   :  { %6108 = vmatmul.mubr.msk.f32.vlgmr.msra.gmra.mrb[6].mxu0 %vm263_vm2, %v761_v37  ;;  %6123 = vmatmul.mubr.msk.f32.vlgmr.msra.gmra.mrb[12].mxu1 %vm263_vm2, %v996_v38 }
 0x582   :  { %6116 = vmatpush3.xpose.msk.msra.mxu0 %vm263_vm2, %v920_v28  ;;  %6117 = vmatprep.mubr.msk.f32.mxu0 %vm7040_vm1, %v7039_v14 }
 0x583   :  { %6125 = vmatprep.subr.mxu0 %v7039_v14  ;;  %6132 = vmatprep.mubr.msk.f32.mxu1 %vm7040_vm1, %v7039_v14 }
 0x585   :  { %6118 = vmatmul.mubr.msk.f32.vlgmr.msra.gmra.mrb[8].mxu0 %vm263_vm2, %v918_v39 }
 0x586   :  { %6127 = vmatprep.mubr.msk.f32.mxu0 %vm7040_vm1, %v7039_v14 }
 0x650   :  { %v7277_v40 = vpop.f32.mrb[10].mxu1 }
 0x651   :  { %v6114_v41 = vpop.f32.mrb[11].mxu1 }
 0x654   :  { %v7279_v42 = vpop.f32.mrb[6].mxu0  ;;  %v1069_v43 = vpop.f32.mrb[12].mxu1 }
 0x655   :  { %v6109_v44 = vpop.f32.mrb[7].mxu0  ;;  %v6124_v45 = vpop.f32.mrb[13].mxu1  ;;  %v1076_v46 = vsel %vm263_vm2, %v1069_v43, -inf }
 0x656   :  { %1077 = vmax.xlane.f32.xlu0 %v1076_v46  ;;  %v1611_v46 = vld [vmem:[%s7992_s7 + $0x10] sm:$0xff] }
 0x658   :  { %v991_v49 = vpop.f32.mrb[8].mxu0 }
 0x659   :  { %v6119_v50 = vpop.f32.mrb[9].mxu0  ;;  %v1073_v51 = vsel %vm263_vm2, %v991_v49, -inf }
 0x65a   :  { %1074 = vmax.xlane.f32.xlu1 %v1073_v51 }
 0x66b   :  { %1171 = vrot.lane.b32.xlu1 %v7214_v48, %s7045_s19 }
 0x66c   :  { %1095 = vrot.lane.b32.xlu0 %v7212_v47, %s7045_s19 }
 0x66f   :  { %1249 = vrot.lane.b32.xlu1 %v7180_v26, %s7046_s20 }
 0x6e3   :  { %v1078_v52 = vpop.xlane.xlu0 %1077 }
 0x6e4   :  { %v1080_v53 = vsub.f32 %v1069_v43, %v1078_v52 }
 0x6e6   :  { %v1083_v54 = vmul.f32 1.442695, %v1080_v53 }
 0x6e7   :  { %v1096_v55 = vpop.permute.xlu0 %1095  ;;  %v1075_v56 = vpop.xlane.xlu1 %1074 }
 0x6e8   :  { %6944 = vpow2.f32 %v1083_v54  ;;  %v1079_v57 = vsub.f32 %v991_v49, %v1075_v56  ;;  %6126 = vmatpush3.msra.mxu0 %v1096_v55  ;;  %v1612_v49 = vld [vmem:[%s7992_s7 + $0x18] sm:$0xff] }
 0x6e9   :  { %6135 = vmatprep.subr.mxu0 %v7039_v14  ;;  %v6540_v50 = vpack.c.bf16 %v1612_v49, %v1611_v46 }
 0x6ea   :  { %v1081_v58 = vmul.f32 1.442695, %v1079_v57 }
 0x6eb   :  { %v1172_v59 = vpop.permute.xlu1 %1171 }
 0x6ec   :  { %6946 = vpow2.f32 %v1081_v58  ;;  %6131 = vmatpush3.msra.mxu1 %v1172_v59 }
 0x6ed   :  { %6140 = vmatprep.subr.mxu1 %v7039_v14 }
 0x6ef   :  { %v1250_v0 = vpop.permute.xlu1 %1249 }
 0x6f2   :  { %v6945_v60 = vpop.eup %6944 }
 0x6f3   :  { %v1088_v61 = vsel %vm263_vm2, %v6945_v60, 0.0 }
 0x6f4   :  { %1089 = vadd.xlane.f32.xlu1 %v1088_v61 }
 0x6f6   :  { %v6947_v26 = vpop.eup %6946 }
 0x6f7   :  { %v1085_v62 = vsel %vm263_vm2, %v6947_v26, 0.0 }
 0x6f8   :  { %1086 = vadd.xlane.f32.xlu0 %v1085_v62 }
 0x705   :  { %1247 = vrot.lane.b32.xlu1 %v7190_v30, %s7047_s21 }
 0x70e   :  { %1327 = vrot.lane.b32.xlu0 %v7184_v27, %s7046_s20 }
 0x712   :  { %1325 = vrot.lane.b32.xlu0 %v7199_v33, %s7047_s21 }
 0x781   :  { %v1090_v2 = vpop.xlane.xlu1 %1089 }
 0x782   :  { %6948 = vrcp.f32 %v1090_v2 }
 0x785   :  { %v1087_v3 = vpop.xlane.xlu0 %1086  ;;  %v1248_v33 = vpop.permute.xlu1 %1247 }
 0x786   :  { %6950 = vrcp.f32 %v1087_v3 }
 0x789   :  { %v1328_v6 = vpop.permute.xlu0 %1327 }
 0x78c   :  { %v6949_v4 = vpop.eup %6948 }
 0x78d   :  { %v1094_v7 = vmul.f32 %v6949_v4, %v6945_v60  ;;  %v1326_v30 = vpop.permute.xlu0 %1325 }
 0x78f   :  { %6133 = vmatmul.mubr.msk.f32.vlgmr.msra.gmra.mrb[14].mxu1 %vm263_vm2, %v1094_v7 }
 0x790   :  { %v6951_v9 = vpop.eup %6950  ;;  %6141 = vmatpush3.xpose.msk.msra.mxu1 %vm263_vm2, %v1328_v6  ;;  %6142 = vmatprep.mubr.msk.f32.mxu1 %vm7040_vm1, %v7039_v14 }
 0x791   :  { %v1093_v27 = vmul.f32 %v6951_v9, %v6947_v26  ;;  %6150 = vmatprep.subr.mxu1 %v7039_v14 }
 0x793   :  { %6128 = vmatmul.mubr.msk.f32.vlgmr.msra.gmra.mrb[10].mxu0 %vm263_vm2, %v1093_v27  ;;  %6143 = vmatmul.mubr.msk.f32.vlgmr.msra.gmra.mrb[16].mxu1 %vm263_vm2, %v1326_v30 }
 0x794   :  { %6136 = vmatpush3.xpose.msk.msra.mxu0 %vm263_vm2, %v1250_v0  ;;  %6137 = vmatprep.mubr.msk.f32.mxu0 %vm7040_vm1, %v7039_v14 }
 0x795   :  { %6145 = vmatprep.subr.mxu0 %v7039_v14  ;;  %6152 = vmatprep.mubr.msk.f32.mxu1 %vm7040_vm1, %v7039_v14 }
 0x797   :  { %6138 = vmatmul.mubr.msk.f32.vlgmr.msra.gmra.mrb[12].mxu0 %vm263_vm2, %v1248_v33 }
 0x798   :  { %6147 = vmatprep.mubr.msk.f32.mxu0 %vm7040_vm1, %v7039_v14 }
 0x862   :  { %v1243_v10 = vpop.f32.mrb[14].mxu1 }
 0x863   :  { %v6134_v13 = vpop.f32.mrb[15].mxu1 }
 0x866   :  { %v1167_v15 = vpop.f32.mrb[10].mxu0  ;;  %v1399_v16 = vpop.f32.mrb[16].mxu1 }
 0x867   :  { %v6129_v17 = vpop.f32.mrb[11].mxu0  ;;  %v6144_v18 = vpop.f32.mrb[17].mxu1  ;;  %v1406_v19 = vsel %vm263_vm2, %v1399_v16, -inf }
 0x868   :  { %1407 = vmax.xlane.f32.xlu0 %v1406_v19 }
 0x86a   :  { %v1321_v20 = vpop.f32.mrb[12].mxu0 }
 0x86b   :  { %v6139_v21 = vpop.f32.mrb[13].mxu0  ;;  %v1403_v22 = vsel %vm263_vm2, %v1321_v20, -inf }
 0x86c   :  { %1404 = vmax.xlane.f32.xlu1 %v1403_v22  ;;  %v5711_v21 = vld [vmem:[%s7988_s5 + $0x30] sm:$0xff]  ;;  %v5712_v22 = vld [vmem:[%s7988_s5 + $0x38] sm:$0xff] }
 0x8f5   :  { %v1408_v23 = vpop.xlane.xlu0 %1407 }
 0x8f6   :  { %v1410_v24 = vsub.f32 %v1399_v16, %v1408_v23  ;;  %v6773_v23 = vpack.i.bf16 %v5712_v22, %v5711_v21 }
 0x8f8   :  { %v1413_v25 = vmul.f32 1.442695, %v1410_v24  ;;  %v5709_v24 = vld [vmem:[%s7988_s5 + $0x20] sm:$0xff] }
 0x8f9   :  { %v1405_v28 = vpop.xlane.xlu1 %1404 }
 0x8fa   :  { %6952 = vpow2.f32 %v1413_v25  ;;  %v1409_v29 = vsub.f32 %v1321_v20, %v1405_v28  ;;  %v5710_v25 = vld [vmem:[%s7988_s5 + $0x28] sm:$0xff] }
 0x8fb   :  { %v6768_v28 = vpack.i.bf16 %v5710_v25, %v5709_v24 }
 0x8fc   :  { %v1411_v31 = vmul.f32 1.442695, %v1409_v29  ;;  %v7387_v29 = vld [vmem:[%s7994_s2] sm:$0xff] }
 0x8fe   :  { %6954 = vpow2.f32 %v1411_v31  ;;  %v7392_v31 = vld [vmem:[%s7995_s3] sm:$0xff] }
 0x904   :  { %v6953_v32 = vpop.eup %6952 }
 0x905   :  { %v1418_v34 = vsel %vm263_vm2, %v6953_v32, 0.0 }
 0x906   :  { %1419 = vadd.xlane.f32.xlu1 %v1418_v34  ;;  %v6544_v34 = vpack.c.bf16 %v5710_v25, %v5709_v24 }
 0x908   :  { %v6955_v35 = vpop.eup %6954 }
 0x909   :  { %v1415_v36 = vsel %vm263_vm2, %v6955_v35, 0.0 }
 0x90a   :  { %1416 = vadd.xlane.f32.xlu0 %v1415_v36  ;;  %v7402_v36 = vld [vmem:[%s7991_s6 + $0x1] ss:$0 sm:$0xff] }
 0x917   :  { %1501 = vrot.lane.b32.xlu1 %v7214_v48, %s7047_s21 }
 0x91b   :  { %1579 = vrot.lane.b32.xlu1 %v7279_v42, %s7048_s22 }
 0x91f   :  { %1587 = vrot.lane.b32.xlu1 %v1167_v15, %s7049_s23 }
 0x920   :  { %1425 = vrot.lane.b32.xlu0 %v7212_v47, %s7047_s21  ;;  %v1609_v47 = vld [vmem:[%s7992_s7] sm:$0xff] }
 0x924   :  { %1581 = vrot.lane.b32.xlu0 %v7277_v40, %s7048_s22  ;;  %v1610_v40 = vld [vmem:[%s7992_s7 + $0x8] sm:$0xff] }
 0x925   :  { %v6536_v45 = vpack.c.bf16 %v1610_v40, %v1609_v47 }
 0x928   :  { %1589 = vrot.lane.b32.xlu0 %v1243_v10, %s7049_s23 }
 0x993   :  { %v1420_v37 = vpop.xlane.xlu1 %1419 }
 0x994   :  { %6956 = vrcp.f32 %v1420_v37 }
 0x997   :  { %v1417_v38 = vpop.xlane.xlu0 %1416  ;;  %v1502_v39 = vpop.permute.xlu1 %1501 }
 0x998   :  { %6958 = vrcp.f32 %v1417_v38  ;;  %6151 = vmatpush3.msra.mxu1 %v1502_v39 }
 0x999   :  { %6545 = vmatprep.subr.bf16.mxu1 %v6544_v34 }
 0x99b   :  { %v1426_v48 = vpop.permute.xlu0 %1425  ;;  %v1580_v56 = vpop.permute.xlu1 %1579 }
 0x99c   :  { %6146 = vmatpush3.msra.mxu0 %v1426_v48  ;;  %v1601_v59 = vsel %vm263_vm2, %v7243_v1, %v1580_v56  ;;  %v5703_v1 = vld [vmem:[%s7993_s8] ss:$0 sm:$0xff] }
 0x99d   :  { %6537 = vmatprep.subr.bf16.mxu0 %v6536_v45 }
 0x99e   :  { %v6957_v41 = vpop.eup %6956 }
 0x99f   :  { %v1424_v42 = vmul.f32 %v6957_v41, %v6953_v32  ;;  %v1582_v55 = vpop.permute.xlu0 %1581  ;;  %v1588_v58 = vpop.permute.xlu1 %1587  ;;  %v1751_v32 = vadd.f32 %v7392_v31, %v7387_v29 }
 0x9a0   :  { %v1602_v61 = vsel %vm263_vm2, %v7241_v63, %v1582_v55  ;;  %v1604_v26 = vsel %vm1603_vm3, %v1601_v59, %v1588_v58  ;;  %v54_v59 = vld [vmem:[%s7994_s2 + $0x18] sm:$0xff] }
 0x9a1   :  { %6153 = vmatmul.mubr.msk.f32.vlgmr.msra.gmra.mrb[18].mxu1 %vm263_vm2, %v1424_v42 }
 0x9a2   :  { %v6959_v43 = vpop.eup %6958  ;;  %6547 = vmatpush3.bf16.msra.mxu1 %v6544_v34 }
 0x9a3   :  { %v1423_v44 = vmul.f32 %v6959_v43, %v6955_v35  ;;  %v1590_v57 = vpop.permute.xlu0 %1589  ;;  %v6548_v35 = vpack.c.bf16 %v5712_v22, %v5711_v21 }
 0x9a4   :  { %v1605_v0 = vsel %vm1603_vm3, %v1602_v61, %v1590_v57  ;;  %v5706_v61 = vld [vmem:[%s7996_s13] ss:$0 sm:$0xff] }
 0x9a5   :  { %6148 = vmatmul.mubr.msk.f32.vlgmr.msra.gmra.mrb[14].mxu0 %vm263_vm2, %v1423_v44  ;;  %6549 = vmatprep.subr.bf16.mxu1 %v6548_v35 }
 0x9a6   :  { %6539 = vmatpush3.bf16.msra.mxu0 %v6536_v45  ;;  %6551 = vmatpush3.bf16.msra.mxu1 %v6548_v35 }
 0x9a7   :  { %6541 = vmatprep.subr.bf16.mxu0 %v6540_v50 }
 0x9aa   :  { %6543 = vmatpush3.bf16.msra.mxu0 %v6540_v50 }
 0xa74   :  { %v1573_v51 = vpop.f32.mrb[18].mxu1 }
 0xa75   :  { %1597 = vrot.lane.b32.xlu0 %v1573_v51, %s7050_s18  ;;  %v6154_v52 = vpop.f32.mrb[19].mxu1  ;;  %v52_v51 = vld [vmem:[%s7994_s2 + $0x8] sm:$0xff] }
 0xa76   :  { %v7412_v52 = vld [vmem:[%s7995_s3 + $0x8] sm:$0xff] }
 0xa77   :  { %v1752_v55 = vadd.f32 %v7412_v52, %v52_v51 }
 0xa78   :  { %v1497_v53 = vpop.f32.mrb[14].mxu0 }
 0xa79   :  { %1595 = vrot.lane.b32.xlu1 %v1497_v53, %s7050_s18  ;;  %v6149_v54 = vpop.f32.mrb[15].mxu0  ;;  %v53_v53 = vld [vmem:[%s7994_s2 + $0x10] sm:$0xff] }
 0xa7a   :  { %v7420_v54 = vld [vmem:[%s7995_s3 + $0x10] sm:$0xff] }
 0xa7b   :  { %v1753_v58 = vadd.f32 %v7420_v54, %v53_v53 }
 0xae7   :  { %v1598_v60 = vpop.permute.xlu0 %1597 }
 0xae8   :  { %v1608_v3 = vsel %vm1606_vm4, %v1605_v0, %v1598_v60  ;;  %v7430_v60 = vld [vmem:[%s7995_s3 + $0x18] sm:$0xff] }
 0xaeb   :  { %v1596_v62 = vpop.permute.xlu1 %1595 }
 0xaec   :  { %v1607_v2 = vsel %vm1606_vm4, %v1604_v26, %v1596_v62 }
 0xaed   :  { %6163 = vmatprep.mubr.msk.f32.mxu0 %vm76_vm0, %v1607_v2 }
 0xaee   :  { %6164 = vmatmul.mubr.msk.f32.vlgmr.msra.gmra.mrb[16].mxu0 %vm76_vm0, %v1608_v3 }
 0xaef   :  { %6185 = vmatprep.mubr.msk.f32.mxu0 %vm76_vm0, %v1751_v32 }
 0xbc1   :  { %v6165_v4 = vpop.f32.mrb[16].mxu0 }
 0xbc2   :  { %v1698_v6 = vadd.f32 %v6165_v4, %v5703_v1  ;;  %v1692_v63 = vpop.f32.mrb[17].mxu0 }
 0xbc3   :  { %v1693_v7 = vadd.f32 %v5703_v1, %v1692_v63  ;;  %v5708_v1 = vld [vmem:[%s7996_s13 + $0x1] ss:$0 sm:$0xff]  ;;  %v1754_v63 = vadd.f32 %v7430_v60, %v54_v59 }
 0xbc4   :  { %v1702_v9 = vadd.f32 %v1698_v6, %v7155_v11 }
 0xbc5   :  { %v1701_v27 = vadd.f32 %v1693_v7, %v7142_v5 }
 0xbc6   :  { %v1706_v30 = vsel %vm76_vm0, %v1702_v9, 0.0 }
 0xbc7   :  { %1707 = vadd.xlane.f32.xlu0 %v1706_v30  ;;  %v1703_v33 = vsel %vm76_vm0, %v1701_v27, 0.0 }
 0xbc8   :  { %1704 = vadd.xlane.f32.xlu1 %v1703_v33 }
 0xc54   :  { %v1708_v10 = vpop.xlane.xlu0 %1707 }
 0xc55   :  { %v1711_v13 = vmul.f32 0.03125, %v1708_v10  ;;  %v1705_v15 = vpop.xlane.xlu1 %1704 }
 0xc56   :  { %v1710_v16 = vmul.f32 0.03125, %v1705_v15 }
 0xc57   :  { %v7360_v17 = vsub.f32 %v1702_v9, %v1711_v13 }
 0xc58   :  { %v7362_v18 = vsub.f32 %v1701_v27, %v1710_v16 }
 0xc59   :  { %v1715_v19 = vmul.f32 %v7360_v17, %v7360_v17 }
 0xc5a   :  { %v1714_v5 = vmul.f32 %v7362_v18, %v7362_v18 }
 0xc5b   :  { %v1719_v11 = vsel %vm76_vm0, %v1715_v19, 0.0 }
 0xc5c   :  { %1720 = vadd.xlane.f32.xlu1 %v1719_v11  ;;  %v1716_v20 = vsel %vm76_vm0, %v1714_v5, 0.0 }
 0xc5d   :  { %1717 = vadd.xlane.f32.xlu0 %v1716_v20 }
 0xc6d   :  { %6774 = vrot.lane.b32.xlu1 %v6773_v23, %s7041_s15 }
 0xc71   :  { %6779 = vrot.lane.b32.xlu1 %v6768_v28, %s7038_s25 }
 0xc73   :  { %6769 = vrot.lane.b32.xlu0 %v6768_v28, %s7041_s15 }
 0xc75   :  { %1865 = vrot.lane.b32.xlu1 %v7402_v36, %s7041_s15 }
 0xc77   :  { %6784 = vrot.lane.b32.xlu0 %v6773_v23, %s7038_s25 }
 0xce9   :  { %v1721_v37 = vpop.xlane.xlu1 %1720 }
 0xcea   :  { %v1723_v38 = vmul.f32 0.03125, %v1721_v37  ;;  %v1718_v39 = vpop.xlane.xlu0 %1717 }
 0xceb   :  { %v1722_v48 = vmul.f32 0.03125, %v1718_v39 }
 0xcec   :  { %v1725_v41 = vadd.f32 1e-05, %v1723_v38 }
 0xced   :  { %v1724_v42 = vadd.f32 1e-05, %v1722_v48  ;;  %v6775_v43 = vpop.permute.xlu1 %6774 }
 0xcee   :  { %6960 = vrsqrt.f32 %v1725_v41  ;;  %v6770_v44 = vpop.permute.xlu0 %6769  ;;  %v6777_v47 = vunpack.i.h.bf16 %v6775_v43  ;;  %v6776_v40 = vunpack.i.l.bf16 %v6775_v43 }
 0xcef   :  { %6962 = vrsqrt.f32 %v1724_v42  ;;  %v6772_v45 = vunpack.i.h.bf16 %v6770_v44  ;;  %v6771_v46 = vunpack.i.l.bf16 %v6770_v44 }
 0xcf0   :  { %v6556_v50 = vpack.c.bf16 %v6777_v47, %v6776_v40 }
 0xcf1   :  { %v6552_v49 = vpack.c.bf16 %v6772_v45, %v6771_v46  ;;  %v6780_v56 = vpop.permute.xlu1 %6779 }
 0xcf2   :  { %v6782_v26 = vunpack.i.h.bf16 %v6780_v56  ;;  %v6781_v62 = vunpack.i.l.bf16 %v6780_v56  ;;  %v6785_v6 = vpop.permute.xlu0 %6784 }
 0xcf3   :  { %6553 = vmatprep.subr.bf16.mxu0 %v6552_v49  ;;  %v6787_v30 = vunpack.i.h.bf16 %v6785_v6  ;;  %v6786_v33 = vunpack.i.l.bf16 %v6785_v6 }
 0xcf4   :  { %6555 = vmatpush3.bf16.msra.mxu0 %v6552_v49  ;;  %v6560_v4 = vpack.c.bf16 %v6782_v26, %v6781_v62 }
 0xcf5   :  { %6557 = vmatprep.subr.bf16.mxu0 %v6556_v50  ;;  %v6564_v16 = vpack.c.bf16 %v6787_v30, %v6786_v33 }
 0xcf6   :  { %6561 = vmatprep.subr.bf16.mxu1 %v6560_v4 }
 0xcf8   :  { %v6961_v57 = vpop.eup %6960  ;;  %6559 = vmatpush3.bf16.msra.mxu0 %v6556_v50 }
 0xcf9   :  { %v6963_v0 = vpop.eup %6962  ;;  %v1729_v2 = vmul.f32 %v6961_v57, %v7360_v17 }
 0xcfa   :  { %v1728_v3 = vmul.f32 %v6963_v0, %v7362_v18 }
 0xcfb   :  { %6186 = vmatmul.mubr.msk.f32.vlgmr.msra.gmra.mrb[18].mxu0 %vm76_vm0, %v1752_v55  ;;  %v1738_v7 = vmul.f32 %v5706_v61, %v1729_v2 }
 0xcfc   :  { %6188 = vmatprep.mubr.msk.f32.mxu0 %vm76_vm0, %v1753_v58  ;;  %v1737_v9 = vmul.f32 %v5706_v61, %v1728_v3 }
 0xcfd   :  { %v7443_v27 = vadd.f32 %v5708_v1, %v1738_v7 }
 0xcfe   :  { %v7445_v10 = vadd.f32 %v5708_v1, %v1737_v9 }
 0xcff   :  { %6189 = vmatmul.mubr.msk.f32.gmra.mrb[20].mxu0 %vm76_vm0, %v1754_v63  ;;  %v1750_v15 = vadd.f32 %v7443_v27, %v7160_v12  ;;  %v1866_v12 = vpop.permute.xlu1 %1865 }
 0xd00   :  { %v1749_v13 = vadd.f32 %v7445_v10, %v7147_v8  ;;  %6209 = vmatprep.mubr.msk.f32.mxu0 %vm7040_vm1, %v7039_v14  ;;  %v7051_v8 = vmov 0.0|0.0  }
 0xd01   :  { %6568 = vmatprep.subr.bf16.mxu0 %v7051_v8 }
 0xd02   :  { %6174 = vmatprep.mubr.msk.f32.mxu1 %vm76_vm0, %v1749_v13 }
 0xd03   :  { %6175 = vmatmul.mubr.msk.f32.vlgmr.msra.gmra.mrb[20].mxu1 %vm76_vm0, %v1750_v15 }
 0xd04   :  { %6563 = vmatpush3.bf16.msra.mxu1 %v6560_v4  ;;  %6199 = vmatprep.mubr.msk.f32.mxu1 %vm76_vm0, %v7387_v29 }
 0xd05   :  { %6565 = vmatprep.subr.bf16.mxu1 %v6564_v16 }
 0xd08   :  { %6567 = vmatpush3.bf16.msra.mxu1 %v6564_v16 }
 0xd09   :  { %6572 = vmatprep.subr.bf16.mxu1 %v7051_v8 }
 0xd0b   :  { %6200 = vmatmul.mubr.msk.f32.vlgmr.msra.gmra.mrb[22].mxu1 %vm76_vm0, %v52_v51 }
 0xd0c   :  { %6202 = vmatprep.mubr.msk.f32.mxu1 %vm76_vm0, %v53_v53 }
 0xd0f   :  { %6203 = vmatmul.mubr.msk.f32.gmra.mrb[24].mxu1 %vm76_vm0, %v54_v59 }
 0xd10   :  { %6216 = vmatprep.mubr.msk.f32.mxu1 %vm7040_vm1, %v7039_v14 }
 0xdce   :  { %v6187_v17 = vpop.f32.mrb[18].mxu0 }
 0xdcf   :  { %v1952_v18 = vadd.f32 %v6187_v17, %v1866_v12  ;;  %v1946_v19 = vpop.f32.mrb[19].mxu0 }
 0xdd0   :  { %v1947_v5 = vadd.f32 %v1946_v19, %v1866_v12 }
 0xdd2   :  { %v6569_v20 = vpack.c.bf16 %v1952_v18, %v1947_v5  ;;  %v6190_v21 = vpop.f32.mrb[20].mxu0  ;;  %v7471_v22 = vpack.i.bf16 %v1952_v18, %v1947_v5 }
 0xdd3   :  { %v1962_v23 = vadd.f32 %v6190_v21, %v1866_v12  ;;  %v1956_v24 = vpop.f32.mrb[21].mxu0 }
 0xdd4   :  { %v1957_v25 = vadd.f32 %v1956_v24, %v1866_v12  ;;  %6571 = vmatpush3.bf16.xpose.msk.msra.mxu0 %vm7467_vm5, %v6569_v20 }
 0xdd5   :  { %6576 = vmatprep.subr.bf16.mxu0 %v7051_v8 }
 0xdd6   :  { %v6573_v28 = vpack.c.bf16 %v1962_v23, %v1957_v25  ;;  %v6176_v29 = vpop.f32.mrb[20].mxu1  ;;  %v7476_v32 = vpack.i.bf16 %v1962_v23, %v1957_v25 }
 0xdd7   :  { %v1840_v34 = vpop.f32.mrb[21].mxu1  ;;  %v1846_v37 = vadd.f32 %v6176_v29, %v7402_v36 }
 0xdd8   :  { %v1841_v35 = vadd.f32 %v7402_v36, %v1840_v34  ;;  %6575 = vmatpush3.bf16.xpose.msk.msra.mxu1 %vm7467_vm5, %v6573_v28 }
 0xdd9   :  { %6579 = vmatprep.subr.bf16.mxu1 %v7051_v8  ;;  %v7487_v39 = vmul.f32 0.35355338, %v1846_v37 }
 0xdda   :  { %v7483_v38 = vmul.f32 0.35355338, %v1841_v35 }
 0xddc   :  { %6210 = vmatmul.mubr.msk.f32.vlgmr.msra.gmra.mrb[22].mxu0 %vm263_vm2, %v7483_v38 }
 0xddd   :  { %6223 = vmatprep.mubr.msk.f32.mxu0 %vm7040_vm1, %v7039_v14 }
 0xdde   :  { %v6201_v48 = vpop.f32.mrb[22].mxu1 }
 0xddf   :  { %6217 = vmatmul.mubr.msk.f32.vlgmr.msra.gmra.mrb[26].mxu1 %vm263_vm2, %v7487_v39  ;;  %v2058_v41 = vpop.f32.mrb[23].mxu1 }
 0xde0   :  { %6230 = vmatprep.mubr.msk.f32.mxu1 %vm7040_vm1, %v7039_v14 }
 0xde2   :  { %v6204_v42 = vpop.f32.mrb[24].mxu1 }
 0xde3   :  { %v2068_v43 = vpop.f32.mrb[25].mxu1 }
 0xeaf   :  { %v2154_v44 = vpop.f32.mrb[22].mxu0 }
 0xeb0   :  { %v6211_v47 = vpop.f32.mrb[23].mxu0  ;;  %v2237_v40 = vsel %vm1603_vm3, %v2154_v44, -inf }
 0xeb1   :  { %2238 = vmax.xlane.f32.xlu0 %v2237_v40 }
 0xeb2   :  { %v2233_v45 = vpop.f32.mrb[26].mxu1 }
 0xeb3   :  { %v6218_v46 = vpop.f32.mrb[27].mxu1  ;;  %v2240_v49 = vsel %vm1603_vm3, %v2233_v45, -inf }
 0xeb4   :  { %2241 = vmax.xlane.f32.xlu1 %v2240_v49 }
 0xec5   :  { %1977 = vrot.lane.b32.xlu1 %v7402_v36, %s7038_s25 }
 0xec9   :  { %6794 = vrot.lane.b32.xlu1 %v7476_v32, %s7043_s17 }
 0xecd   :  { %2405 = vrot.lane.b32.xlu1 %v7483_v38, %s7043_s17 }
 0xf3e   :  { %v2239_v50 = vpop.xlane.xlu0 %2238 }
 0xf3f   :  { %v2243_v51 = vsub.f32 %v2154_v44, %v2239_v50 }
 0xf41   :  { %v2242_v53 = vpop.xlane.xlu1 %2241  ;;  %v2245_v56 = vmul.f32 1.442695, %v2243_v51 }
 0xf42   :  { %v2244_v55 = vsub.f32 %v2233_v45, %v2242_v53 }
 0xf44   :  { %v2247_v57 = vmul.f32 1.442695, %v2244_v55 }
 0xf45   :  { %v1978_v58 = vpop.permute.xlu1 %1977 }
 0xf46   :  { %6964 = vpow2.f32 %v2247_v57  ;;  %v2059_v59 = vadd.f32 %v2058_v41, %v1978_v58  ;;  %v2064_v61 = vadd.f32 %v6201_v48, %v1978_v58  ;;  %v2069_v26 = vadd.f32 %v2068_v43, %v1978_v58 }
 0xf47   :  { %6966 = vpow2.f32 %v2245_v56  ;;  %v2074_v62 = vadd.f32 %v6204_v42, %v1978_v58 }
 0xf48   :  { %v6577_v36 = vpack.c.bf16 %v2064_v61, %v2059_v59  ;;  %v7503_v0 = vpack.i.bf16 %v2064_v61, %v2059_v59 }
 0xf49   :  { %v6580_v2 = vpack.c.bf16 %v2074_v62, %v2069_v26  ;;  %v7505_v3 = vpack.i.bf16 %v2074_v62, %v2069_v26  ;;  %v6795_v30 = vpop.permute.xlu1 %6794 }
 0xf4a   :  { %6578 = vmatpush3.bf16.msra.mxu0 %v6577_v36  ;;  %v6797_v33 = vunpack.i.h.bf16 %v6795_v30  ;;  %v6796_v13 = vunpack.i.l.bf16 %v6795_v30 }
 0xf4b   :  { %6581 = vmatpush3.bf16.msra.mxu1 %v6580_v2  ;;  %6582 = vmatprep.subr.bf16.mxu0 %v7051_v8 }
 0xf4c   :  { %6586 = vmatprep.subr.bf16.mxu1 %v7051_v8  ;;  %v6587_v17 = vpack.c.bf16 %v6797_v33, %v6796_v13 }
 0xf4d   :  { %v2406_v24 = vpop.permute.xlu1 %2405 }
 0xf50   :  { %v6965_v1 = vpop.eup %6964 }
 0xf51   :  { %v6967_v4 = vpop.eup %6966  ;;  %v2252_v6 = vsel %vm1603_vm3, %v6965_v1, 0.0 }
 0xf52   :  { %2253 = vadd.xlane.f32.xlu0 %v2252_v6  ;;  %v2249_v63 = vsel %vm1603_vm3, %v6967_v4, 0.0 }
 0xf56   :  { %2250 = vadd.xlane.f32.xlu0 %v2249_v63 }
 0xf6c   :  { %6789 = vrot.lane.b32.xlu0 %v7471_v22, %s7043_s17 }
 0xf70   :  { %2487 = vrot.lane.b32.xlu0 %v7487_v39, %s7043_s17 }
 0xfdf   :  { %v2254_v7 = vpop.xlane.xlu0 %2253 }
 0xfe0   :  { %6968 = vrcp.f32 %v2254_v7 }
 0xfe3   :  { %v2251_v9 = vpop.xlane.xlu0 %2250 }
 0xfe4   :  { %6970 = vrcp.f32 %v2251_v9 }
 0xfe7   :  { %v6790_v15 = vpop.permute.xlu0 %6789 }
 0xfe8   :  { %v6792_v18 = vunpack.i.h.bf16 %v6790_v15  ;;  %v6791_v19 = vunpack.i.l.bf16 %v6790_v15 }
 0xfea   :  { %v6969_v16 = vpop.eup %6968  ;;  %v6583_v21 = vpack.c.bf16 %v6792_v18, %v6791_v19 }
 0xfeb   :  { %v2258_v12 = vmul.f32 %v6969_v16, %v6965_v1  ;;  %v2488_v23 = vpop.permute.xlu0 %2487 }
 0xfed   :  { %6231 = vmatmul.mubr.msk.f32.vlgmr.msra.gmra.mrb[28].mxu1 %vm1603_vm3, %v2258_v12 }
 0xfee   :  { %v6971_v5 = vpop.eup %6970  ;;  %6589 = vmatpush3.bf16.xpose.msk.msra.mxu1 %vm7467_vm5, %v6587_v17  ;;  %6244 = vmatprep.mubr.msk.f32.mxu1 %vm7040_vm1, %v7039_v14 }
 0xfef   :  { %v2257_v20 = vmul.f32 %v6971_v5, %v6967_v4  ;;  %6593 = vmatprep.subr.bf16.mxu1 %v7051_v8 }
 0xff1   :  { %6224 = vmatmul.mubr.msk.f32.vlgmr.msra.gmra.mrb[24].mxu0 %vm1603_vm3, %v2257_v20 }
 0xff2   :  { %6585 = vmatpush3.bf16.xpose.msk.msra.mxu0 %vm7467_vm5, %v6583_v21  ;;  %6237 = vmatprep.mubr.msk.f32.mxu0 %vm7040_vm1, %v7039_v14 }
 0xff3   :  { %6590 = vmatprep.subr.bf16.mxu0 %v7051_v8 }
 0xff5   :  { %6245 = vmatmul.mubr.msk.f32.vlgmr.msra.gmra.mrb[30].mxu1 %vm263_vm2, %v2488_v23 }
 0xff6   :  { %6258 = vmatprep.mubr.msk.f32.mxu1 %vm7040_vm1, %v7039_v14 }
 0xff9   :  { %6238 = vmatmul.mubr.msk.f32.vlgmr.msra.gmra.mrb[26].mxu0 %vm263_vm2, %v2406_v24 }
 0xffa   :  { %6251 = vmatprep.mubr.msk.f32.mxu0 %vm7040_vm1, %v7039_v14 }
0x10c0   :  { %v7533_v25 = vpop.f32.mrb[28].mxu1 }
0x10c1   :  { %v6232_v28 = vpop.f32.mrb[29].mxu1 }
0x10c4   :  { %v7535_v29 = vpop.f32.mrb[24].mxu0 }
0x10c5   :  { %v6225_v34 = vpop.f32.mrb[25].mxu0 }
0x10c8   :  { %v2565_v35 = vpop.f32.mrb[30].mxu1 }
0x10c9   :  { %v6246_v37 = vpop.f32.mrb[31].mxu1  ;;  %v2572_v48 = vsel %vm1603_vm3, %v2565_v35, -inf }
0x10ca   :  { %2573 = vmax.xlane.f32.xlu0 %v2572_v48 }
0x10cc   :  { %v2483_v41 = vpop.f32.mrb[26].mxu0 }
0x10cd   :  { %v6239_v42 = vpop.f32.mrb[27].mxu0  ;;  %v2569_v43 = vsel %vm1603_vm3, %v2483_v41, -inf }
0x10ce   :  { %2570 = vmax.xlane.f32.xlu1 %v2569_v43 }
0x10df   :  { %6804 = vrot.lane.b32.xlu1 %v7505_v3, %s7043_s17 }
0x10e0   :  { %6799 = vrot.lane.b32.xlu0 %v7503_v0, %s7043_s17 }
0x10e3   :  { %6809 = vrot.lane.b32.xlu1 %v7471_v22, %s7045_s19 }
0x1157   :  { %v2574_v44 = vpop.xlane.xlu0 %2573 }
0x1158   :  { %v2576_v47 = vsub.f32 %v2565_v35, %v2574_v44 }
0x115a   :  { %v2579_v40 = vmul.f32 1.442695, %v2576_v47 }
0x115b   :  { %v6800_v45 = vpop.permute.xlu0 %6799  ;;  %v2571_v46 = vpop.xlane.xlu1 %2570 }
0x115c   :  { %6972 = vpow2.f32 %v2579_v40  ;;  %v6802_v49 = vunpack.i.h.bf16 %v6800_v45  ;;  %v6801_v50 = vunpack.i.l.bf16 %v6800_v45  ;;  %v2575_v51 = vsub.f32 %v2483_v41, %v2571_v46 }
0x115e   :  { %v6591_v53 = vpack.c.bf16 %v6802_v49, %v6801_v50  ;;  %v2577_v55 = vmul.f32 1.442695, %v2575_v51 }
0x115f   :  { %v6805_v56 = vpop.permute.xlu1 %6804 }
0x1160   :  { %6974 = vpow2.f32 %v2577_v55  ;;  %v6807_v57 = vunpack.i.h.bf16 %v6805_v56  ;;  %v6806_v58 = vunpack.i.l.bf16 %v6805_v56  ;;  %6592 = vmatpush3.bf16.msra.mxu0 %v6591_v53 }
0x1161   :  { %6596 = vmatprep.subr.bf16.mxu0 %v7051_v8 }
0x1162   :  { %v6594_v59 = vpack.c.bf16 %v6807_v57, %v6806_v58 }
0x1163   :  { %v6810_v2 = vpop.permute.xlu1 %6809 }
0x1164   :  { %6595 = vmatpush3.bf16.msra.mxu1 %v6594_v59  ;;  %v6812_v13 = vunpack.i.h.bf16 %v6810_v2  ;;  %v6811_v15 = vunpack.i.l.bf16 %v6810_v2 }
0x1165   :  { %6600 = vmatprep.subr.bf16.mxu1 %v7051_v8 }
0x1166   :  { %v6973_v61 = vpop.eup %6972  ;;  %v6597_v17 = vpack.c.bf16 %v6812_v13, %v6811_v15 }
0x1167   :  { %v2584_v26 = vsel %vm1603_vm3, %v6973_v61, 0.0 }
0x1168   :  { %2585 = vadd.xlane.f32.xlu1 %v2584_v26 }
0x116a   :  { %v6975_v62 = vpop.eup %6974 }
0x116b   :  { %v2581_v36 = vsel %vm1603_vm3, %v6975_v62, 0.0 }
0x116c   :  { %2582 = vadd.xlane.f32.xlu0 %v2581_v36 }
0x1179   :  { %2753 = vrot.lane.b32.xlu1 %v7483_v38, %s7045_s19 }
0x1182   :  { %6814 = vrot.lane.b32.xlu0 %v7476_v32, %s7045_s19 }
0x1186   :  { %2835 = vrot.lane.b32.xlu0 %v7487_v39, %s7045_s19 }
0x11f5   :  { %v2586_v1 = vpop.xlane.xlu1 %2585 }
0x11f6   :  { %6976 = vrcp.f32 %v2586_v1 }
0x11f9   :  { %v2583_v4 = vpop.xlane.xlu0 %2582  ;;  %v2754_v19 = vpop.permute.xlu1 %2753 }
0x11fa   :  { %6978 = vrcp.f32 %v2583_v4 }
0x11fd   :  { %v6815_v6 = vpop.permute.xlu0 %6814 }
0x11fe   :  { %v6817_v63 = vunpack.i.h.bf16 %v6815_v6  ;;  %v6816_v7 = vunpack.i.l.bf16 %v6815_v6 }
0x1200   :  { %v6977_v9 = vpop.eup %6976  ;;  %v6601_v30 = vpack.c.bf16 %v6817_v63, %v6816_v7 }
0x1201   :  { %v2590_v33 = vmul.f32 %v6977_v9, %v6973_v61  ;;  %v2836_v18 = vpop.permute.xlu0 %2835 }
0x1203   :  { %6259 = vmatmul.mubr.msk.f32.vlgmr.msra.gmra.mrb[32].mxu1 %vm1603_vm3, %v2590_v33 }
0x1204   :  { %v6979_v16 = vpop.eup %6978  ;;  %6603 = vmatpush3.bf16.xpose.msk.msra.mxu1 %vm7467_vm5, %v6601_v30  ;;  %6272 = vmatprep.mubr.msk.f32.mxu1 %vm7040_vm1, %v7039_v14 }
0x1205   :  { %v2589_v12 = vmul.f32 %v6979_v16, %v6975_v62  ;;  %6607 = vmatprep.subr.bf16.mxu1 %v7051_v8 }
0x1207   :  { %6252 = vmatmul.mubr.msk.f32.vlgmr.msra.gmra.mrb[28].mxu0 %vm1603_vm3, %v2589_v12 }
0x1208   :  { %6599 = vmatpush3.bf16.xpose.msk.msra.mxu0 %vm7467_vm5, %v6597_v17  ;;  %6265 = vmatprep.mubr.msk.f32.mxu0 %vm7040_vm1, %v7039_v14 }
0x1209   :  { %6604 = vmatprep.subr.bf16.mxu0 %v7051_v8 }
0x120b   :  { %6273 = vmatmul.mubr.msk.f32.vlgmr.msra.gmra.mrb[34].mxu1 %vm263_vm2, %v2836_v18 }
0x120c   :  { %6286 = vmatprep.mubr.msk.f32.mxu1 %vm7040_vm1, %v7039_v14 }
0x120f   :  { %6266 = vmatmul.mubr.msk.f32.vlgmr.msra.gmra.mrb[30].mxu0 %vm263_vm2, %v2754_v19 }
0x1210   :  { %6279 = vmatprep.mubr.msk.f32.mxu0 %vm7040_vm1, %v7039_v14 }
0x12d6   :  { %v7573_v5 = vpop.f32.mrb[32].mxu1 }
0x12d7   :  { %v6260_v20 = vpop.f32.mrb[33].mxu1 }
0x12da   :  { %v7575_v21 = vpop.f32.mrb[28].mxu0 }
0x12db   :  { %v6253_v23 = vpop.f32.mrb[29].mxu0 }
0x12de   :  { %v2913_v24 = vpop.f32.mrb[34].mxu1 }
0x12df   :  { %v6274_v28 = vpop.f32.mrb[35].mxu1  ;;  %v2920_v34 = vsel %vm1603_vm3, %v2913_v24, -inf }
0x12e0   :  { %2921 = vmax.xlane.f32.xlu0 %v2920_v34 }
0x12e2   :  { %v2831_v35 = vpop.f32.mrb[30].mxu0 }
0x12e3   :  { %v6267_v37 = vpop.f32.mrb[31].mxu0  ;;  %v2917_v48 = vsel %vm1603_vm3, %v2831_v35, -inf }
0x12e4   :  { %2918 = vmax.xlane.f32.xlu1 %v2917_v48 }
0x12f5   :  { %6824 = vrot.lane.b32.xlu1 %v7505_v3, %s7045_s19 }
0x12f6   :  { %6819 = vrot.lane.b32.xlu0 %v7503_v0, %s7045_s19 }
0x12f9   :  { %6829 = vrot.lane.b32.xlu1 %v7471_v22, %s7047_s21 }
0x136d   :  { %v2922_v41 = vpop.xlane.xlu0 %2921 }
0x136e   :  { %v2924_v42 = vsub.f32 %v2913_v24, %v2922_v41 }
0x1370   :  { %v2927_v43 = vmul.f32 1.442695, %v2924_v42 }
0x1371   :  { %v6820_v44 = vpop.permute.xlu0 %6819  ;;  %v2919_v47 = vpop.xlane.xlu1 %2918 }
0x1372   :  { %6980 = vpow2.f32 %v2927_v43  ;;  %v6822_v40 = vunpack.i.h.bf16 %v6820_v44  ;;  %v6821_v45 = vunpack.i.l.bf16 %v6820_v44  ;;  %v2923_v46 = vsub.f32 %v2831_v35, %v2919_v47 }
0x1374   :  { %v6605_v49 = vpack.c.bf16 %v6822_v40, %v6821_v45  ;;  %v2925_v50 = vmul.f32 1.442695, %v2923_v46 }
0x1375   :  { %v6825_v51 = vpop.permute.xlu1 %6824 }
0x1376   :  { %6982 = vpow2.f32 %v2925_v50  ;;  %v6827_v53 = vunpack.i.h.bf16 %v6825_v51  ;;  %v6826_v55 = vunpack.i.l.bf16 %v6825_v51  ;;  %6606 = vmatpush3.bf16.msra.mxu0 %v6605_v49 }
0x1377   :  { %6610 = vmatprep.subr.bf16.mxu0 %v7051_v8 }
0x1378   :  { %v6608_v56 = vpack.c.bf16 %v6827_v53, %v6826_v55 }
0x1379   :  { %v6830_v61 = vpop.permute.xlu1 %6829 }
0x137a   :  { %6609 = vmatpush3.bf16.msra.mxu1 %v6608_v56  ;;  %v6832_v7 = vunpack.i.h.bf16 %v6830_v61  ;;  %v6831_v9 = vunpack.i.l.bf16 %v6830_v61  ;;  %v5759_v61 = vld [vmem:[%s7992_s7 + $0x30] sm:$0xff] }
0x137b   :  { %6614 = vmatprep.subr.bf16.mxu1 %v7051_v8 }
0x137c   :  { %v6981_v22 = vpop.eup %6980 }
0x137d   :  { %v2932_v57 = vsel %vm1603_vm3, %v6981_v22, 0.0 }
0x137e   :  { %2933 = vadd.xlane.f32.xlu1 %v2932_v57  ;;  %v5757_v57 = vld [vmem:[%s7992_s7 + $0x20] sm:$0xff] }
0x1380   :  { %v6983_v58 = vpop.eup %6982 }
0x1381   :  { %v2929_v59 = vsel %vm1603_vm3, %v6983_v58, 0.0 }
0x1382   :  { %2930 = vadd.xlane.f32.xlu0 %v2929_v59 }
0x138f   :  { %3097 = vrot.lane.b32.xlu1 %v7483_v38, %s7047_s21 }
0x1398   :  { %6834 = vrot.lane.b32.xlu0 %v7476_v32, %s7047_s21 }
0x139c   :  { %3179 = vrot.lane.b32.xlu0 %v7487_v39, %s7047_s21  ;;  %v6611_v39 = vpack.c.bf16 %v6832_v7, %v6831_v9 }
0x140b   :  { %v2934_v26 = vpop.xlane.xlu1 %2933 }
0x140c   :  { %6984 = vrcp.f32 %v2934_v26  ;;  %v5760_v26 = vld [vmem:[%s7992_s7 + $0x38] sm:$0xff] }
0x140f   :  { %v2931_v62 = vpop.xlane.xlu0 %2930  ;;  %v3098_v33 = vpop.permute.xlu1 %3097 }
0x1410   :  { %6986 = vrcp.f32 %v2931_v62  ;;  %v6628_v62 = vpack.c.bf16 %v5760_v26, %v5759_v61 }
0x1413   :  { %v6835_v36 = vpop.permute.xlu0 %6834 }
0x1414   :  { %v6837_v2 = vunpack.i.h.bf16 %v6835_v36  ;;  %v6836_v1 = vunpack.i.l.bf16 %v6835_v36 }
0x1416   :  { %v6985_v4 = vpop.eup %6984  ;;  %v6615_v6 = vpack.c.bf16 %v6837_v2, %v6836_v1 }
0x1417   :  { %v2938_v63 = vmul.f32 %v6985_v4, %v6981_v22  ;;  %v3180_v30 = vpop.permute.xlu0 %3179 }
0x1419   :  { %6287 = vmatmul.mubr.msk.f32.vlgmr.msra.gmra.mrb[36].mxu1 %vm1603_vm3, %v2938_v63 }
0x141a   :  { %v6987_v38 = vpop.eup %6986  ;;  %6617 = vmatpush3.bf16.xpose.msk.msra.mxu1 %vm7467_vm5, %v6615_v6  ;;  %6300 = vmatprep.mubr.msk.f32.mxu1 %vm7040_vm1, %v7039_v14 }
0x141b   :  { %v2937_v32 = vmul.f32 %v6987_v38, %v6983_v58  ;;  %6621 = vmatprep.subr.bf16.mxu1 %v7051_v8  ;;  %v5758_v58 = vld [vmem:[%s7992_s7 + $0x28] sm:$0xff] }
0x141c   :  { %v6624_v59 = vpack.c.bf16 %v5758_v58, %v5757_v57 }
0x141d   :  { %6280 = vmatmul.mubr.msk.f32.vlgmr.msra.gmra.mrb[32].mxu0 %vm1603_vm3, %v2937_v32 }
0x141e   :  { %6613 = vmatpush3.bf16.xpose.msk.msra.mxu0 %vm7467_vm5, %v6611_v39  ;;  %6293 = vmatprep.mubr.msk.f32.mxu0 %vm7040_vm1, %v7039_v14 }
0x141f   :  { %6618 = vmatprep.subr.bf16.mxu0 %v7051_v8 }
0x1421   :  { %6301 = vmatmul.mubr.msk.f32.vlgmr.msra.gmra.mrb[38].mxu1 %vm263_vm2, %v3180_v30 }
0x1422   :  { %6314 = vmatprep.mubr.msk.f32.mxu1 %vm7040_vm1, %v7039_v14 }
0x1425   :  { %6294 = vmatmul.mubr.msk.f32.vlgmr.msra.gmra.mrb[34].mxu0 %vm263_vm2, %v3098_v33 }
0x1426   :  { %6307 = vmatprep.mubr.msk.f32.mxu0 %vm7040_vm1, %v7039_v14 }
0x14ec   :  { %v3093_v13 = vpop.f32.mrb[36].mxu1 }
0x14ed   :  { %v6288_v15 = vpop.f32.mrb[37].mxu1 }
0x14f0   :  { %v3014_v16 = vpop.f32.mrb[32].mxu0 }
0x14f1   :  { %v6281_v12 = vpop.f32.mrb[33].mxu0 }
0x14f4   :  { %v3257_v17 = vpop.f32.mrb[38].mxu1 }
0x14f5   :  { %v6302_v18 = vpop.f32.mrb[39].mxu1  ;;  %v3264_v19 = vsel %vm1603_vm3, %v3257_v17, -inf }
0x14f6   :  { %3265 = vmax.xlane.f32.xlu0 %v3264_v19 }
0x14f8   :  { %v3175_v20 = vpop.f32.mrb[34].mxu0 }
0x14f9   :  { %v6295_v23 = vpop.f32.mrb[35].mxu0  ;;  %v3261_v24 = vsel %vm1603_vm3, %v3175_v20, -inf }
0x14fa   :  { %3262 = vmax.xlane.f32.xlu1 %v3261_v24 }
0x1583   :  { %v3266_v28 = vpop.xlane.xlu0 %3265 }
0x1584   :  { %v3268_v34 = vsub.f32 %v3257_v17, %v3266_v28 }
0x1586   :  { %v3271_v35 = vmul.f32 1.442695, %v3268_v34 }
0x1587   :  { %v3263_v37 = vpop.xlane.xlu1 %3262 }
0x1588   :  { %6988 = vpow2.f32 %v3271_v35  ;;  %v3267_v48 = vsub.f32 %v3175_v20, %v3263_v37 }
0x158a   :  { %v3269_v41 = vmul.f32 1.442695, %v3267_v48 }
0x158c   :  { %6990 = vpow2.f32 %v3269_v41 }
0x1592   :  { %v6989_v42 = vpop.eup %6988 }
0x1593   :  { %v3276_v43 = vsel %vm1603_vm3, %v6989_v42, 0.0 }
0x1594   :  { %3277 = vadd.xlane.f32.xlu1 %v3276_v43 }
0x1596   :  { %v6991_v44 = vpop.eup %6990 }
0x1597   :  { %v3273_v47 = vsel %vm1603_vm3, %v6991_v44, 0.0 }
0x1598   :  { %3274 = vadd.xlane.f32.xlu0 %v3273_v47  ;;  %v5772_v47 = vld [vmem:[%s7988_s5 + $0x58] sm:$0xff] }
0x15a5   :  { %6844 = vrot.lane.b32.xlu1 %v7505_v3, %s7047_s21 }
0x15a9   :  { %3443 = vrot.lane.b32.xlu1 %v7575_v21, %s7048_s22 }
0x15ad   :  { %3451 = vrot.lane.b32.xlu1 %v3014_v16, %s7049_s23 }
0x15ae   :  { %6839 = vrot.lane.b32.xlu0 %v7503_v0, %s7047_s21 }
0x15b2   :  { %3445 = vrot.lane.b32.xlu0 %v7573_v5, %s7048_s22 }
0x15b6   :  { %3453 = vrot.lane.b32.xlu0 %v3093_v13, %s7049_s23 }
0x1621   :  { %v3278_v40 = vpop.xlane.xlu1 %3277 }
0x1622   :  { %6992 = vrcp.f32 %v3278_v40 }
0x1625   :  { %v3275_v45 = vpop.xlane.xlu0 %3274  ;;  %v6845_v46 = vpop.permute.xlu1 %6844 }
0x1626   :  { %6994 = vrcp.f32 %v3275_v45  ;;  %v6847_v49 = vunpack.i.h.bf16 %v6845_v46  ;;  %v6846_v3 = vunpack.i.l.bf16 %v6845_v46  ;;  %v5769_v45 = vld [vmem:[%s7988_s5 + $0x40] sm:$0xff]  ;;  %v5770_v46 = vld [vmem:[%s7988_s5 + $0x48] sm:$0xff] }
0x1628   :  { %v6622_v50 = vpack.c.bf16 %v6847_v49, %v6846_v3  ;;  %v6848_v49 = vpack.i.bf16 %v5770_v46, %v5769_v45  ;;  %v7679_v3 = vld [vmem:[%s7997_s1] sm:$0xff] }
0x1629   :  { %v6840_v51 = vpop.permute.xlu0 %6839  ;;  %v3444_v63 = vpop.permute.xlu1 %3443 }
0x162a   :  { %v6842_v21 = vunpack.i.h.bf16 %v6840_v51  ;;  %v6841_v53 = vunpack.i.l.bf16 %v6840_v51  ;;  %6623 = vmatpush3.bf16.msra.mxu1 %v6622_v50  ;;  %v3465_v38 = vsel %vm263_vm2, %v7535_v29, %v3444_v63  ;;  %v5762_v29 = vld [vmem:[%s7993_s8 + $0x1] ss:$0 sm:$0xff]  ;;  %v3615_v50 = vadd.f32 %v7679_v3, %v7392_v31 }
0x162b   :  { %v6632_v51 = vpack.c.bf16 %v5770_v46, %v5769_v45 }
0x162c   :  { %v6993_v55 = vpop.eup %6992  ;;  %v6619_v56 = vpack.c.bf16 %v6842_v21, %v6841_v53  ;;  %v7689_v53 = vld [vmem:[%s7991_s6 + $0x2] ss:$0 sm:$0xff] }
0x162d   :  { %v3282_v0 = vmul.f32 %v6993_v55, %v6989_v42  ;;  %v3446_v6 = vpop.permute.xlu0 %3445  ;;  %v3452_v9 = vpop.permute.xlu1 %3451  ;;  %6633 = vmatprep.subr.bf16.mxu1 %v6632_v51 }
0x162e   :  { %6620 = vmatpush3.bf16.msra.mxu0 %v6619_v56  ;;  %v3466_v39 = vsel %vm263_vm2, %v7533_v25, %v3446_v6  ;;  %v3467_v30 = vsel %vm1603_vm3, %v3465_v38, %v3452_v9  ;;  %v62_v38 = vld [vmem:[%s7997_s1 + $0x18] sm:$0xff] }
0x162f   :  { %6315 = vmatmul.mubr.msk.f32.vlgmr.msra.gmra.mrb[40].mxu1 %vm1603_vm3, %v3282_v0  ;;  %6625 = vmatprep.subr.bf16.mxu0 %v6624_v59 }
0x1630   :  { %v6995_v5 = vpop.eup %6994  ;;  %6635 = vmatpush3.bf16.msra.mxu1 %v6632_v51 }
0x1631   :  { %v3281_v22 = vmul.f32 %v6995_v5, %v6991_v44  ;;  %v3454_v7 = vpop.permute.xlu0 %3453 }
0x1632   :  { %v3468_v13 = vsel %vm1603_vm3, %v3466_v39, %v3454_v7 }
0x1633   :  { %6308 = vmatmul.mubr.msk.f32.vlgmr.msra.gmra.mrb[36].mxu0 %vm1603_vm3, %v3281_v22 }
0x1634   :  { %6627 = vmatpush3.bf16.msra.mxu0 %v6624_v59 }
0x1635   :  { %6629 = vmatprep.subr.bf16.mxu0 %v6628_v62 }
0x1638   :  { %6631 = vmatpush3.bf16.msra.mxu0 %v6628_v62 }
0x1702   :  { %v3437_v36 = vpop.f32.mrb[40].mxu1 }
0x1703   :  { %3461 = vrot.lane.b32.xlu0 %v3437_v36, %s7050_s18  ;;  %v6316_v2 = vpop.f32.mrb[41].mxu1 }
0x1706   :  { %v3358_v1 = vpop.f32.mrb[36].mxu0 }
0x1707   :  { %3459 = vrot.lane.b32.xlu1 %v3358_v1, %s7050_s18  ;;  %v6309_v4 = vpop.f32.mrb[37].mxu0  ;;  %v60_v1 = vld [vmem:[%s7997_s1 + $0x8] sm:$0xff] }
0x1708   :  { %v61_v4 = vld [vmem:[%s7997_s1 + $0x10] sm:$0xff]  ;;  %v3616_v6 = vadd.f32 %v60_v1, %v7412_v52 }
0x1709   :  { %v3617_v9 = vadd.f32 %v61_v4, %v7420_v54 }
0x1775   :  { %v3462_v32 = vpop.permute.xlu0 %3461 }
0x1776   :  { %v3470_v16 = vsel %vm1606_vm4, %v3468_v13, %v3462_v32  ;;  %v5766_v32 = vld [vmem:[%s7996_s13 + $0x2] ss:$0 sm:$0xff] }
0x1779   :  { %v3460_v33 = vpop.permute.xlu1 %3459 }
0x177a   :  { %v3469_v15 = vsel %vm1606_vm4, %v3467_v30, %v3460_v33 }
0x177b   :  { %6325 = vmatprep.mubr.msk.f32.mxu0 %vm76_vm0, %v3469_v15  ;;  %v5768_v15 = vld [vmem:[%s7996_s13 + $0x3] ss:$0 sm:$0xff] }
0x177c   :  { %6326 = vmatmul.mubr.msk.f32.vlgmr.msra.gmra.mrb[38].mxu0 %vm76_vm0, %v3470_v16 }
0x177d   :  { %6347 = vmatprep.mubr.msk.f32.mxu0 %vm76_vm0, %v3615_v50 }
0x184f   :  { %v6327_v12 = vpop.f32.mrb[38].mxu0 }
0x1850   :  { %v3562_v17 = vadd.f32 %v6327_v12, %v5762_v29  ;;  %v3556_v25 = vpop.f32.mrb[39].mxu0 }
0x1851   :  { %v3557_v18 = vadd.f32 %v5762_v29, %v3556_v25  ;;  %v3618_v29 = vadd.f32 %v62_v38, %v7430_v60  ;;  %v7037_v60 = vld [vmem:[%s7990_s4 + $0x8] sm:$0xff] }
0x1852   :  { %v3566_v19 = vadd.f32 %v3562_v17, %v7443_v27 }
0x1853   :  { %v3565_v20 = vadd.f32 %v3557_v18, %v7445_v10  ;;  %v5771_v10 = vld [vmem:[%s7988_s5 + $0x50] sm:$0xff] }
0x1854   :  { %v3570_v23 = vsel %vm76_vm0, %v3566_v19, 0.0  ;;  %v6853_v40 = vpack.i.bf16 %v5772_v47, %v5771_v10  ;;  %v6636_v21 = vpack.c.bf16 %v5772_v47, %v5771_v10 }
0x1855   :  { %3571 = vadd.xlane.f32.xlu0 %v3570_v23  ;;  %v3567_v24 = vsel %vm76_vm0, %v3565_v20, 0.0  ;;  %v7036_v23 = vld [vmem:[%s7990_s4] sm:$0xff] }
0x1856   :  { %3568 = vadd.xlane.f32.xlu1 %v3567_v24  ;;  %6637 = vmatprep.subr.bf16.mxu1 %v6636_v21 }
0x1857   :  { %6639 = vmatpush3.bf16.msra.mxu1 %v6636_v21 }
0x18e2   :  { %v3572_v28 = vpop.xlane.xlu0 %3571 }
0x18e3   :  { %v3574_v34 = vmul.f32 0.03125, %v3572_v28  ;;  %v3569_v35 = vpop.xlane.xlu1 %3568 }
0x18e4   :  { %v3573_v37 = vmul.f32 0.03125, %v3569_v35 }
0x18e5   :  { %v3576_v48 = vsub.f32 %v3566_v19, %v3574_v34 }
0x18e6   :  { %v3575_v41 = vsub.f32 %v3565_v20, %v3573_v37 }
0x18e7   :  { %v3578_v42 = vmul.f32 %v3576_v48, %v3576_v48 }
0x18e8   :  { %v3577_v43 = vmul.f32 %v3575_v41, %v3575_v41 }
0x18e9   :  { %v3582_v44 = vsel %vm76_vm0, %v3578_v42, 0.0 }
0x18ea   :  { %3583 = vadd.xlane.f32.xlu1 %v3582_v44  ;;  %v3579_v27 = vsel %vm76_vm0, %v3577_v43, 0.0 }
0x18eb   :  { %3580 = vadd.xlane.f32.xlu0 %v3579_v27 }
0x18fb   :  { %6854 = vrot.lane.b32.xlu1 %v6853_v40, %s7041_s15 }
0x18ff   :  { %6859 = vrot.lane.b32.xlu1 %v6848_v49, %s7038_s25 }
0x1901   :  { %6849 = vrot.lane.b32.xlu0 %v6848_v49, %s7041_s15 }
0x1903   :  { %3729 = vrot.lane.b32.xlu1 %v7689_v53, %s7041_s15 }
0x1905   :  { %6864 = vrot.lane.b32.xlu0 %v6853_v40, %s7038_s25 }
0x1977   :  { %v3584_v31 = vpop.xlane.xlu1 %3583 }
0x1978   :  { %v3586_v55 = vmul.f32 0.03125, %v3584_v31  ;;  %v3581_v56 = vpop.xlane.xlu0 %3580 }
0x1979   :  { %v3585_v0 = vmul.f32 0.03125, %v3581_v56 }
0x197a   :  { %v3588_v5 = vadd.f32 1e-05, %v3586_v55 }
0x197b   :  { %v3587_v22 = vadd.f32 1e-05, %v3585_v0  ;;  %v6855_v57 = vpop.permute.xlu1 %6854 }
0x197c   :  { %6996 = vrsqrt.f32 %v3588_v5  ;;  %v6850_v58 = vpop.permute.xlu0 %6849  ;;  %v6857_v59 = vunpack.i.h.bf16 %v6855_v57  ;;  %v6856_v61 = vunpack.i.l.bf16 %v6855_v57 }
0x197d   :  { %6998 = vrsqrt.f32 %v3587_v22  ;;  %v6852_v26 = vunpack.i.h.bf16 %v6850_v58  ;;  %v6851_v62 = vunpack.i.l.bf16 %v6850_v58 }
0x197e   :  { %v6644_v2 = vpack.c.bf16 %v6857_v59, %v6856_v61 }
0x197f   :  { %v6640_v36 = vpack.c.bf16 %v6852_v26, %v6851_v62  ;;  %v6860_v63 = vpop.permute.xlu1 %6859 }
0x1980   :  { %v6862_v39 = vunpack.i.h.bf16 %v6860_v63  ;;  %v6861_v30 = vunpack.i.l.bf16 %v6860_v63  ;;  %v6865_v16 = vpop.permute.xlu0 %6864 }
0x1981   :  { %6641 = vmatprep.subr.bf16.mxu0 %v6640_v36  ;;  %v6867_v18 = vunpack.i.h.bf16 %v6865_v16  ;;  %v6866_v19 = vunpack.i.l.bf16 %v6865_v16 }
0x1982   :  { %6643 = vmatpush3.bf16.msra.mxu0 %v6640_v36  ;;  %v6648_v54 = vpack.c.bf16 %v6862_v39, %v6861_v30 }
0x1983   :  { %6645 = vmatprep.subr.bf16.mxu0 %v6644_v2  ;;  %v6652_v34 = vpack.c.bf16 %v6867_v18, %v6866_v19  ;;  %v3730_v35 = vpop.permute.xlu1 %3729 }
0x1984   :  { %6649 = vmatprep.subr.bf16.mxu1 %v6648_v54 }
0x1986   :  { %v6997_v7 = vpop.eup %6996  ;;  %6647 = vmatpush3.bf16.msra.mxu0 %v6644_v2 }
0x1987   :  { %v6999_v33 = vpop.eup %6998  ;;  %v3592_v13 = vmul.f32 %v6997_v7, %v3576_v48  ;;  %6656 = vmatprep.subr.bf16.mxu0 %v7051_v8 }
0x1988   :  { %v3591_v52 = vmul.f32 %v6999_v33, %v3575_v41 }
0x1989   :  { %6348 = vmatmul.mubr.msk.f32.vlgmr.msra.gmra.mrb[40].mxu0 %vm76_vm0, %v3616_v6  ;;  %v3602_v12 = vmul.f32 %v5766_v32, %v3592_v13 }
0x198a   :  { %6350 = vmatprep.mubr.msk.f32.mxu0 %vm76_vm0, %v3617_v9  ;;  %v3601_v17 = vmul.f32 %v5766_v32, %v3591_v52 }
0x198b   :  { %v7714_v25 = vadd.f32 %v5768_v15, %v3602_v12 }
0x198c   :  { %v7716_v20 = vadd.f32 %v5768_v15, %v3601_v17 }
0x198d   :  { %6351 = vmatmul.mubr.msk.f32.gmra.mrb[42].mxu0 %vm76_vm0, %v3618_v29  ;;  %v3614_v28 = vadd.f32 %v7037_v60, %v7714_v25 }
0x198e   :  { %v3613_v24 = vadd.f32 %v7036_v23, %v7716_v20  ;;  %6371 = vmatprep.mubr.msk.f32.mxu0 %vm7040_vm1, %v7039_v14 }
0x1990   :  { %6336 = vmatprep.mubr.msk.f32.mxu1 %vm76_vm0, %v3613_v24 }
0x1991   :  { %6337 = vmatmul.mubr.msk.f32.vlgmr.msra.gmra.mrb[42].mxu1 %vm76_vm0, %v3614_v28 }
0x1992   :  { %6651 = vmatpush3.bf16.msra.mxu1 %v6648_v54  ;;  %6361 = vmatprep.mubr.msk.f32.mxu1 %vm76_vm0, %v7679_v3 }
0x1993   :  { %6653 = vmatprep.subr.bf16.mxu1 %v6652_v34 }
0x1996   :  { %6655 = vmatpush3.bf16.msra.mxu1 %v6652_v34 }
0x1997   :  { %6660 = vmatprep.subr.bf16.mxu1 %v7051_v8 }
0x1999   :  { %6362 = vmatmul.mubr.msk.f32.vlgmr.msra.gmra.mrb[44].mxu1 %vm76_vm0, %v60_v1 }
0x199a   :  { %6364 = vmatprep.mubr.msk.f32.mxu1 %vm76_vm0, %v61_v4 }
0x199d   :  { %6365 = vmatmul.mubr.msk.f32.gmra.mrb[46].mxu1 %vm76_vm0, %v62_v38 }
0x199e   :  { %6378 = vmatprep.mubr.msk.f32.mxu1 %vm7040_vm1, %v7039_v14 }
0x1a5c   :  { %v6349_v37 = vpop.f32.mrb[40].mxu0 }
0x1a5d   :  { %v3816_v48 = vadd.f32 %v6349_v37, %v3730_v35  ;;  %v3810_v41 = vpop.f32.mrb[41].mxu0 }
0x1a5e   :  { %v3811_v42 = vadd.f32 %v3810_v41, %v3730_v35 }
0x1a60   :  { %v6657_v43 = vpack.c.bf16 %v3816_v48, %v3811_v42  ;;  %v6352_v44 = vpop.f32.mrb[42].mxu0  ;;  %v7739_v27 = vpack.i.bf16 %v3816_v48, %v3811_v42 }
0x1a61   :  { %v3826_v10 = vadd.f32 %v6352_v44, %v3730_v35  ;;  %v3820_v47 = vpop.f32.mrb[43].mxu0 }
0x1a62   :  { %v3821_v40 = vadd.f32 %v3820_v47, %v3730_v35  ;;  %6659 = vmatpush3.bf16.xpose.msk.msra.mxu0 %vm7467_vm5, %v6657_v43 }
0x1a63   :  { %6664 = vmatprep.subr.bf16.mxu0 %v7051_v8 }
0x1a64   :  { %v6661_v45 = vpack.c.bf16 %v3826_v10, %v3821_v40  ;;  %v6338_v46 = vpop.f32.mrb[42].mxu1  ;;  %v7744_v49 = vpack.i.bf16 %v3826_v10, %v3821_v40 }
0x1a65   :  { %v3704_v3 = vpop.f32.mrb[43].mxu1  ;;  %v3710_v51 = vadd.f32 %v6338_v46, %v7689_v53 }
0x1a66   :  { %v3705_v50 = vadd.f32 %v7689_v53, %v3704_v3  ;;  %6663 = vmatpush3.bf16.xpose.msk.msra.mxu1 %vm7467_vm5, %v6661_v45 }
0x1a67   :  { %6667 = vmatprep.subr.bf16.mxu1 %v7051_v8  ;;  %v7755_v31 = vmul.f32 0.35355338, %v3710_v51 }
0x1a68   :  { %v7751_v21 = vmul.f32 0.35355338, %v3705_v50 }
0x1a6a   :  { %6372 = vmatmul.mubr.msk.f32.vlgmr.msra.gmra.mrb[44].mxu0 %vm263_vm2, %v7751_v21 }
0x1a6b   :  { %6385 = vmatprep.mubr.msk.f32.mxu0 %vm7040_vm1, %v7039_v14 }
0x1a6c   :  { %v6363_v55 = vpop.f32.mrb[44].mxu1 }
0x1a6d   :  { %6379 = vmatmul.mubr.msk.f32.vlgmr.msra.gmra.mrb[48].mxu1 %vm263_vm2, %v7755_v31  ;;  %v3922_v56 = vpop.f32.mrb[45].mxu1 }
0x1a6e   :  { %6392 = vmatprep.mubr.msk.f32.mxu1 %vm7040_vm1, %v7039_v14 }
0x1a70   :  { %v6366_v0 = vpop.f32.mrb[46].mxu1 }
0x1a71   :  { %v3932_v5 = vpop.f32.mrb[47].mxu1 }
0x1b3d   :  { %v4018_v22 = vpop.f32.mrb[44].mxu0 }
0x1b3e   :  { %v6373_v57 = vpop.f32.mrb[45].mxu0  ;;  %v4101_v58 = vsel %vm1603_vm3, %v4018_v22, -inf }
0x1b3f   :  { %4102 = vmax.xlane.f32.xlu0 %v4101_v58 }
0x1b40   :  { %v4097_v59 = vpop.f32.mrb[48].mxu1 }
0x1b41   :  { %v6380_v61 = vpop.f32.mrb[49].mxu1  ;;  %v4104_v26 = vsel %vm1603_vm3, %v4097_v59, -inf }
0x1b42   :  { %4105 = vmax.xlane.f32.xlu1 %v4104_v26 }
0x1b53   :  { %3841 = vrot.lane.b32.xlu1 %v7689_v53, %s7038_s25 }
0x1b57   :  { %6874 = vrot.lane.b32.xlu1 %v7744_v49, %s7043_s17 }
0x1b5b   :  { %4269 = vrot.lane.b32.xlu1 %v7751_v21, %s7043_s17 }
0x1bcc   :  { %v4103_v62 = vpop.xlane.xlu0 %4102 }
0x1bcd   :  { %v4107_v36 = vsub.f32 %v4018_v22, %v4103_v62 }
0x1bcf   :  { %v4106_v2 = vpop.xlane.xlu1 %4105  ;;  %v4109_v4 = vmul.f32 1.442695, %v4107_v36 }
0x1bd0   :  { %v4108_v1 = vsub.f32 %v4097_v59, %v4106_v2 }
0x1bd2   :  { %v4111_v6 = vmul.f32 1.442695, %v4108_v1 }
0x1bd3   :  { %v3842_v63 = vpop.permute.xlu1 %3841 }
0x1bd4   :  { %7000 = vpow2.f32 %v4111_v6  ;;  %v3923_v7 = vadd.f32 %v3922_v56, %v3842_v63  ;;  %v3928_v9 = vadd.f32 %v6363_v55, %v3842_v63  ;;  %v3933_v38 = vadd.f32 %v3932_v5, %v3842_v63 }
0x1bd5   :  { %7002 = vpow2.f32 %v4109_v4  ;;  %v3938_v32 = vadd.f32 %v6366_v0, %v3842_v63 }
0x1bd6   :  { %v6665_v53 = vpack.c.bf16 %v3928_v9, %v3923_v7  ;;  %v7771_v39 = vpack.i.bf16 %v3928_v9, %v3923_v7 }
0x1bd7   :  { %v6668_v30 = vpack.c.bf16 %v3938_v32, %v3933_v38  ;;  %v7773_v33 = vpack.i.bf16 %v3938_v32, %v3933_v38  ;;  %v6875_v12 = vpop.permute.xlu1 %6874 }
0x1bd8   :  { %6666 = vmatpush3.bf16.msra.mxu0 %v6665_v53  ;;  %v6877_v17 = vunpack.i.h.bf16 %v6875_v12  ;;  %v6876_v18 = vunpack.i.l.bf16 %v6875_v12 }
0x1bd9   :  { %6669 = vmatpush3.bf16.msra.mxu1 %v6668_v30  ;;  %6670 = vmatprep.subr.bf16.mxu0 %v7051_v8 }
0x1bda   :  { %6674 = vmatprep.subr.bf16.mxu1 %v7051_v8  ;;  %v6675_v60 = vpack.c.bf16 %v6877_v17, %v6876_v18 }
0x1bdb   :  { %v4270_v42 = vpop.permute.xlu1 %4269 }
0x1bde   :  { %v7001_v13 = vpop.eup %7000 }
0x1bdf   :  { %v7003_v52 = vpop.eup %7002  ;;  %v4116_v15 = vsel %vm1603_vm3, %v7001_v13, 0.0 }
0x1be0   :  { %4117 = vadd.xlane.f32.xlu0 %v4116_v15  ;;  %v4113_v54 = vsel %vm1603_vm3, %v7003_v52, 0.0 }
0x1be4   :  { %4114 = vadd.xlane.f32.xlu0 %v4113_v54 }
0x1bfa   :  { %6869 = vrot.lane.b32.xlu0 %v7739_v27, %s7043_s17 }
0x1bfe   :  { %4351 = vrot.lane.b32.xlu0 %v7755_v31, %s7043_s17 }
0x1c6d   :  { %v4118_v16 = vpop.xlane.xlu0 %4117 }
0x1c6e   :  { %7004 = vrcp.f32 %v4118_v16 }
0x1c71   :  { %v4115_v29 = vpop.xlane.xlu0 %4114 }
0x1c72   :  { %7006 = vrcp.f32 %v4115_v29 }
0x1c75   :  { %v6870_v19 = vpop.permute.xlu0 %6869 }
0x1c76   :  { %v6872_v28 = vunpack.i.h.bf16 %v6870_v19  ;;  %v6871_v34 = vunpack.i.l.bf16 %v6870_v19 }
0x1c78   :  { %v7005_v23 = vpop.eup %7004  ;;  %v6671_v48 = vpack.c.bf16 %v6872_v28, %v6871_v34 }
0x1c79   :  { %v4122_v24 = vmul.f32 %v7005_v23, %v7001_v13  ;;  %v4352_v41 = vpop.permute.xlu0 %4351 }
0x1c7b   :  { %6393 = vmatmul.mubr.msk.f32.vlgmr.msra.gmra.mrb[50].mxu1 %vm1603_vm3, %v4122_v24 }
0x1c7c   :  { %v7007_v35 = vpop.eup %7006  ;;  %6677 = vmatpush3.bf16.xpose.msk.msra.mxu1 %vm7467_vm5, %v6675_v60  ;;  %6406 = vmatprep.mubr.msk.f32.mxu1 %vm7040_vm1, %v7039_v14 }
0x1c7d   :  { %v4121_v37 = vmul.f32 %v7007_v35, %v7003_v52  ;;  %6681 = vmatprep.subr.bf16.mxu1 %v7051_v8 }
0x1c7f   :  { %6386 = vmatmul.mubr.msk.f32.vlgmr.msra.gmra.mrb[46].mxu0 %vm1603_vm3, %v4121_v37 }
0x1c80   :  { %6673 = vmatpush3.bf16.xpose.msk.msra.mxu0 %vm7467_vm5, %v6671_v48  ;;  %6399 = vmatprep.mubr.msk.f32.mxu0 %vm7040_vm1, %v7039_v14 }
0x1c81   :  { %6678 = vmatprep.subr.bf16.mxu0 %v7051_v8 }
0x1c83   :  { %6407 = vmatmul.mubr.msk.f32.vlgmr.msra.gmra.mrb[52].mxu1 %vm263_vm2, %v4352_v41 }
0x1c84   :  { %6420 = vmatprep.mubr.msk.f32.mxu1 %vm7040_vm1, %v7039_v14 }
0x1c87   :  { %6400 = vmatmul.mubr.msk.f32.vlgmr.msra.gmra.mrb[48].mxu0 %vm263_vm2, %v4270_v42 }
0x1c88   :  { %6413 = vmatprep.mubr.msk.f32.mxu0 %vm7040_vm1, %v7039_v14 }
0x1d4e   :  { %v7801_v43 = vpop.f32.mrb[50].mxu1 }
0x1d4f   :  { %v6394_v44 = vpop.f32.mrb[51].mxu1 }
0x1d52   :  { %v7803_v10 = vpop.f32.mrb[46].mxu0 }
0x1d53   :  { %v6387_v47 = vpop.f32.mrb[47].mxu0 }
0x1d56   :  { %v4429_v40 = vpop.f32.mrb[52].mxu1 }
0x1d57   :  { %v6408_v45 = vpop.f32.mrb[53].mxu1  ;;  %v4436_v46 = vsel %vm1603_vm3, %v4429_v40, -inf }
0x1d58   :  { %4437 = vmax.xlane.f32.xlu0 %v4436_v46 }
0x1d5a   :  { %v4347_v3 = vpop.f32.mrb[48].mxu0 }
0x1d5b   :  { %v6401_v50 = vpop.f32.mrb[49].mxu0  ;;  %v4433_v51 = vsel %vm1603_vm3, %v4347_v3, -inf }
0x1d5c   :  { %4434 = vmax.xlane.f32.xlu1 %v4433_v51 }
0x1d6d   :  { %6884 = vrot.lane.b32.xlu1 %v7773_v33, %s7043_s17 }
0x1d6e   :  { %6879 = vrot.lane.b32.xlu0 %v7771_v39, %s7043_s17 }
0x1d71   :  { %6889 = vrot.lane.b32.xlu1 %v7739_v27, %s7045_s19 }
0x1de5   :  { %v4438_v55 = vpop.xlane.xlu0 %4437 }
0x1de6   :  { %v4440_v56 = vsub.f32 %v4429_v40, %v4438_v55 }
0x1de8   :  { %v4443_v0 = vmul.f32 1.442695, %v4440_v56 }
0x1de9   :  { %v6880_v5 = vpop.permute.xlu0 %6879  ;;  %v4435_v22 = vpop.xlane.xlu1 %4434 }
0x1dea   :  { %7008 = vpow2.f32 %v4443_v0  ;;  %v6882_v57 = vunpack.i.h.bf16 %v6880_v5  ;;  %v6881_v58 = vunpack.i.l.bf16 %v6880_v5  ;;  %v4439_v59 = vsub.f32 %v4347_v3, %v4435_v22 }
0x1dec   :  { %v6679_v61 = vpack.c.bf16 %v6882_v57, %v6881_v58  ;;  %v4441_v26 = vmul.f32 1.442695, %v4439_v59 }
0x1ded   :  { %v6885_v62 = vpop.permute.xlu1 %6884 }
0x1dee   :  { %7010 = vpow2.f32 %v4441_v26  ;;  %v6887_v36 = vunpack.i.h.bf16 %v6885_v62  ;;  %v6886_v2 = vunpack.i.l.bf16 %v6885_v62  ;;  %6680 = vmatpush3.bf16.msra.mxu0 %v6679_v61 }
0x1def   :  { %6684 = vmatprep.subr.bf16.mxu0 %v7051_v8 }
0x1df0   :  { %v6682_v1 = vpack.c.bf16 %v6887_v36, %v6886_v2 }
0x1df1   :  { %v6890_v9 = vpop.permute.xlu1 %6889 }
0x1df2   :  { %6683 = vmatpush3.bf16.msra.mxu1 %v6682_v1  ;;  %v6892_v16 = vunpack.i.h.bf16 %v6890_v9  ;;  %v6891_v29 = vunpack.i.l.bf16 %v6890_v9 }
0x1df3   :  { %6688 = vmatprep.subr.bf16.mxu1 %v7051_v8 }
0x1df4   :  { %v7009_v4 = vpop.eup %7008  ;;  %v6685_v18 = vpack.c.bf16 %v6892_v16, %v6891_v29 }
0x1df5   :  { %v4448_v6 = vsel %vm1603_vm3, %v7009_v4, 0.0 }
0x1df6   :  { %4449 = vadd.xlane.f32.xlu1 %v4448_v6 }
0x1df8   :  { %v7011_v63 = vpop.eup %7010 }
0x1df9   :  { %v4445_v7 = vsel %vm1603_vm3, %v7011_v63, 0.0 }
0x1dfa   :  { %4446 = vadd.xlane.f32.xlu0 %v4445_v7 }
0x1e07   :  { %4617 = vrot.lane.b32.xlu1 %v7751_v21, %s7045_s19 }
0x1e10   :  { %6894 = vrot.lane.b32.xlu0 %v7744_v49, %s7045_s19 }
0x1e14   :  { %4699 = vrot.lane.b32.xlu0 %v7755_v31, %s7045_s19 }
0x1e83   :  { %v4450_v38 = vpop.xlane.xlu1 %4449 }
0x1e84   :  { %7012 = vrcp.f32 %v4450_v38 }
0x1e87   :  { %v4447_v32 = vpop.xlane.xlu0 %4446  ;;  %v4618_v23 = vpop.permute.xlu1 %4617 }
0x1e88   :  { %7014 = vrcp.f32 %v4447_v32 }
0x1e8b   :  { %v6895_v53 = vpop.permute.xlu0 %6894 }
0x1e8c   :  { %v6897_v30 = vunpack.i.h.bf16 %v6895_v53  ;;  %v6896_v13 = vunpack.i.l.bf16 %v6895_v53 }
0x1e8e   :  { %v7013_v52 = vpop.eup %7012  ;;  %v6689_v15 = vpack.c.bf16 %v6897_v30, %v6896_v13 }
0x1e8f   :  { %v4454_v54 = vmul.f32 %v7013_v52, %v7009_v4  ;;  %v4700_v19 = vpop.permute.xlu0 %4699 }
0x1e91   :  { %6421 = vmatmul.mubr.msk.f32.vlgmr.msra.gmra.mrb[54].mxu1 %vm1603_vm3, %v4454_v54 }
0x1e92   :  { %v7015_v12 = vpop.eup %7014  ;;  %6691 = vmatpush3.bf16.xpose.msk.msra.mxu1 %vm7467_vm5, %v6689_v15  ;;  %6434 = vmatprep.mubr.msk.f32.mxu1 %vm7040_vm1, %v7039_v14 }
0x1e93   :  { %v4453_v17 = vmul.f32 %v7015_v12, %v7011_v63  ;;  %6695 = vmatprep.subr.bf16.mxu1 %v7051_v8 }
0x1e95   :  { %6414 = vmatmul.mubr.msk.f32.vlgmr.msra.gmra.mrb[50].mxu0 %vm1603_vm3, %v4453_v17 }
0x1e96   :  { %6687 = vmatpush3.bf16.xpose.msk.msra.mxu0 %vm7467_vm5, %v6685_v18  ;;  %6427 = vmatprep.mubr.msk.f32.mxu0 %vm7040_vm1, %v7039_v14 }
0x1e97   :  { %6692 = vmatprep.subr.bf16.mxu0 %v7051_v8 }
0x1e99   :  { %6435 = vmatmul.mubr.msk.f32.vlgmr.msra.gmra.mrb[56].mxu1 %vm263_vm2, %v4700_v19 }
0x1e9a   :  { %6448 = vmatprep.mubr.msk.f32.mxu1 %vm7040_vm1, %v7039_v14 }
0x1e9d   :  { %6428 = vmatmul.mubr.msk.f32.vlgmr.msra.gmra.mrb[52].mxu0 %vm263_vm2, %v4618_v23 }
0x1e9e   :  { %6441 = vmatprep.mubr.msk.f32.mxu0 %vm7040_vm1, %v7039_v14 }
0x1f64   :  { %v7841_v24 = vpop.f32.mrb[54].mxu1 }
0x1f65   :  { %v6422_v60 = vpop.f32.mrb[55].mxu1 }
0x1f68   :  { %v7843_v28 = vpop.f32.mrb[50].mxu0 }
0x1f69   :  { %v6415_v34 = vpop.f32.mrb[51].mxu0 }
0x1f6c   :  { %v4777_v35 = vpop.f32.mrb[56].mxu1 }
0x1f6d   :  { %v6436_v37 = vpop.f32.mrb[57].mxu1  ;;  %v4784_v48 = vsel %vm1603_vm3, %v4777_v35, -inf }
0x1f6e   :  { %4785 = vmax.xlane.f32.xlu0 %v4784_v48 }
0x1f70   :  { %v4695_v41 = vpop.f32.mrb[52].mxu0 }
0x1f71   :  { %v6429_v42 = vpop.f32.mrb[53].mxu0  ;;  %v4781_v44 = vsel %vm1603_vm3, %v4695_v41, -inf }
0x1f72   :  { %4782 = vmax.xlane.f32.xlu1 %v4781_v44 }
0x1f83   :  { %6904 = vrot.lane.b32.xlu1 %v7773_v33, %s7045_s19 }
0x1f84   :  { %6899 = vrot.lane.b32.xlu0 %v7771_v39, %s7045_s19 }
0x1f87   :  { %6909 = vrot.lane.b32.xlu1 %v7739_v27, %s7047_s21 }
0x1ffb   :  { %v4786_v47 = vpop.xlane.xlu0 %4785 }
0x1ffc   :  { %v4788_v40 = vsub.f32 %v4777_v35, %v4786_v47 }
0x1ffe   :  { %v4791_v45 = vmul.f32 1.442695, %v4788_v40 }
0x1fff   :  { %v6900_v46 = vpop.permute.xlu0 %6899  ;;  %v4783_v3 = vpop.xlane.xlu1 %4782 }
0x2000   :  { %7016 = vpow2.f32 %v4791_v45  ;;  %v6902_v50 = vunpack.i.h.bf16 %v6900_v46  ;;  %v6901_v51 = vunpack.i.l.bf16 %v6900_v46  ;;  %v4787_v55 = vsub.f32 %v4695_v41, %v4783_v3 }
0x2002   :  { %v6693_v56 = vpack.c.bf16 %v6902_v50, %v6901_v51  ;;  %v4789_v0 = vmul.f32 1.442695, %v4787_v55 }
0x2003   :  { %v6905_v5 = vpop.permute.xlu1 %6904 }
0x2004   :  { %7018 = vpow2.f32 %v4789_v0  ;;  %v6907_v22 = vunpack.i.h.bf16 %v6905_v5  ;;  %v6906_v57 = vunpack.i.l.bf16 %v6905_v5  ;;  %6694 = vmatpush3.bf16.msra.mxu0 %v6693_v56  ;;  %v5817_v56 = vld [vmem:[%s7992_s7 + $0x40] sm:$0xff]  ;;  %v5818_v0 = vld [vmem:[%s7992_s7 + $0x48] sm:$0xff] }
0x2005   :  { %6698 = vmatprep.subr.bf16.mxu0 %v7051_v8  ;;  %v6712_v5 = vpack.c.bf16 %v5818_v0, %v5817_v56 }
0x2006   :  { %v6696_v58 = vpack.c.bf16 %v6907_v22, %v6906_v57  ;;  %v5819_v22 = vld [vmem:[%s7992_s7 + $0x50] sm:$0xff]  ;;  %v5820_v57 = vld [vmem:[%s7992_s7 + $0x58] sm:$0xff] }
0x2007   :  { %v6910_v62 = vpop.permute.xlu1 %6909 }
0x2008   :  { %6697 = vmatpush3.bf16.msra.mxu1 %v6696_v58  ;;  %v6912_v38 = vunpack.i.h.bf16 %v6910_v62  ;;  %v6911_v32 = vunpack.i.l.bf16 %v6910_v62  ;;  %v6716_v58 = vpack.c.bf16 %v5820_v57, %v5819_v22 }
0x2009   :  { %6702 = vmatprep.subr.bf16.mxu1 %v7051_v8 }
0x200a   :  { %v7017_v27 = vpop.eup %7016 }
0x200b   :  { %v4796_v59 = vsel %vm1603_vm3, %v7017_v27, 0.0 }
0x200c   :  { %4797 = vadd.xlane.f32.xlu1 %v4796_v59  ;;  %v5430_v59 = vld [vmem:[%s7998_s9 + $0x8] sm:$0xff] }
0x200e   :  { %v7019_v61 = vpop.eup %7018 }
0x200f   :  { %v4793_v26 = vsel %vm1603_vm3, %v7019_v61, 0.0 }
0x2010   :  { %4794 = vadd.xlane.f32.xlu0 %v4793_v26 }
0x201d   :  { %4961 = vrot.lane.b32.xlu1 %v7751_v21, %s7047_s21 }
0x2026   :  { %6914 = vrot.lane.b32.xlu0 %v7744_v49, %s7047_s21 }
0x202a   :  { %5043 = vrot.lane.b32.xlu0 %v7755_v31, %s7047_s21  ;;  %v6699_v31 = vpack.c.bf16 %v6912_v38, %v6911_v32 }
0x2099   :  { %v4798_v36 = vpop.xlane.xlu1 %4797 }
0x209a   :  { %7020 = vrcp.f32 %v4798_v36 }
0x209d   :  { %v4795_v2 = vpop.xlane.xlu0 %4794  ;;  %v4962_v30 = vpop.permute.xlu1 %4961 }
0x209e   :  { %7022 = vrcp.f32 %v4795_v2 }
0x20a1   :  { %v6915_v1 = vpop.permute.xlu0 %6914 }
0x20a2   :  { %v6917_v4 = vunpack.i.h.bf16 %v6915_v1  ;;  %v6916_v6 = vunpack.i.l.bf16 %v6915_v1 }
0x20a4   :  { %v7021_v63 = vpop.eup %7020  ;;  %v6703_v7 = vpack.c.bf16 %v6917_v4, %v6916_v6 }
0x20a5   :  { %v4802_v9 = vmul.f32 %v7021_v63, %v7017_v27  ;;  %v5044_v53 = vpop.permute.xlu0 %5043  ;;  %v5429_v27 = vld [vmem:[%s7998_s9] sm:$0xff] }
0x20a7   :  { %6449 = vmatmul.mubr.msk.f32.vlgmr.msra.gmra.mrb[58].mxu1 %vm1603_vm3, %v4802_v9 }
0x20a8   :  { %v7023_v21 = vpop.eup %7022  ;;  %6705 = vmatpush3.bf16.xpose.msk.msra.mxu1 %vm7467_vm5, %v6703_v7  ;;  %6462 = vmatprep.mubr.msk.f32.mxu1 %vm7040_vm1, %v7039_v14 }
0x20a9   :  { %v4801_v49 = vmul.f32 %v7023_v21, %v7019_v61  ;;  %6709 = vmatprep.subr.bf16.mxu1 %v7051_v8  ;;  %v6720_v61 = vpack.c.bf16 %v5430_v59, %v5429_v27 }
0x20ab   :  { %6442 = vmatmul.mubr.msk.f32.vlgmr.msra.gmra.mrb[54].mxu0 %vm1603_vm3, %v4801_v49 }
0x20ac   :  { %6701 = vmatpush3.bf16.xpose.msk.msra.mxu0 %vm7467_vm5, %v6699_v31  ;;  %6455 = vmatprep.mubr.msk.f32.mxu0 %vm7040_vm1, %v7039_v14 }
0x20ad   :  { %6706 = vmatprep.subr.bf16.mxu0 %v7051_v8 }
0x20af   :  { %6463 = vmatmul.mubr.msk.f32.vlgmr.msra.gmra.mrb[60].mxu1 %vm263_vm2, %v5044_v53 }
0x20b0   :  { %6476 = vmatprep.mubr.msk.f32.mxu1 %vm7040_vm1, %v7039_v14 }
0x20b3   :  { %6456 = vmatmul.mubr.msk.f32.vlgmr.msra.gmra.mrb[56].mxu0 %vm263_vm2, %v4962_v30 }
0x20b4   :  { %6469 = vmatprep.mubr.msk.f32.mxu0 %vm7040_vm1, %v7039_v14 }
0x217a   :  { %v4957_v13 = vpop.f32.mrb[58].mxu1 }
0x217b   :  { %v6450_v11 = vpop.f32.mrb[59].mxu1 }
0x217c   :  { %v5524_v11 = vld [vmem:[%s7999_s11 + $0x8] sm:$0xff] }
0x217e   :  { %v4878_v52 = vpop.f32.mrb[54].mxu0 }
0x217f   :  { %v6443_v15 = vpop.f32.mrb[55].mxu0 }
0x2182   :  { %v5121_v54 = vpop.f32.mrb[60].mxu1 }
0x2183   :  { %v6464_v16 = vpop.f32.mrb[61].mxu1  ;;  %v5128_v8 = vsel %vm1603_vm3, %v5121_v54, -inf }
0x2184   :  { %5129 = vmax.xlane.f32.xlu0 %v5128_v8  ;;  %v5527_v8 = vld [vmem:[%s7999_s11 + $0x20] sm:$0xff] }
0x2186   :  { %v5039_v29 = vpop.f32.mrb[56].mxu0 }
0x2187   :  { %v6457_v12 = vpop.f32.mrb[57].mxu0  ;;  %v5125_v17 = vsel %vm1603_vm3, %v5039_v29, -inf }
0x2188   :  { %5126 = vmax.xlane.f32.xlu1 %v5125_v17  ;;  %v5822_v17 = vld [vmem:[%s7993_s8 + $0x2] ss:$0 sm:$0xff] }
0x2211   :  { %v5130_v18 = vpop.xlane.xlu0 %5129 }
0x2212   :  { %v5132_v19 = vsub.f32 %v5121_v54, %v5130_v18  ;;  %v5526_v54 = vld [vmem:[%s7999_s11 + $0x18] sm:$0xff] }
0x2214   :  { %v5135_v23 = vmul.f32 1.442695, %v5132_v19 }
0x2215   :  { %v5127_v60 = vpop.xlane.xlu1 %5126 }
0x2216   :  { %7024 = vpow2.f32 %v5135_v23  ;;  %v5131_v14 = vsub.f32 %v5039_v29, %v5127_v60  ;;  %v5528_v29 = vld [vmem:[%s7999_s11 + $0x28] sm:$0xff] }
0x2217   :  { %v6736_v12 = vpack.c.bf16 %v5528_v29, %v5527_v8 }
0x2218   :  { %v5133_v34 = vmul.f32 1.442695, %v5131_v14  ;;  %v5529_v14 = vld [vmem:[%s7999_s11 + $0x30] sm:$0xff] }
0x221a   :  { %7026 = vpow2.f32 %v5133_v34  ;;  %v5530_v34 = vld [vmem:[%s7999_s11 + $0x38] sm:$0xff] }
0x2220   :  { %v7025_v35 = vpop.eup %7024 }
0x2221   :  { %v5140_v37 = vsel %vm1603_vm3, %v7025_v35, 0.0 }
0x2222   :  { %5141 = vadd.xlane.f32.xlu1 %v5140_v37  ;;  %v5825_v37 = vld [vmem:[%s8000_s10] ss:$0 sm:$0xff] }
0x2224   :  { %v7027_v48 = vpop.eup %7026 }
0x2225   :  { %v5137_v41 = vsel %vm1603_vm3, %v7027_v48, 0.0 }
0x2226   :  { %5138 = vadd.xlane.f32.xlu0 %v5137_v41 }
0x2233   :  { %6924 = vrot.lane.b32.xlu1 %v7773_v33, %s7047_s21 }
0x2237   :  { %5307 = vrot.lane.b32.xlu1 %v7843_v28, %s7048_s22 }
0x223b   :  { %5315 = vrot.lane.b32.xlu1 %v4878_v52, %s7049_s23  ;;  %v5525_v52 = vld [vmem:[%s7999_s11 + $0x10] sm:$0xff] }
0x223c   :  { %6919 = vrot.lane.b32.xlu0 %v7771_v39, %s7047_s21  ;;  %v6732_v16 = vpack.c.bf16 %v5526_v54, %v5525_v52 }
0x2240   :  { %5309 = vrot.lane.b32.xlu0 %v7841_v24, %s7048_s22 }
0x2244   :  { %5317 = vrot.lane.b32.xlu0 %v4957_v13, %s7049_s23  ;;  %v5523_v13 = vld [vmem:[%s7999_s11] sm:$0xff] }
0x2245   :  { %v6728_v15 = vpack.c.bf16 %v5524_v11, %v5523_v13 }
0x22af   :  { %v5142_v42 = vpop.xlane.xlu1 %5141 }
0x22b0   :  { %7028 = vrcp.f32 %v5142_v42 }
0x22b3   :  { %v5139_v44 = vpop.xlane.xlu0 %5138  ;;  %v6925_v47 = vpop.permute.xlu1 %6924 }
0x22b4   :  { %7030 = vrcp.f32 %v5139_v44  ;;  %v6927_v40 = vunpack.i.h.bf16 %v6925_v47  ;;  %v6926_v33 = vunpack.i.l.bf16 %v6925_v47 }
0x22b6   :  { %v6710_v45 = vpack.c.bf16 %v6927_v40, %v6926_v33  ;;  %v5828_v33 = vld [vmem:[%s8001_s12] ss:$0 sm:$0xff] }
0x22b7   :  { %v6920_v46 = vpop.permute.xlu0 %6919  ;;  %v5308_v4 = vpop.permute.xlu1 %5307 }
0x22b8   :  { %v6922_v28 = vunpack.i.h.bf16 %v6920_v46  ;;  %v6921_v3 = vunpack.i.l.bf16 %v6920_v46  ;;  %6711 = vmatpush3.bf16.msra.mxu1 %v6710_v45  ;;  %v5329_v7 = vsel %vm263_vm2, %v7803_v10, %v5308_v4  ;;  %v5431_v10 = vld [vmem:[%s7998_s9 + $0x10] sm:$0xff]  ;;  %v5832_v4 = vld [vmem:[%s7996_s13 + $0x4] ss:$0 sm:$0xff] }
0x22b9   :  { %6721 = vmatprep.subr.bf16.mxu1 %v6720_v61 }
0x22ba   :  { %v7029_v50 = vpop.eup %7028  ;;  %v6707_v51 = vpack.c.bf16 %v6922_v28, %v6921_v3 }
0x22bb   :  { %v5146_v39 = vmul.f32 %v7029_v50, %v7025_v35  ;;  %v5310_v1 = vpop.permute.xlu0 %5309  ;;  %v5316_v63 = vpop.permute.xlu1 %5315  ;;  %v6740_v35 = vpack.c.bf16 %v5530_v34, %v5529_v14 }
0x22bc   :  { %6708 = vmatpush3.bf16.msra.mxu0 %v6707_v51  ;;  %v5330_v38 = vsel %vm263_vm2, %v7801_v43, %v5310_v1  ;;  %v5331_v32 = vsel %vm1603_vm3, %v5329_v7, %v5316_v63  ;;  %v5432_v43 = vld [vmem:[%s7998_s9 + $0x18] sm:$0xff]  ;;  %v5834_v7 = vld [vmem:[%s7996_s13 + $0x5] ss:$0 sm:$0xff] }
0x22bd   :  { %6477 = vmatmul.mubr.msk.f32.vlgmr.msra.gmra.mrb[62].mxu1 %vm1603_vm3, %v5146_v39  ;;  %6713 = vmatprep.subr.bf16.mxu0 %v6712_v5  ;;  %v6724_v30 = vpack.c.bf16 %v5432_v43, %v5431_v10 }
0x22be   :  { %v7031_v24 = vpop.eup %7030  ;;  %6723 = vmatpush3.bf16.msra.mxu1 %v6720_v61 }
0x22bf   :  { %v5145_v55 = vmul.f32 %v7031_v24, %v7027_v48  ;;  %v5318_v6 = vpop.permute.xlu0 %5317  ;;  %6725 = vmatprep.subr.bf16.mxu1 %v6724_v30 }
0x22c0   :  { %v5332_v49 = vsel %vm1603_vm3, %v5330_v38, %v5318_v6 }
0x22c1   :  { %6470 = vmatmul.mubr.msk.f32.vlgmr.msra.gmra.mrb[58].mxu0 %vm1603_vm3, %v5145_v55 }
0x22c2   :  { %6715 = vmatpush3.bf16.msra.mxu0 %v6712_v5  ;;  %6727 = vmatpush3.bf16.msra.mxu1 %v6724_v30 }
0x22c3   :  { %6717 = vmatprep.subr.bf16.mxu0 %v6716_v58 }
0x22c6   :  { %6719 = vmatpush3.bf16.msra.mxu0 %v6716_v58 }
0x22c7   :  { %6729 = vmatprep.subr.bf16.mxu0 %v6728_v15 }
0x2390   :  { %v5301_v26 = vpop.f32.mrb[62].mxu1 }
0x2391   :  { %5325 = vrot.lane.b32.xlu0 %v5301_v26, %s7050_s18  ;;  %v6478_v62 = vpop.f32.mrb[63].mxu1 }
0x2394   :  { %v5222_v36 = vpop.f32.mrb[58].mxu0 }
0x2395   :  { %5323 = vrot.lane.b32.xlu1 %v5222_v36, %s7050_s18  ;;  %v6471_v2 = vpop.f32.mrb[59].mxu0 }
0x2403   :  { %v5326_v9 = vpop.permute.xlu0 %5325 }
0x2404   :  { %v5334_v53 = vsel %vm1606_vm4, %v5332_v49, %v5326_v9 }
0x2407   :  { %v5324_v21 = vpop.permute.xlu1 %5323 }
0x2408   :  { %v5333_v31 = vsel %vm1606_vm4, %v5331_v32, %v5324_v21 }
0x2409   :  { %6487 = vmatprep.mubr.msk.f32.mxu0 %vm76_vm0, %v5333_v31 }
0x240a   :  { %6488 = vmatmul.mubr.msk.f32.vlgmr.msra.gmra.mrb[60].mxu0 %vm76_vm0, %v5334_v53 }
0x240b   :  { %6731 = vmatpush3.bf16.msra.mxu0 %v6728_v15 }
0x240c   :  { %6733 = vmatprep.subr.bf16.mxu0 %v6732_v16 }
0x240f   :  { %6735 = vmatpush3.bf16.msra.mxu0 %v6732_v16 }
0x2410   :  { %6737 = vmatprep.subr.bf16.mxu0 %v6736_v12 }
0x2413   :  { %6739 = vmatpush3.bf16.msra.mxu0 %v6736_v12 }
0x2414   :  { %6741 = vmatprep.subr.bf16.mxu0 %v6740_v35 }
0x2417   :  { %6743 = vmatpush3.bf16.msra.mxu0 %v6740_v35 }
0x24dd   :  { %v6489_v18 = vpop.f32.mrb[60].mxu0 }
0x24de   :  { %v5420_v19 = vpop.f32.mrb[61].mxu0  ;;  %v5426_v60 = vadd.f32 %v6489_v18, %v5822_v17 }
0x24df   :  { %v5421_v23 = vadd.f32 %v5822_v17, %v5420_v19 }
0x24e1   :  { %6498 = vmatprep.mubr.msk.f32.mxu1 %vm76_vm0, %v5421_v23 }
0x24e2   :  { %6499 = vmatmul.mubr.msk.f32.vlgmr.msra.gmra.mrb[64].mxu1 %vm76_vm0, %v5426_v60 }
0x25b5   :  { %v6500_v48 = vpop.f32.mrb[64].mxu1 }
0x25b6   :  { %v5518_v41 = vadd.f32 %v6500_v48, %v5825_v37  ;;  %v5512_v42 = vpop.f32.mrb[65].mxu1 }
0x25b7   :  { %v5513_v44 = vadd.f32 %v5825_v37, %v5512_v42 }
0x25b8   :  { %v5522_v40 = vmax.f32 %v5518_v41, 0.0 }
0x25b9   :  { %v5521_v47 = vmax.f32 %v5513_v44, 0.0 }
0x25bb   :  { %6517 = vmatprep.mubr.msk.f32.mxu0 %vm5538_vm6, %v5521_v47 }
0x25bc   :  { %6518 = vmatmul.mubr.msk.f32.vlgmr.msra.gmra.mrb[62].mxu0 %vm5538_vm6, %v5522_v40 }
0x268f   :  { %v6519_v45 = vpop.f32.mrb[62].mxu0 }
0x2690   :  { %v5617_v46 = vadd.f32 %v6519_v45, %v5828_v33  ;;  %v5611_v28 = vpop.f32.mrb[63].mxu0 }
0x2691   :  { %v5612_v3 = vadd.f32 %v5828_v33, %v5611_v28 }
0x2692   :  { %v5621_v50 = vadd.f32 %v5617_v46, %v7714_v25 }
0x2693   :  { %v5620_v51 = vadd.f32 %v5612_v3, %v7716_v20 }
0x2694   :  { %v5625_v39 = vsel %vm76_vm0, %v5621_v50, 0.0 }
0x2695   :  { %5626 = vadd.xlane.f32.xlu0 %v5625_v39  ;;  %v5622_v24 = vsel %vm76_vm0, %v5620_v51, 0.0 }
0x2696   :  { %5623 = vadd.xlane.f32.xlu1 %v5622_v24 }
0x2722   :  { %v5627_v55 = vpop.xlane.xlu0 %5626 }
0x2723   :  { %v5629_v56 = vmul.f32 0.03125, %v5627_v55  ;;  %v5624_v0 = vpop.xlane.xlu1 %5623 }
0x2724   :  { %v5628_v5 = vmul.f32 0.03125, %v5624_v0 }
0x2725   :  { %v5631_v22 = vsub.f32 %v5621_v50, %v5629_v56 }
0x2726   :  { %v5630_v57 = vsub.f32 %v5620_v51, %v5628_v5 }
0x2727   :  { %v5633_v58 = vmul.f32 %v5631_v22, %v5631_v22 }
0x2728   :  { %v5632_v27 = vmul.f32 %v5630_v57, %v5630_v57 }
0x2729   :  { %v5637_v59 = vsel %vm76_vm0, %v5633_v58, 0.0 }
0x272a   :  { %5638 = vadd.xlane.f32.xlu1 %v5637_v59  ;;  %v5634_v25 = vsel %vm76_vm0, %v5632_v27, 0.0 }
0x272b   :  { %5635 = vadd.xlane.f32.xlu0 %v5634_v25 }
0x27b7   :  { %v5639_v20 = vpop.xlane.xlu1 %5638 }
0x27b8   :  { %v5641_v61 = vmul.f32 0.03125, %v5639_v20  ;;  %v5636_v26 = vpop.xlane.xlu0 %5635 }
0x27b9   :  { %v5640_v62 = vmul.f32 0.03125, %v5636_v26 }
0x27ba   :  { %v5643_v36 = vadd.f32 1e-05, %v5641_v61 }
0x27bb   :  { %v5642_v2 = vadd.f32 1e-05, %v5640_v62 }
0x27bc   :  { %7032 = vrsqrt.f32 %v5643_v36 }
0x27bd   :  { %7034 = vrsqrt.f32 %v5642_v2 }
0x27c6   :  { %v7033_v1 = vpop.eup %7032 }
0x27c7   :  { %v7035_v6 = vpop.eup %7034  ;;  %v5647_v63 = vmul.f32 %v7033_v1, %v5631_v22 }
0x27c8   :  { %v5646_v9 = vmul.f32 %v7035_v6, %v5630_v57 }
0x27c9   :  { %v5657_v38 = vmul.f32 %v5832_v4, %v5647_v63 }
0x27ca   :  { %v5656_v32 = vmul.f32 %v5832_v4, %v5646_v9 }
0x27cb   :  { %v5667_v21 = vadd.f32 %v5834_v7, %v5657_v38 }
0x27cc   :  { %v5666_v49 = vadd.f32 %v5834_v7, %v5656_v32 }
0x27cd   :  { %5669 = vst.msk [vmem:[%s8002_s14 + $0x8] sm:$0xff] %vm76_vm0, %v5667_v21 }
0x27ce   :  { %5668 = vst.msk [vmem:[%s8002_s14] sm:$0xff] %vm76_vm0, %v5666_v49 }

</bundles_post_ra>
